<compile_context>
chip_gen: v5e
topology: v5e:2x2
jax: 0.10.0
libtpu: 0.0.40
codegen_flags: <defaults>
</compile_context>

<pallas_src>
import functools

import numpy as np
import jax
import jax.numpy as jnp
from jax.experimental import pallas as pl
from jax.experimental.pallas import tpu as pltpu

HIDDEN = 128      # weight_func MLP hidden width (one f32 vreg of lanes)
MAX_TILE = 2048   # upper bound on level-0 points per grid step (lane axis)

# x_big row layout (sublane axis, 24 rows = 3 f32 sublane tiles):
#   rows  0: 8   parent (level-1) coordinate features (row 4 = constant 1.0)
#   rows  8:16   level-0 coordinate features          (row 12 = constant 1.0)
#   row     16   Haar tap product  g[d%2]*g[h%2]*g[w%2]
#   row     17   folded output bias  b2_lvl1*scale + b2_lvl0
#   rows 18:24   zero padding (keeps the sublane extent a multiple of 8)
X_ROWS = 24
ROW_SCALE = 16
ROW_BIAS = 17


# ----------------------------------------------------------------------------
# Pallas kernel: fused (level-1 @ parent) + (level-0) MLPs + inverse-DWT scale
# ----------------------------------------------------------------------------
def sparse_composer_kernel(x_ref, w1_ref, w2_ref, out_ref, *, compute_dtype):
    """Per-tile fused forward.

    x_ref:   (24, TILE)  coords / scale / bias slab (layout above)
    w1_ref:  (2H, 24)    block-diagonal fused first-layer weights; first-layer
                         biases folded into the constant-1 columns (4 and 12);
                         columns 16..23 are zero so the scale/bias rows never
                         reach the MXU.
    w2_ref:  (2H, 1)     fused second-layer weights (lane-broadcast)
    out_ref: (1, TILE)   lane-dense output slab
    """
    x = x_ref[...]
    # Single MXU push: both MLP first layers (+ folded biases) at once, K=24.
    # HIGHEST keeps the f32 operands un-truncated; the extra MXU passes are
    # free because the MXU is >90% idle in this EUP/VPU-bound kernel.
    z = jnp.dot(w1_ref[...], x,
                preferred_element_type=jnp.float32,
                precision=jax.lax.Precision.HIGHEST)              # (2H, TILE)
    # tanh on the EUP; bf16 on v6e/v7x (2x EUP throughput, half the VMEM
    # traffic of the (2H, TILE) intermediate), f32 on v5e (no bf16 EUP/VPU).
    h = jnp.tanh(z.astype(compute_dtype))                          # (2H, TILE)
    # Second layer: VPU multiply + sublane reduce, f32 accumulation.
    weighted = h * w2_ref[...].astype(compute_dtype)               # (2H, TILE)
    coeff_par = jnp.sum(weighted[:HIDDEN, :], axis=0,
                        dtype=jnp.float32, keepdims=True)          # (1, TILE)
    feat0 = jnp.sum(weighted[HIDDEN:, :], axis=0,
                    dtype=jnp.float32, keepdims=True)              # (1, TILE)
    scale = x[ROW_SCALE:ROW_SCALE + 1, :]                          # (1, TILE)
    bias = x[ROW_BIAS:ROW_BIAS + 1, :]                             # (1, TILE)
    # out = (coeff_par + b2_1) * scale + feat0 + b2_0
    #     =  coeff_par * scale + feat0 + (b2_1*scale + b2_0)   [= bias row]
    out_ref[...] = coeff_par * scale + feat0 + bias


def choose_tile(p0, max_tile=MAX_TILE):
    """Lane-dense tile size (multiple of 128).  Keeps >= 2 grid steps whenever
    possible so v7x's two TensorCores both get work; bigger tiles amortize the
    ~600-cycle per-step Pallas overhead for real workloads."""
    p = -(-p0 // 128) * 128
    tile = min(max_tile, p)
    if p // tile < 2 and p >= 256:
        tile = max(128, (p // 2) // 128 * 128)
    p_pad = -(-p // tile) * tile
    return tile, p_pad


def run_sparse_composer(x_big, w1f, w2c, *, tile, compute_dtype=jnp.float32):
    x_rows, p0_pad = x_big.shape
    assert p0_pad % tile == 0 and tile % 128 == 0
    two_h = w1f.shape[0]
    grid = (p0_pad // tile,)
    cost = pl.CostEstimate(
        flops=int(2 * two_h * x_rows * p0_pad + 3 * two_h * p0_pad),
        transcendentals=int(two_h * p0_pad),
        bytes_accessed=int(4 * (x_rows + 1) * p0_pad
                           + 4 * (int(w1f.size) + int(w2c.size))))
    kernel = functools.partial(sparse_composer_kernel,
                               compute_dtype=compute_dtype)
    return pl.pallas_call(
        kernel,
        out_shape=jax.ShapeDtypeStruct((1, p0_pad), jnp.float32),
        grid=grid,
        in_specs=[
            pl.BlockSpec((x_rows, tile), lambda i: (0, i)),    # per-tile slab
            pl.BlockSpec((two_h, x_rows), lambda i: (0, 0)),   # resident
            pl.BlockSpec((two_h, 1), lambda i: (0, 0)),        # resident
        ],
        out_specs=pl.BlockSpec((1, tile), lambda i: (0, i)),
        compiler_params=pltpu.CompilerParams(
            dimension_semantics=("parallel",)),
        cost_estimate=cost,
    )(x_big, w1f, w2c)


def bf16_eup_supported():
    """bf16 EUP/VPU path exists on v6e/v7x; v5-class and older are f32-only."""
    if jax.default_backend() != "tpu":
        return False
    kind = jax.devices()[0].device_kind.lower()
    return not any(v in kind for v in ("v2", "v3", "v4", "v5"))


# ----------------------------------------------------------------------------
# Host-side index bookkeeping (== spconv.get_indice_pairs / HashTable keys)
# ----------------------------------------------------------------------------
# TODO(synk): spconv's get_indice_pairs / HashTable insert are dedicated index
# kernels with no clean Pallas equivalent; index bookkeeping is done on host
# (numpy) while all per-point compute runs inside the Pallas kernel.
# TODO(synk): parent-level MLP dedup (sort by parent + segment broadcast) is
# only profitable when several level-0 points share a parent; skipped here.
def extract_indices_list(input_indices_np, input_shape, J=1):
    B, N, _ = input_indices_np.shape
    batch_col = np.repeat(np.arange(B, dtype=np.int32), N)[:, None]
    lvl0 = np.concatenate(
        [batch_col, input_indices_np.reshape(-1, 3).astype(np.int32)], axis=1)
    indices_list = [lvl0]
    shapes = [list(input_shape)]
    cur = lvl0
    cur_shape = list(input_shape)
    for _ in range(J):
        # db1 / mode='zero': kernel 2, stride 2, pad 0 along w, then h, then d.
        nxt = cur.copy()
        nxt[:, 1:] = nxt[:, 1:] // 2
        nxt = np.unique(nxt, axis=0)
        cur_shape = [(s - 2) // 2 + 1 for s in cur_shape]
        indices_list.append(nxt)
        shapes.append(cur_shape)
        cur = nxt
    return indices_list, shapes


def linear_key(indices, shape):
    Sd, Sh, Sw = shape
    return (((indices[:, 0].astype(np.int64) * Sd + indices[:, 1]) * Sh
             + indices[:, 2]) * Sw + indices[:, 3])


def coords_feats(indices, shape):
    Sd, Sh, Sw = shape
    x = np.zeros((indices.shape[0], 8), np.float32)
    x[:, 0] = indices[:, 0]
    x[:, 1] = indices[:, 1] / float(Sd)
    x[:, 2] = indices[:, 2] / float(Sh)
    x[:, 3] = indices[:, 3] / float(Sw)
    x[:, 4] = 1.0
    return x


def mlp_np(x, w1, b1, w2, b2):
    h = np.tanh(x @ w1 + b1)
    return (h * w2).sum(-1, keepdims=True) + b2


def reference_forward(lvl0, lvl1, shape0, shape1, params_np, rec_lo):
    """Gather-based reference (mirrors the spconv HashTable query path)."""
    w11, b11, w21, b21 = params_np[1]
    w10, b10, w20, b20 = params_np[0]
    coeff1 = mlp_np(coords_feats(lvl1, shape1), w11, b11, w21, b21)
    parent = lvl0.copy()
    parent[:, 1:] //= 2
    keys1 = linear_key(lvl1, shape1)
    pk = linear_key(parent, shape1)
    m = np.searchsorted(keys1, pk)
    assert np.all(keys1[m] == pk)  # "sum(isempty) == 0"
    scale = (rec_lo[lvl0[:, 1] % 2] * rec_lo[lvl0[:, 2] % 2]
             * rec_lo[lvl0[:, 3] % 2]).astype(np.float32)
    feat0 = mlp_np(coords_feats(lvl0, shape0), w10, b10, w20, b20)
    return coeff1[m] * scale[:, None] + feat0, m


# ----------------------------------------------------------------------------
if __name__ == "__main__":
    B, N = 2, 512
    input_shape = [16, 16, 16]
    J = 1

    key = jax.random.PRNGKey(0)
    kidx, k1, k2, k3, k4, k5, k6 = jax.random.split(key, 7)

    # deterministic inputs: (B, N, 3) voxel coordinates in [0, 16)
    input_indices = jax.random.randint(kidx, (B, N, 3), 0, input_shape[0],
                                       dtype=jnp.int32)
    input_indices_np = np.asarray(input_indices)

    # db1 (Haar) synthesis low-pass taps (rec_lo), same for dep/col/row.
    c = np.float32(1.0 / np.sqrt(2.0))
    rec_lo = np.array([c, c], np.float32)

    # synthetic deterministic weight_func params: 2-layer MLP per level.
    def init_params(ka, kb, kc):
        w1 = 0.5 * jax.random.normal(ka, (8, HIDDEN), jnp.float32)
        b1 = 0.1 * jax.random.normal(kb, (1, HIDDEN), jnp.float32)
        w2 = 0.5 * jax.random.normal(kc, (1, HIDDEN), jnp.float32)
        return (np.asarray(w1), np.asarray(b1), np.asarray(w2))

    params1 = init_params(k1, k2, k3)   # level 1
    params0 = init_params(k4, k5, k6)   # level 0
    b2_lvl1 = np.float32(0.05)
    b2_lvl0 = np.float32(-0.03)

    # index bookkeeping (extract_indcies_list equivalent)
    indices_list, shapes = extract_indices_list(input_indices_np, input_shape, J)
    lvl0, lvl1 = indices_list[0], indices_list[1]
    shape0, shape1 = shapes[0], shapes[1]
    P0 = lvl0.shape[0]

    # parent coords: for kernel=2 / stride=2 / pad=0 every level-0 point's
    # parent floor(coord/2) is guaranteed to exist in the level-1 index set,
    # so the hash query can never miss and recomputing weight_func at the
    # parent coords is exactly equivalent to the gather.
    parent = lvl0.copy()
    parent[:, 1:] //= 2

    tile, P0_pad = choose_tile(P0)

    # Kernel input slab, lane-major (points along the lane axis).
    x0 = coords_feats(lvl0, shape0)          # (P0, 8)
    xp = coords_feats(parent, shape1)        # (P0, 8)
    scale_vec = (rec_lo[lvl0[:, 1] % 2] * rec_lo[lvl0[:, 2] % 2]
                 * rec_lo[lvl0[:, 3] % 2]).astype(np.float32)

    x_big = np.zeros((X_ROWS, P0_pad), np.float32)
    x_big[0:8, :P0] = xp.T
    x_big[8:16, :P0] = x0.T
    x_big[ROW_SCALE, :P0] = scale_vec
    x_big[ROW_BIAS, :P0] = b2_lvl1 * scale_vec + b2_lvl0

    # Fused block-diagonal MLP weights: [level-1 block | level-0 block];
    # first-layer biases folded into the constant-1 coordinate columns.
    w11, b11, w21 = params1
    w10, b10, w20 = params0
    w1f = np.zeros((2 * HIDDEN, X_ROWS), np.float32)
    w1f[:HIDDEN, 0:8] = w11.T
    w1f[:HIDDEN, 4] += b11[0]        # b1 (level 1) folded into constant-1 row
    w1f[HIDDEN:, 8:16] = w10.T
    w1f[HIDDEN:, 12] += b10[0]       # b1 (level 0) folded into constant-1 row
    w2c = np.zeros((2 * HIDDEN, 1), np.float32)
    w2c[:HIDDEN, 0] = w21[0]
    w2c[HIDDEN:, 0] = w20[0]

    x_big_j = jnp.asarray(x_big)
    w1f_j = jnp.asarray(w1f)
    w2c_j = jnp.asarray(w2c)

    # f32 path (runs on every TPU generation): strict correctness anchor.
    out_slab = run_sparse_composer(x_big_j, w1f_j, w2c_j, tile=tile,
                                   compute_dtype=jnp.float32)
    out_slab = np.asarray(jax.block_until_ready(out_slab))
    out = out_slab[0, :P0].reshape(P0, 1)

    # pure-numpy, gather-based reference of the same forward semantics
    params_np = {
        1: (w11, b11, w21, b2_lvl1),
        0: (w10, b10, w20, b2_lvl0),
    }
    ref, _ = reference_forward(lvl0, lvl1, shape0, shape1, params_np, rec_lo)

    assert out.shape == (P0, 1)
    err = np.max(np.abs(out - ref))
    # HIGHEST-precision matmul => remaining error is the EUP tanh approximation.
    assert np.allclose(out, ref, atol=5e-3, rtol=5e-3), f"max err {err}"

    # bf16 tanh / second-layer path (v6e / v7x only): ~2x EUP throughput.
    if bf16_eup_supported():
        out_bf = run_sparse_composer(x_big_j, w1f_j, w2c_j, tile=tile,
                                     compute_dtype=jnp.bfloat16)
        out_bf = np.asarray(jax.block_until_ready(out_bf))[0, :P0].reshape(P0, 1)
        # Loose sanity bound only (the strict check is the f32 path above):
        # 2*128 bf16 tanh terms per point accumulate O(1e-1) absolute error.
        err_bf = np.max(np.abs(out_bf - out))
        assert np.allclose(out_bf, out, atol=2.5e-1, rtol=5e-2), \
            f"bf16 max err {err_bf}"

    print("KERNEL_OK")
</pallas_src>

<mosaic_0001>
module attributes {stable_mosaic.version = 11 : i64} {
  func.func @sparse_composer_kernel(%arg0: i32, %arg1: memref<24x512xf32, #tpu.memory_space<vmem>>, %arg2: memref<256x24xf32, #tpu.memory_space<vmem>>, %arg3: memref<256x1xf32, #tpu.memory_space<vmem>>, %arg4: memref<1x512xf32, #tpu.memory_space<vmem>>) attributes {dimension_semantics = [#tpu.dimension_semantics<parallel>], iteration_bounds = array<i64: 2>, scalar_prefetch = 0 : i64, scratch_operands = 0 : i64, tpu.core_type = #tpu.core_type<tc>, window_params = [{transform_indices = @transform_0, window_bounds = array<i64: 24, 512>}, {pipeline_mode = #tpu.pipeline_mode<synchronous>, transform_indices = @transform_1, window_bounds = array<i64: 256, 24>}, {pipeline_mode = #tpu.pipeline_mode<synchronous>, transform_indices = @transform_2, window_bounds = array<i64: 256, 1>}, {transform_indices = @transform_3, window_bounds = array<i64: 1, 512>}]} {
    %c0 = arith.constant 0 : index
    %c0_0 = arith.constant 0 : index
    %0 = vector.load %arg1[%c0, %c0_0] : memref<24x512xf32, #tpu.memory_space<vmem>>, vector<24x512xf32>
    %c0_1 = arith.constant 0 : index
    %c0_2 = arith.constant 0 : index
    %1 = vector.load %arg2[%c0_1, %c0_2] : memref<256x24xf32, #tpu.memory_space<vmem>>, vector<256x24xf32>
    %cst = arith.constant dense<0.000000e+00> : vector<256x512xf32>
    %2 = tpu.matmul %1, %0, %cst {dimension_numbers = #tpu.dot_dimension_numbers<[1], [0], [0], [1], [0, 0, 1, 1], [], []>, precision = #tpu.contract_precision<fp32>} : vector<256x24xf32>, vector<24x512xf32>, vector<256x512xf32> -> vector<256x512xf32>
    %3 = math.tanh %2 : vector<256x512xf32>
    %c0_3 = arith.constant 0 : index
    %c0_4 = arith.constant 0 : index
    %4 = vector.load %arg3[%c0_3, %c0_4] : memref<256x1xf32, #tpu.memory_space<vmem>>, vector<256x1xf32>
    %5 = vector.broadcast %4 : vector<256x1xf32> to vector<256x512xf32>
    %6 = arith.mulf %3, %5 : vector<256x512xf32>
    %7 = vector.extract_strided_slice %6 {offsets = [0, 0], sizes = [128, 512], strides = [1, 1]} : vector<256x512xf32> to vector<128x512xf32>
    %cst_5 = arith.constant dense<0.000000e+00> : vector<512xf32>
    %8 = vector.multi_reduction <add>, %7, %cst_5 [0] : vector<128x512xf32> to vector<512xf32>
    %9 = vector.shape_cast %8 : vector<512xf32> to vector<1x512xf32>
    %10 = vector.extract_strided_slice %6 {offsets = [128, 0], sizes = [128, 512], strides = [1, 1]} : vector<256x512xf32> to vector<128x512xf32>
    %cst_6 = arith.constant dense<0.000000e+00> : vector<512xf32>
    %11 = vector.multi_reduction <add>, %10, %cst_6 [0] : vector<128x512xf32> to vector<512xf32>
    %12 = vector.shape_cast %11 : vector<512xf32> to vector<1x512xf32>
    %13 = vector.extract_strided_slice %0 {offsets = [16, 0], sizes = [1, 512], strides = [1, 1]} : vector<24x512xf32> to vector<1x512xf32>
    %14 = vector.extract_strided_slice %0 {offsets = [17, 0], sizes = [1, 512], strides = [1, 1]} : vector<24x512xf32> to vector<1x512xf32>
    %15 = arith.mulf %9, %13 : vector<1x512xf32>
    %16 = arith.addf %15, %12 : vector<1x512xf32>
    %17 = arith.addf %16, %14 : vector<1x512xf32>
    %c0_7 = arith.constant 0 : index
    %c0_8 = arith.constant 0 : index
    %18 = vector.load %arg4[%c0_7, %c0_8] : memref<1x512xf32, #tpu.memory_space<vmem>>, vector<1x512xf32>
    tpu.vector_store %arg4[%c0_7, %c0_8], %17 {strides = array<i32>} : memref<1x512xf32, #tpu.memory_space<vmem>>, vector<1x512xf32>,
    return
  }
  func.func @transform_0(%arg0: i32) -> (i32, i32) {
    %c0_i32 = arith.constant 0 : i32
    %c0_i32_0 = arith.constant 0 : i32
    return %c0_i32, %arg0 : i32, i32
  }
  func.func @transform_1(%arg0: i32) -> (i32, i32) {
    %c0_i32 = arith.constant 0 : i32
    %c0_i32_0 = arith.constant 0 : i32
    %c0_i32_1 = arith.constant 0 : i32
    return %c0_i32, %c0_i32_0 : i32, i32
  }
  func.func @transform_2(%arg0: i32) -> (i32, i32) {
    %c0_i32 = arith.constant 0 : i32
    %c0_i32_0 = arith.constant 0 : i32
    %c0_i32_1 = arith.constant 0 : i32
    return %c0_i32, %c0_i32_0 : i32, i32
  }
  func.func @transform_3(%arg0: i32) -> (i32, i32) {
    %c0_i32 = arith.constant 0 : i32
    %c0_i32_0 = arith.constant 0 : i32
    return %c0_i32, %arg0 : i32, i32
  }
}

</mosaic_0001>

<bundles_post_ra>
// kernel: tpu_custom_call.1
= control target key start
LH: loop header
LB: loop body
LE: loop exit
PB: predicated region body
PF: predicated region fallthrough
CT: control target
= control target key end

     0   :  { %8 = vsyncpa [#allocation4], 0  ;;  %s8220_s0 = inlined_call_operand.vmem [shape: f32[24,1024], index: 0, kind: input, shape index: {}]   ;;  %s8221_s1 = inlined_call_operand.vmem [shape: f32[256,24], index: 1, kind: input, shape index: {}]   ;;  %s8222_s2 = inlined_call_operand.vmem [shape: f32[256,1], index: 2, kind: input, shape index: {}]   ;;  %s8223_s3 = inlined_call_operand.hbm [shape: f32[1,1024], index: 3, kind: output, shape index: {}]  }
   0x1   :  { %10 = vsyncpa [#allocation4 + $0x1], 0  ;;  %s6029_s12 = smov 0   ;;  %s6031_s13 = smov 0  }
   0x2   :  { %s6033_s14 = smov 0   ;;  %s6035_s15 = smov 0  }
   0x3 LB: > { %s5625_s16 = sadd.s32 4294967295, %s6006_s15   ;;  %s5626_s17 = sadd.s32 4294967294, %s6006_s15   ;;  %s6006_s15 = sphi %s6035_s15, %s9242_s15   ;;  %s6002_s14 = sphi %s6033_s14, %s9241_s14   ;;  %s5998_s13 = sphi %s6031_s13, %s9240_s13   ;;  %s5994_s12 = sphi %s6029_s12, %s9239_s12  }
   0x4   : > { %s6052_s18 = sadd.s32 1, %s6006_s15   ;;  %s23_s19 = sadd.s32 1, %s6002_s14 }
   0x5   : > { %s20_s20 = ssub.s32 %s6006_s15, %s6052_s18  ;;  %p30_p0 = scmp.ne.s32.totalorder %s6002_s14, %s5998_s13 }
   0x6   : > { %p21_p1 = scmp.eq.s32.totalorder %s20_s20, 0  ;;  %p31_p2 = scmp.eq.s32.totalorder %s6006_s15, 0 }
   0x7   : > { %p102_p3 = scmp.eq.s32.totalorder %s5625_s16, 1  ;;  %p107_p4 = scmp.ne.s32.totalorder %s5998_s13, %s5994_s12 }
   0x8   : > { %s6065_s21 = scalar_select %p21_p1, %s6002_s14, %s23_s19  }
   0x9   : > { %p32_p5 = por %p31_p2, %p30_p0  ;;  %p6067_p6 = por %p102_p3, %p30_p0 }
   0xa   : > { %p108_p7 = scmp.eq.s32.totalorder %s5626_s17, 1  ;;  %p5628_p9 = scmp.ge.s32.totalorder %s6006_s15, 2 }
   0xc   : > { %p6071_p8 = por %p108_p7, %p107_p4  ;;  %130 = sbr.rel (%p5628_p9) target bundleno = 33 (0x21), region = 24 }
  0x11   : > { %133 = sbr.rel (!%p32_p5) target bundleno = 33 (0x21), region = 28  ;;  %s135_s24 = sand.u32 (%p32_p5), 1, %s6002_s14  }
  0x12   : > { %s5637_s25 = sshll.u32 (%p32_p5), %s6006_s15, 5  ;;  %s5638_s26 = smul.u32 (%p32_p5), 96, %s135_s24 }
  0x13   : > { %s140_s29 = scalar_lea.vmem (%p32_p5), %s8220_s0, %s5637_s25 }
  0x14   : > { %v153_v0 = vld [vmem:[%s140_s29] sm:$0xff] (%p32_p5)  ;;  %v155_v1 = vld [vmem:[%s140_s29 + $0x8] sm:$0xff] (%p32_p5)  ;;  %v157_v2 = vld [vmem:[%s140_s29 + $0x10] sm:$0xff] (%p32_p5)  ;;  %s137_s30 = scalar_lea.vmem (%p32_p5), [#allocation2], %s5638_s26 }
  0x15   : > { %154 = vst [vmem:[%s137_s30] sm:$0xff] (%p32_p5), %v153_v0  ;;  %v159_v3 = vld [vmem:[%s140_s29 + $0x18] sm:$0xff] (%p32_p5)  ;;  %v161_v4 = vld [vmem:[%s140_s29 + $0x40] sm:$0xff] (%p32_p5)  ;;  %v163_v5 = vld [vmem:[%s140_s29 + $0x48] sm:$0xff] (%p32_p5) }
  0x16   : > { %156 = vst [vmem:[%s137_s30 + $0x8] sm:$0xff] %v155_v1  ;;  %v165_v6 = vld [vmem:[%s140_s29 + $0x50] sm:$0xff]  ;;  %v167_v7 = vld [vmem:[%s140_s29 + $0x58] sm:$0xff]  ;;  %v169_v8 = vld [vmem:[%s140_s29 + $0x80] sm:$0xff] }
  0x17   : > { %158 = vst [vmem:[%s137_s30 + $0x10] sm:$0xff] %v157_v2  ;;  %v171_v9 = vld [vmem:[%s140_s29 + $0x88] sm:$0xff]  ;;  %v173_v10 = vld [vmem:[%s140_s29 + $0x90] sm:$0xff]  ;;  %v175_v11 = vld [vmem:[%s140_s29 + $0x98] sm:$0xff] }
  0x18   : > { %160 = vst [vmem:[%s137_s30 + $0x18] sm:$0xff] %v159_v3 }
  0x19   : > { %162 = vst [vmem:[%s137_s30 + $0x20] sm:$0xff] %v161_v4 }
  0x1a   : > { %164 = vst [vmem:[%s137_s30 + $0x28] sm:$0xff] %v163_v5 }
  0x1b   : > { %166 = vst [vmem:[%s137_s30 + $0x30] sm:$0xff] %v165_v6 }
  0x1c   : > { %168 = vst [vmem:[%s137_s30 + $0x38] sm:$0xff] %v167_v7 }
  0x1d   : > { %170 = vst [vmem:[%s137_s30 + $0x40] sm:$0xff] %v169_v8 }
  0x1e   : > { %172 = vst [vmem:[%s137_s30 + $0x48] sm:$0xff] %v171_v9 }
  0x1f   : > { %174 = vst [vmem:[%s137_s30 + $0x50] sm:$0xff] %v173_v10 }
  0x20   : > { %176 = vst [vmem:[%s137_s30 + $0x58] sm:$0xff] %v175_v11 }
  0x21 PF: > { %p5631_p10 = scmp.ge.s32.totalorder %s6006_s15, 1  ;;  %p181_p11 = scmp.lt.s32.totalorder %s6006_s15, 3 }
  0x23   : > { %p182_p12 = pnand %p5631_p10, %p181_p11 }
  0x25   : > { %185 = sbr.rel (%p182_p12) target bundleno = 1756 (0x6dc), region = 51 }
  0x2a   : > { %s6086_s4 = sand.u32 1, %s5998_s13   ;;  %v225_v12 = vld [vmem:[%s8221_s1] sm:$0xff]  ;;  %vm257_vm0 = vcmask 195584   ;;  %v226_v13 = vld [vmem:[%s8221_s1 + $0x8] sm:$0xff]  ;;  %v227_v18 = vld [vmem:[%s8221_s1 + $0x10] sm:$0xff]  ;;  %vm5533_vm1 = vcmask 1040384  }
  0x2b   : > { %s5639_s9 = smul.u32 96, %s6086_s4  ;;  %v259_v14 = vsel %vm257_vm0, %v225_v12, 0  ;;  %v262_v15 = vsel %vm257_vm0, %v226_v13, 0  ;;  %v265_v28 = vsel %vm257_vm0, %v227_v18, 0  ;;  %v228_v43 = vld [vmem:[%s8221_s1 + $0x18] sm:$0xff]  ;;  %v229_v58 = vld [vmem:[%s8221_s1 + $0x20] sm:$0xff] }
  0x2c   : > { %v6097_v16 = vand.u32 4294901760, %v259_v14  ;;  %v6099_v17 = vand.u32 4294901760, %v262_v15  ;;  %v6133_v37 = vand.u32 4294901760, %v265_v28  ;;  %v268_v52 = vsel %vm257_vm0, %v228_v43, 0  ;;  %v230_v1 = vld [vmem:[%s8221_s1 + $0x28] sm:$0xff]  ;;  %v231_v8 = vld [vmem:[%s8221_s1 + $0x30] sm:$0xff] }
  0x2d   : > { %s6104_s17 = scalar_lea.vmem [#allocation2], %s5639_s9  ;;  %v6161_v57 = vand.u32 4294901760, %v268_v52  ;;  %v271_v61 = vsel %vm257_vm0, %v229_v58, 0  ;;  %v274_v4 = vsel %vm257_vm0, %v230_v1, 0  ;;  %v277_v11 = vsel %vm257_vm0, %v231_v8, 0  ;;  %s5632_s6 = sshll.u32 %s6086_s4, 2 }
  0x2e   : > { %8596 = vst [vmem:[#allocation6_spill] sm:$0xff] %v6097_v16  ;;  %v221_v19 = vld [vmem:[%s6104_s17 + $0x40] sm:$0xff]  ;;  %v6110_v22 = vsub.f32 %v259_v14, %v6097_v16  ;;  %v6113_v23 = vsub.f32 %v262_v15, %v6099_v17  ;;  %v222_v27 = vld [vmem:[%s6104_s17 + $0x48] sm:$0xff]  ;;  %v6150_v49 = vsub.f32 %v265_v28, %v6133_v37  ;;  %v6182_v0 = vand.u32 4294901760, %v271_v61  ;;  %v232_v15 = vld [vmem:[%s8221_s1 + $0x38] sm:$0xff]  ;;  %s5634_s7 = sshll.u32 %s5625_s16, 2 }
  0x2f   : > { %8597 = vst [vmem:[#allocation7_spill] sm:$0xff] %v6099_v17  ;;  %v217_v20 = vld [vmem:[%s6104_s17 + $0x20] sm:$0xff]  ;;  %v367_v24 = vand.u32 4294901760, %v221_v19  ;;  %v6122_v30 = vand.u32 4294901760, %v222_v27  ;;  %v6172_v60 = vsub.f32 %v268_v52, %v6161_v57  ;;  %v6204_v7 = vand.u32 4294901760, %v274_v4  ;;  %s5556_s10 = scalar_lea.hbm %s8223_s3, %s5634_s7  ;;  %s210_s11 = scalar_lea.vmem [#allocation3], %s5632_s6 }
  0x30   : > { %v213_v21 = vld [vmem:[%s6104_s17] sm:$0xff]  ;;  %8598 = vst [vmem:[#allocation8_spill] sm:$0xff] %v6110_v22  ;;  %v369_v25 = vand.u32 4294901760, %v217_v20  ;;  %v6120_v29 = vand.u32 4294901760, %v6110_v22  ;;  %v6131_v36 = vand.u32 4294901760, %v6113_v23  ;;  %v6159_v56 = vand.u32 4294901760, %v6150_v49 }
  0x31   : > { %8599 = vst [vmem:[#allocation9_spill] sm:$0xff] %v6113_v23  ;;  %v6115_v26 = vand.u32 4294901760, %v213_v21  ;;  %368 = vmatpush.msra.mxu0 %v367_v24  ;;  %v644_v31 = vsub.f32 %v221_v19, %v367_v24  ;;  %987 = vmatpush.msra.mxu3 %v367_v24  ;;  %v6128_v35 = vsub.f32 %v222_v27, %v6122_v30  ;;  %v6180_v63 = vand.u32 4294901760, %v6172_v60  ;;  %s5558_s19 = sshll.u32 %s210_s11, 4  ;;  %s5560_s20 = sshll.u32 %s5556_s10, 4  ;;  %s5559_s19 = int_to_ptr.vmem [resolvable:$true] %s5558_s19  ;;  %s5561_s20 = int_to_ptr.hbm [resolvable:$true] %s5560_s20 }
  0x32   : > { %8600 = vst [vmem:[#allocation10_spill] sm:$0xff] %v6120_v29  ;;  %v650_v32 = vsub.f32 %v217_v20, %v369_v25  ;;  %v376_v34 = vsub.f32 %v6110_v22, %v6120_v29  ;;  %v384_v48 = vsub.f32 %v6113_v23, %v6131_v36  ;;  %v392_v59 = vsub.f32 %v6150_v49, %v6159_v56  ;;  %s5546_s16 = scalar_lea.sflag [#allocation4], %s6086_s4  ;;  %s5964_s27 = scalar_lea.hbm %s8223_s3, 8 }
  0x33   : > { %v656_v33 = vsub.f32 %v213_v21, %v6115_v26  ;;  %8601 = vst [vmem:[#allocation11_spill] sm:$0xff] %v6131_v36  ;;  %370 = vmatpush.msra.mxu0 %v369_v25  ;;  %805 = vmatpush.msra.mxu2 %v644_v31  ;;  %v645_v38 = vand.u32 4294901760, %v644_v31  ;;  %v8225_v42 = vand.u32 4294901760, %v6128_v35  ;;  %v400_v2 = vsub.f32 %v6172_v60, %v6180_v63 }
  0x34   : > { %8602 = vst [vmem:[#allocation12_spill] sm:$0xff] %v6133_v37  ;;  %v651_v39 = vand.u32 4294901760, %v650_v32  ;;  %v6135_v41 = vand.u32 4294901760, %v376_v34  ;;  %989 = vmatpush.msra.mxu3 %v369_v25  ;;  %v6156_v55 = vand.u32 4294901760, %v384_v48  ;;  %v6177_v62 = vand.u32 4294901760, %v392_v59 }
  0x35   : > { %v657_v40 = vand.u32 4294901760, %v656_v33  ;;  %372 = vmatpush.msra.mxu0 %v6115_v26  ;;  %808 = vmatpush.msra.mxu2 %v650_v32  ;;  %v646_v44 = vsub.f32 %v644_v31, %v645_v38  ;;  %v1779_v47 = vsub.f32 %v6128_v35, %v8225_v42  ;;  %8604 = vst [vmem:[#allocation14_spill] sm:$0xff] %v6150_v49  ;;  %v6199_v5 = vand.u32 4294901760, %v400_v2  ;;  %v236_v2 = vld [vmem:[%s8221_s1 + $0x58] sm:$0xff] }
  0x36   : > { %8603 = vst [vmem:[#allocation13_spill] sm:$0xff] %v6135_v41  ;;  %v652_v45 = vsub.f32 %v650_v32, %v651_v39  ;;  %378 = vmatmul.f32.vlgmr.msra.gmra.mxu0 %v6135_v41  ;;  %991 = vmatpush.msra.mxu3 %v6115_v26  ;;  %v6194_v3 = vsub.f32 %v271_v61, %v6182_v0  ;;  %v6224_v14 = vand.u32 4294901760, %v277_v11  ;;  %v280_v20 = vsel %vm257_vm0, %v232_v15, 0 }
  0x37   : > { %v658_v46 = vsub.f32 %v656_v33, %v657_v40  ;;  %v647_v50 = vand.u32 4294901760, %v646_v44  ;;  %811 = vmatpush.msra.mxu2 %v656_v33  ;;  %995 = vmatmul.f32.vlgmr.msra.gmra.mxu3 %v6120_v29  ;;  %v1780_v53 = vand.u32 4294901760, %v1779_v47  ;;  %8605 = vst [vmem:[#allocation15_spill] sm:$0xff] %v6156_v55  ;;  %v6214_v10 = vsub.f32 %v274_v4, %v6204_v7  ;;  %v235_v47 = vld [vmem:[%s8221_s1 + $0x50] sm:$0xff] }
  0x38   : > { %v653_v51 = vand.u32 4294901760, %v652_v45  ;;  %814 = vmatmul.f32.vlgmr.msra.gmra.mxu2 %v6110_v22  ;;  %1201 = vmatpush.msrb.mxu0 %v645_v38  ;;  %8606 = vst [vmem:[#allocation16_spill] sm:$0xff] %v6159_v56  ;;  %v6202_v6 = vand.u32 4294901760, %v6194_v3  ;;  %v6234_v19 = vsub.f32 %v277_v11, %v6224_v14  ;;  %v234_v38 = vld [vmem:[%s8221_s1 + $0x48] sm:$0xff]  ;;  %v289_v52 = vsel %vm257_vm0, %v235_v47, 0 }
  0x39   : > { %648 = vmatpush.msra.mxu1 %v647_v50  ;;  %1501 = vmatpush.msrb.mxu2 %v6122_v30  ;;  %v659_v54 = vand.u32 4294901760, %v658_v46  ;;  %8607 = vst [vmem:[#allocation17_spill] sm:$0xff] %v6161_v57  ;;  %v6222_v13 = vand.u32 4294901760, %v6214_v10  ;;  %v286_v43 = vsel %vm257_vm0, %v234_v38, 0  ;;  %v6312_v61 = vand.u32 4294901760, %v289_v52 }
  0x3a   : > { %1781 = vmatpush.msrb.mxu3 %v1780_v53  ;;  %1205 = vmatpush.msrb.mxu0 %v651_v39  ;;  %8608 = vst [vmem:[#allocation18_spill] sm:$0xff] %v6172_v60  ;;  %v408_v9 = vsub.f32 %v6194_v3, %v6202_v6  ;;  %v6284_v46 = vand.u32 4294901760, %v286_v43  ;;  %v292_v11 = vsel %vm257_vm0, %v236_v2, 0  ;;  %vm5535_vm2 = vcmask 1042434  }
  0x3b   : > { %654 = vmatpush.msra.mxu1 %v653_v51  ;;  %8609 = vst [vmem:[#allocation19_spill] sm:$0xff] %v6177_v62  ;;  %v416_v18 = vsub.f32 %v6214_v10, %v6222_v13  ;;  %v218_v51 = vld [vmem:[%s6104_s17 + $0x28] sm:$0xff]  ;;  %vm5537_vm3 = vcmask 1041408  }
  0x3c   : > { %1209 = vmatpush.msrb.mxu0 %v657_v40  ;;  %8610 = vst [vmem:[#allocation20_spill] sm:$0xff] %v6180_v63  ;;  %v6219_v12 = vand.u32 4294901760, %v408_v9  ;;  %v6294_v50 = vsub.f32 %v286_v43, %v6284_v46  ;;  %v6299_v53 = vand.u32 4294901760, %v218_v51  ;;  %v6327_v9 = vsub.f32 %v289_v52, %v6312_v61 }
  0x3d   : > { %660 = vmatpush.msra.mxu1 %v659_v54  ;;  %8611 = vst [vmem:[#allocation21_spill] sm:$0xff] %v6182_v0  ;;  %v6239_v21 = vand.u32 4294901760, %v416_v18 }
  0x3e   : > { %1938 = vmatpush.msra.mxu0 %v6128_v35  ;;  %662 = vmatmul.f32.vlgmr.msra.gmra.mxu1 %v6097_v16  ;;  %8612 = vst [vmem:[#allocation22_spill] sm:$0xff] %v6194_v3  ;;  %v6304_v54 = vsub.f32 %v218_v51, %v6299_v53  ;;  %v6310_v59 = vand.u32 4294901760, %v6294_v50  ;;  %v238_v51 = vld [vmem:[%s8221_s1 + $0x68] sm:$0xff] }
  0x3f   : > { %386 = vmatmul.f32.gmra.mxu0 %v6156_v55  ;;  %1353 = vmatpush.msrb.mxu1 %v367_v24  ;;  %8613 = vst [vmem:[#allocation23_spill] sm:$0xff] %v6199_v5  ;;  %v6242_v24 = vand.u32 4294901760, %v6234_v19 }
  0x40   : > { %1001 = vmatmul.f32.gmra.mxu3 %v6131_v36  ;;  %819 = vmatmul.f32.gmra.mxu2 %v6113_v23  ;;  %8614 = vst [vmem:[#allocation24_spill] sm:$0xff] %v6202_v6  ;;  %v8224_v1 = vand.u32 4294901760, %v6304_v54  ;;  %v448_v8 = vsub.f32 %v6294_v50, %v6310_v59 }
  0x41   : > { %1355 = vmatpush.msrb.mxu1 %v369_v25  ;;  %8615 = vst [vmem:[#allocation25_spill] sm:$0xff] %v6204_v7  ;;  %v6244_v25 = vand.u32 4294901760, %v280_v20  ;;  %v424_v27 = vsub.f32 %v6234_v19, %v6242_v24  ;;  %1503 = vmatpush.msrb.mxu2 %v6299_v53 }
  0x42   : > { %8616 = vst [vmem:[#allocation26_spill] sm:$0xff] %v6214_v10  ;;  %1941 = vmatpush.msra.mxu0 %v6304_v54  ;;  %v1785_v4 = vsub.f32 %v6304_v54, %v8224_v1  ;;  %v6332_v18 = vand.u32 4294901760, %v448_v8 }
  0x43   : > { %1357 = vmatpush.msrb.mxu1 %v6115_v26  ;;  %8617 = vst [vmem:[#allocation27_spill] sm:$0xff] %v6219_v12  ;;  %v233_v26 = vld [vmem:[%s8221_s1 + $0x40] sm:$0xff]  ;;  %v6254_v28 = vsub.f32 %v280_v20, %v6244_v25  ;;  %v6259_v32 = vand.u32 4294901760, %v424_v27  ;;  %v6335_v20 = vand.u32 4294901760, %v6327_v9 }
  0x44   : > { %8618 = vst [vmem:[#allocation28_spill] sm:$0xff] %v6222_v13  ;;  %v283_v31 = vsel %vm257_vm0, %v233_v26, 0  ;;  %v1786_v15 = vand.u32 4294901760, %v1785_v4  ;;  %v6337_v26 = vand.u32 4294901760, %v292_v11  ;;  %v237_v27 = vld [vmem:[%s8221_s1 + $0x60] sm:$0xff]  ;;  %v298_v4 = vsel %vm257_vm0, %v238_v51, 0 }
  0x45   : > { %2120 = vmatpush.msra.mxu1 %v6122_v30  ;;  %8619 = vst [vmem:[#allocation29_spill] sm:$0xff] %v6224_v14  ;;  %v6262_v33 = vand.u32 4294901760, %v6254_v28  ;;  %v6264_v34 = vand.u32 4294901760, %v283_v31 }
  0x46   : > { %666 = vmatmul.f32.gmra.mxu1 %v6099_v17  ;;  %8620 = vst [vmem:[#allocation30_spill] sm:$0xff] %v6234_v19  ;;  %1787 = vmatpush.msrb.mxu3 %v1786_v15  ;;  %v6347_v38 = vsub.f32 %v292_v11, %v6337_v26  ;;  %v6377_v15 = vand.u32 4294901760, %v298_v4 }
  0x47   : > { %394 = vmatmul.f32.gmra.mxu0 %v6177_v62  ;;  %8621 = vst [vmem:[#allocation31_spill] sm:$0xff] %v6239_v21  ;;  %v432_v39 = vsub.f32 %v6254_v28, %v6262_v33  ;;  %v6274_v40 = vsub.f32 %v283_v31, %v6264_v34  ;;  %2122 = vmatpush.msra.mxu1 %v6299_v53 }
  0x48   : > { %1007 = vmatmul.f32.gmra.mxu3 %v6159_v56  ;;  %824 = vmatmul.f32.gmra.mxu2 %v6150_v49  ;;  %8622 = vst [vmem:[#allocation32_spill] sm:$0xff] %v6242_v24  ;;  %v456_v31 = vsub.f32 %v6327_v9, %v6335_v20  ;;  %v6355_v47 = vand.u32 4294901760, %v6347_v38 }
  0x49   : > { %8623 = vst [vmem:[#allocation33_spill] sm:$0xff] %v6244_v25  ;;  %v6279_v44 = vand.u32 4294901760, %v432_v39  ;;  %v6282_v45 = vand.u32 4294901760, %v6274_v40  ;;  %v295_v39 = vsel %vm257_vm0, %v237_v27, 0  ;;  %v239_v27 = vld [vmem:[%s8221_s1 + $0x70] sm:$0xff] }
  0x4a   : > { %8624 = vst [vmem:[#allocation34_spill] sm:$0xff] %v6254_v28  ;;  %v6352_v43 = vand.u32 4294901760, %v456_v31  ;;  %v464_v52 = vsub.f32 %v6347_v38, %v6355_v47  ;;  %v301_v51 = vsel %vm257_vm0, %v239_v27, 0 }
  0x4b   : > { %8625 = vst [vmem:[#allocation35_spill] sm:$0xff] %v6259_v32  ;;  %v440_v48 = vsub.f32 %v6274_v40, %v6282_v45  ;;  %v6397_v42 = vand.u32 4294901760, %v301_v51 }
  0x4c   : > { %8626 = vst [vmem:[#allocation36_spill] sm:$0xff] %v6262_v33  ;;  %v6372_v8 = vand.u32 4294901760, %v464_v52 }
  0x4d   : > { %8627 = vst [vmem:[#allocation37_spill] sm:$0xff] %v6264_v34  ;;  %v6307_v58 = vand.u32 4294901760, %v440_v48  ;;  %v6357_v48 = vand.u32 4294901760, %v295_v39  ;;  %v6407_v27 = vsub.f32 %v301_v51, %v6397_v42 }
  0x4e   : > { %670 = vmatmul.f32.gmra.mxu1 %v6133_v37  ;;  %8628 = vst [vmem:[#allocation38_spill] sm:$0xff] %v6274_v40 }
  0x4f   : > { %402 = vmatmul.f32.gmra.mxu0 %v6199_v5  ;;  %8629 = vst [vmem:[#allocation39_spill] sm:$0xff] %v6279_v44  ;;  %v6367_v2 = vsub.f32 %v295_v39, %v6357_v48  ;;  %v6387_v39 = vsub.f32 %v298_v4, %v6377_v15 }
  0x50   : > { %1013 = vmatmul.f32.gmra.mxu3 %v6180_v63  ;;  %829 = vmatmul.f32.gmra.mxu2 %v6172_v60  ;;  %8630 = vst [vmem:[#allocation40_spill] sm:$0xff] %v6282_v45 }
  0x51   : > { %8631 = vst [vmem:[#allocation41_spill] sm:$0xff] %v6284_v46  ;;  %v6375_v11 = vand.u32 4294901760, %v6367_v2  ;;  %v6395_v1 = vand.u32 4294901760, %v6387_v39 }
  0x52   : > { %8632 = vst [vmem:[#allocation42_spill] sm:$0xff] %v6294_v50 }
  0x53   : > { %8633 = vst [vmem:[#allocation43_spill] sm:$0xff] %v6307_v58  ;;  %v472_v31 = vsub.f32 %v6367_v2, %v6375_v11  ;;  %v480_v4 = vsub.f32 %v6387_v39, %v6395_v1 }
  0x54   : > { %8634 = vst [vmem:[#allocation44_spill] sm:$0xff] %v6310_v59 }
  0x55   : > { %8635 = vst [vmem:[#allocation45_spill] sm:$0xff] %v6312_v61  ;;  %v6392_v52 = vand.u32 4294901760, %v472_v31 }
  0x56   : > { %674 = vmatmul.f32.gmra.mxu1 %v6161_v57  ;;  %8636 = vst [vmem:[#allocation46_spill] sm:$0xff] %v6327_v9 }
  0x57   : > { %410 = vmatmul.f32.gmra.mxu0 %v6219_v12  ;;  %8637 = vst [vmem:[#allocation47_spill] sm:$0xff] %v6332_v18 }
  0x58   : > { %1019 = vmatmul.f32.gmra.mxu3 %v6202_v6  ;;  %834 = vmatmul.f32.gmra.mxu2 %v6194_v3  ;;  %8638 = vst [vmem:[#allocation48_spill] sm:$0xff] %v6335_v20 }
  0x59   : > { %8639 = vst [vmem:[#allocation49_spill] sm:$0xff] %v6337_v26 }
  0x5a   : > { %8640 = vst [vmem:[#allocation50_spill] sm:$0xff] %v6347_v38 }
  0x5b   : > { %8641 = vst [vmem:[#allocation51_spill] sm:$0xff] %v6352_v43 }
  0x5c   : > { %8642 = vst [vmem:[#allocation52_spill] sm:$0xff] %v6355_v47 }
  0x5d   : > { %8643 = vst [vmem:[#allocation53_spill] sm:$0xff] %v6357_v48 }
  0x5e   : > { %678 = vmatmul.f32.gmra.mxu1 %v6182_v0  ;;  %8644 = vst [vmem:[#allocation54_spill] sm:$0xff] %v6367_v2 }
  0x5f   : > { %418 = vmatmul.f32.gmra.mxu0 %v6239_v21  ;;  %8645 = vst [vmem:[#allocation55_spill] sm:$0xff] %v6372_v8 }
  0x60   : > { %1025 = vmatmul.f32.gmra.mxu3 %v6222_v13  ;;  %839 = vmatmul.f32.gmra.mxu2 %v6214_v10  ;;  %8646 = vst [vmem:[#allocation56_spill] sm:$0xff] %v6375_v11  ;;  %v244_v13 = vld [vmem:[%s8221_s1 + $0x98] sm:$0xff] }
  0x61   : > { %8647 = vst [vmem:[#allocation57_spill] sm:$0xff] %v6377_v15 }
  0x62   : > { %8648 = vst [vmem:[#allocation58_spill] sm:$0xff] %v6387_v39 }
  0x63   : > { %8649 = vst [vmem:[#allocation59_spill] sm:$0xff] %v6392_v52 }
  0x64   : > { %8650 = vst [vmem:[#allocation60_spill] sm:$0xff] %v6395_v1 }
  0x65   : > { %8651 = vst [vmem:[#allocation61_spill] sm:$0xff] %v6397_v42 }
  0x66   : > { %682 = vmatmul.f32.gmra.mxu1 %v6204_v7  ;;  %8652 = vst [vmem:[#allocation62_spill] sm:$0xff] %v6407_v27 }
  0x67   : > { %426 = vmatmul.f32.gmra.mxu0 %v6259_v32 }
  0x68   : > { %1031 = vmatmul.f32.gmra.mxu3 %v6242_v24  ;;  %844 = vmatmul.f32.gmra.mxu2 %v6234_v19 }
  0x6e   : > { %686 = vmatmul.f32.gmra.mxu1 %v6224_v14 }
  0x6f   : > { %434 = vmatmul.f32.gmra.mxu0 %v6279_v44 }
  0x70   : > { %1037 = vmatmul.f32.gmra.mxu3 %v6262_v33  ;;  %849 = vmatmul.f32.gmra.mxu2 %v6254_v28 }
  0x76   : > { %690 = vmatmul.f32.gmra.mxu1 %v6244_v25 }
  0x77   : > { %442 = vmatmul.f32.gmra.mxu0 %v6307_v58 }
  0x78   : > { %1043 = vmatmul.f32.gmra.mxu3 %v6282_v45  ;;  %854 = vmatmul.f32.gmra.mxu2 %v6274_v40  ;;  %v243_v40 = vld [vmem:[%s8221_s1 + $0x90] sm:$0xff] }
  0x7e   : > { %694 = vmatmul.f32.gmra.mxu1 %v6264_v34 }
  0x7f   : > { %450 = vmatmul.f32.gmra.mxu0 %v6332_v18 }
  0x80   : > { %1049 = vmatmul.f32.gmra.mxu3 %v6310_v59  ;;  %859 = vmatmul.f32.gmra.mxu2 %v6294_v50  ;;  %v242_v50 = vld [vmem:[%s8221_s1 + $0x88] sm:$0xff] }
  0x86   : > { %698 = vmatmul.f32.gmra.mxu1 %v6284_v46 }
  0x87   : > { %458 = vmatmul.f32.gmra.mxu0 %v6352_v43 }
  0x88   : > { %1055 = vmatmul.f32.gmra.mxu3 %v6335_v20  ;;  %864 = vmatmul.f32.gmra.mxu2 %v6327_v9  ;;  %v240_v20 = vld [vmem:[%s8221_s1 + $0x78] sm:$0xff]  ;;  %v241_v9 = vld [vmem:[%s8221_s1 + $0x80] sm:$0xff] }
  0x89   : > { %v304_v31 = vsel %vm257_vm0, %v240_v20, 0 }
  0x8a   : > { %v6417_v59 = vand.u32 4294901760, %v304_v31 }
  0x8c   : > { %8655 = vst [vmem:[#allocation65_spill] sm:$0xff] %v6417_v59  ;;  %v6427_v51 = vsub.f32 %v304_v31, %v6417_v59 }
  0x8e   : > { %702 = vmatmul.f32.gmra.mxu1 %v6312_v61  ;;  %8656 = vst [vmem:[#allocation66_spill] sm:$0xff] %v6427_v51 }
  0x8f   : > { %466 = vmatmul.f32.gmra.mxu0 %v6372_v8 }
  0x90   : > { %1061 = vmatmul.f32.gmra.mxu3 %v6355_v47  ;;  %869 = vmatmul.f32.gmra.mxu2 %v6347_v38  ;;  %v6412_v47 = vand.u32 4294901760, %v480_v4  ;;  %v6415_v38 = vand.u32 4294901760, %v6407_v27  ;;  %v307_v4 = vsel %vm257_vm0, %v241_v9, 0 }
  0x91   : > { %v6437_v45 = vand.u32 4294901760, %v307_v4 }
  0x92   : > { %8653 = vst [vmem:[#allocation63_spill] sm:$0xff] %v6412_v47  ;;  %v488_v20 = vsub.f32 %v6407_v27, %v6415_v38 }
  0x93   : > { %8654 = vst [vmem:[#allocation64_spill] sm:$0xff] %v6415_v38  ;;  %v6447_v31 = vsub.f32 %v307_v4, %v6437_v45 }
  0x94   : > { %8659 = vst [vmem:[#allocation69_spill] sm:$0xff] %v6437_v45 }
  0x95   : > { %8660 = vst [vmem:[#allocation70_spill] sm:$0xff] %v6447_v31 }
  0x96   : > { %706 = vmatmul.f32.gmra.mxu1 %v6337_v26 }
  0x97   : > { %474 = vmatmul.f32.gmra.mxu0 %v6392_v52 }
  0x98   : > { %1067 = vmatmul.f32.gmra.mxu3 %v6375_v11  ;;  %874 = vmatmul.f32.gmra.mxu2 %v6367_v2  ;;  %v6432_v11 = vand.u32 4294901760, %v488_v20  ;;  %v6435_v2 = vand.u32 4294901760, %v6427_v51  ;;  %v310_v20 = vsel %vm257_vm0, %v242_v50, 0 }
  0x99   : > { %v6457_v33 = vand.u32 4294901760, %v310_v20 }
  0x9a   : > { %8657 = vst [vmem:[#allocation67_spill] sm:$0xff] %v6432_v11  ;;  %v496_v9 = vsub.f32 %v6427_v51, %v6435_v2 }
  0x9b   : > { %8658 = vst [vmem:[#allocation68_spill] sm:$0xff] %v6435_v2  ;;  %v6467_v4 = vsub.f32 %v310_v20, %v6457_v33 }
  0x9c   : > { %8663 = vst [vmem:[#allocation73_spill] sm:$0xff] %v6457_v33 }
  0x9d   : > { %8664 = vst [vmem:[#allocation74_spill] sm:$0xff] %v6467_v4 }
  0x9e   : > { %710 = vmatmul.f32.gmra.mxu1 %v6357_v48 }
  0x9f   : > { %482 = vmatmul.f32.gmra.mxu0 %v6412_v47 }
  0xa0   : > { %1073 = vmatmul.f32.gmra.mxu3 %v6395_v1  ;;  %879 = vmatmul.f32.gmra.mxu2 %v6387_v39  ;;  %v6452_v1 = vand.u32 4294901760, %v496_v9  ;;  %v6455_v39 = vand.u32 4294901760, %v6447_v31  ;;  %v313_v9 = vsel %vm257_vm0, %v243_v40, 0 }
  0xa1   : > { %v6477_v24 = vand.u32 4294901760, %v313_v9 }
  0xa2   : > { %8661 = vst [vmem:[#allocation71_spill] sm:$0xff] %v6452_v1  ;;  %v504_v50 = vsub.f32 %v6447_v31, %v6455_v39 }
  0xa3   : > { %8662 = vst [vmem:[#allocation72_spill] sm:$0xff] %v6455_v39  ;;  %v6487_v20 = vsub.f32 %v313_v9, %v6477_v24  ;;  %v245_v9 = vld [vmem:[%s8221_s1 + $0xa0] sm:$0xff] }
  0xa4   : > { %8667 = vst [vmem:[#allocation77_spill] sm:$0xff] %v6477_v24 }
  0xa5   : > { %8668 = vst [vmem:[#allocation78_spill] sm:$0xff] %v6487_v20  ;;  %v6495_v19 = vand.u32 4294901760, %v6487_v20 }
  0xa6   : > { %714 = vmatmul.f32.gmra.mxu1 %v6377_v15 }
  0xa7   : > { %490 = vmatmul.f32.gmra.mxu0 %v6432_v11  ;;  %8670 = vst [vmem:[#allocation80_spill] sm:$0xff] %v6495_v19 }
  0xa8   : > { %1079 = vmatmul.f32.gmra.mxu3 %v6415_v38  ;;  %884 = vmatmul.f32.gmra.mxu2 %v6407_v27  ;;  %v6472_v38 = vand.u32 4294901760, %v504_v50  ;;  %v6475_v27 = vand.u32 4294901760, %v6467_v4  ;;  %v316_v50 = vsel %vm257_vm0, %v244_v13, 0  ;;  %v520_v13 = vsub.f32 %v6487_v20, %v6495_v19 }
  0xa9   : > { %v6497_v6 = vand.u32 4294901760, %v316_v50 }
  0xaa   : > { %8665 = vst [vmem:[#allocation75_spill] sm:$0xff] %v6472_v38  ;;  %v512_v40 = vsub.f32 %v6467_v4, %v6475_v27 }
  0xab   : > { %8666 = vst [vmem:[#allocation76_spill] sm:$0xff] %v6475_v27 }
  0xae   : > { %718 = vmatmul.f32.gmra.mxu1 %v6397_v42 }
  0xaf   : > { %498 = vmatmul.f32.gmra.mxu0 %v6452_v1 }
  0xb0   : > { %1085 = vmatmul.f32.gmra.mxu3 %v6435_v2  ;;  %889 = vmatmul.f32.gmra.mxu2 %v6427_v51  ;;  %v6492_v51 = vand.u32 4294901760, %v512_v40  ;;  %v6507_v40 = vsub.f32 %v316_v50, %v6497_v6 }
  0xb2   : > { %8669 = vst [vmem:[#allocation79_spill] sm:$0xff] %v6492_v51 }
  0xb3   : > { %v379_v28 = vpop.f32.mrf.mxu0  ;;  %8671 = vst [vmem:[#allocation81_spill] sm:$0xff] %v6507_v40 }
  0xb6   : > { %722 = vmatmul.f32.gmra.mxu1 %v6417_v59 }
  0xb7   : > { %506 = vmatmul.f32.gmra.mxu0 %v6472_v38 }
  0xb8   : > { %1091 = vmatmul.f32.gmra.mxu3 %v6455_v39  ;;  %894 = vmatmul.f32.gmra.mxu2 %v6447_v31 }
  0xba   : > { %v996_v2 = vpop.f32.mrf.mxu3 }
  0xbb   : > { %v663_v63 = vpop.f32.mrf.mxu1  ;;  %v815_v56 = vpop.f32.mrf.mxu2 }
  0xbc   : > { %v387_v10 = vpop.f32.mrf.mxu0  ;;  %v664_v3 = vadd.f32 %v663_v63, %v379_v28  ;;  %v319_v63 = vsel %vm257_vm0, %v245_v9, 0 }
  0xbd   : > { %v6519_v60 = vand.u32 4294901760, %v319_v63 }
  0xbe   : > { %v816_v39 = vadd.f32 %v815_v56, %v664_v3  ;;  %726 = vmatmul.f32.gmra.mxu1 %v6437_v45  ;;  %v6514_v56 = vand.u32 4294901760, %v520_v13  ;;  %v6517_v3 = vand.u32 4294901760, %v6507_v40 }
  0xbf   : > { %514 = vmatmul.f32.gmra.mxu0 %v6492_v51  ;;  %8674 = vst [vmem:[#allocation84_spill] sm:$0xff] %v6519_v60  ;;  %v6529_v13 = vsub.f32 %v319_v63, %v6519_v60 }
  0xc0   : > { %1097 = vmatmul.f32.gmra.mxu3 %v6475_v27  ;;  %v6511_v28 = vadd.f32 %v996_v2, %v816_v39  ;;  %899 = vmatmul.f32.gmra.mxu2 %v6467_v4  ;;  %8672 = vst [vmem:[#allocation82_spill] sm:$0xff] %v6514_v56  ;;  %v246_v2 = vld [vmem:[%s8221_s1 + $0xa8] sm:$0xff]  ;;  %v528_v9 = vsub.f32 %v6507_v40, %v6517_v3 }
  0xc1   : > { %8673 = vst [vmem:[#allocation83_spill] sm:$0xff] %v6517_v3  ;;  %v214_v27 = vld [vmem:[%s6104_s17 + $0x8] sm:$0xff]  ;;  %v6540_v23 = vand.u32 4294901760, %v6529_v13 }
  0xc2   : > { %8675 = vst [vmem:[#allocation85_spill] sm:$0xff] %v6529_v13  ;;  %v6537_v4 = vand.u32 4294901760, %v528_v9 }
  0xc3   : > { %v1002_v31 = vpop.f32.mrf.mxu3  ;;  %v667_v50 = vpop.f32.mrf.mxu1  ;;  %8678 = vst [vmem:[#allocation88_spill] sm:$0xff] %v6540_v23 }
  0xc4   : > { %v395_v36 = vpop.f32.mrf.mxu0  ;;  %v668_v49 = vadd.f32 %v667_v50, %v387_v10  ;;  %v820_v29 = vpop.f32.mrf.mxu2  ;;  %v322_v10 = vsel %vm257_vm0, %v246_v2, 0  ;;  %8677 = vst [vmem:[#allocation87_spill] sm:$0xff] %v6537_v4 }
  0xc5   : > { %v6542_v22 = vand.u32 4294901760, %v322_v10 }
  0xc6   : > { %v821_v39 = vadd.f32 %v820_v29, %v668_v49  ;;  %730 = vmatmul.f32.gmra.mxu1 %v6457_v33  ;;  %v1504_v29 = vand.u32 4294901760, %v214_v27 }
  0xc7   : > { %522 = vmatmul.f32.gmra.mxu0 %v6514_v56  ;;  %8679 = vst [vmem:[#allocation89_spill] sm:$0xff] %v6542_v22 }
  0xc8   : > { %1103 = vmatmul.f32.gmra.mxu3 %v6495_v19  ;;  %v6533_v50 = vadd.f32 %v1002_v31, %v821_v39  ;;  %904 = vmatmul.f32.gmra.mxu2 %v6487_v20  ;;  %v1789_v19 = vsub.f32 %v214_v27, %v1504_v29  ;;  %v247_v39 = vld [vmem:[%s8221_s1 + $0xb0] sm:$0xff]  ;;  %v8680_v20 = vand.u32 4294901760, %v6128_v35  ;;  %v536_v27 = vsub.f32 %v6529_v13, %v6540_v23 }
  0xc9   : > { %1505 = vmatpush.msrb.mxu2 %v1504_v29  ;;  %2124 = vmatpush.msra.mxu1 %v1504_v29  ;;  %v8682_v35 = vand.u32 4294901760, %v6304_v54 }
  0xca   : > { %8676 = vst [vmem:[#allocation86_spill] sm:$0xff] %v6533_v50  ;;  %v1790_v9 = vand.u32 4294901760, %v1789_v19  ;;  %1944 = vmatpush.msra.mxu0 %v1789_v19 }
  0xcb   : > { %v1008_v49 = vpop.f32.mrf.mxu3  ;;  %v671_v56 = vpop.f32.mrf.mxu1  ;;  %2334 = vmatpush.msra.mxu2 %v8680_v20 }
  0xcc   : > { %v403_v63 = vpop.f32.mrf.mxu0  ;;  %v672_v2 = vadd.f32 %v671_v56, %v395_v36  ;;  %v825_v31 = vpop.f32.mrf.mxu2  ;;  %v6554_v36 = vsub.f32 %v322_v10, %v6542_v22  ;;  %v325_v56 = vsel %vm257_vm0, %v247_v39, 0  ;;  %v1791_v51 = vsub.f32 %v1789_v19, %v1790_v9 }
  0xcd   : > { %2338 = vmatpush.msra.mxu2 %v8682_v35 }
  0xce   : > { %v826_v50 = vadd.f32 %v825_v31, %v672_v2  ;;  %734 = vmatmul.f32.gmra.mxu1 %v6477_v24  ;;  %8681 = vst [vmem:[#allocation90_spill] sm:$0xff] %v6554_v36  ;;  %v1792_v2 = vand.u32 4294901760, %v1791_v51  ;;  %v6566_v10 = vand.u32 4294901760, %v6554_v36  ;;  %v6568_v24 = vand.u32 4294901760, %v325_v56 }
  0xcf   : > { %530 = vmatmul.f32.gmra.mxu0 %v6537_v4  ;;  %2342 = vmatpush.msra.mxu2 %v1790_v9  ;;  %v6563_v4 = vand.u32 4294901760, %v536_v27 }
  0xd0   : > { %1109 = vmatmul.f32.gmra.mxu3 %v6517_v3  ;;  %v6560_v20 = vadd.f32 %v1008_v49, %v826_v50  ;;  %909 = vmatmul.f32.gmra.mxu2 %v6507_v40  ;;  %8684 = vst [vmem:[#allocation92_spill] sm:$0xff] %v6566_v10  ;;  %v248_v50 = vld [vmem:[%s8221_s1 + $0xb8] sm:$0xff]  ;;  %v544_v49 = vsub.f32 %v6554_v36, %v6566_v10 }
  0xd1   : > { %8683 = vst [vmem:[#allocation91_spill] sm:$0xff] %v6563_v4  ;;  %1793 = vmatpush.msrb.mxu3 %v1792_v2  ;;  %v6579_v9 = vsub.f32 %v325_v56, %v6568_v24 }
  0xd2   : > { %8685 = vst [vmem:[#allocation93_spill] sm:$0xff] %v6568_v24  ;;  %v6587_v35 = vand.u32 4294901760, %v544_v49 }
  0xd3   : > { %v1014_v31 = vpop.f32.mrf.mxu3  ;;  %v675_v39 = vpop.f32.mrf.mxu1  ;;  %2486 = vmatpush.msra.mxu3 %v6122_v30  ;;  %8686 = vst [vmem:[#allocation94_spill] sm:$0xff] %v6579_v9  ;;  %v6590_v2 = vand.u32 4294901760, %v6579_v9 }
  0xd4   : > { %v411_v3 = vpop.f32.mrf.mxu0  ;;  %v676_v19 = vadd.f32 %v675_v39, %v403_v63  ;;  %v830_v54 = vpop.f32.mrf.mxu2  ;;  %v328_v63 = vsel %vm257_vm0, %v248_v50, 0  ;;  %8687 = vst [vmem:[#allocation95_spill] sm:$0xff] %v6587_v35 }
  0xd5   : > { %2488 = vmatpush.msra.mxu3 %v6299_v53  ;;  %8688 = vst [vmem:[#allocation96_spill] sm:$0xff] %v6590_v2  ;;  %v6592_v39 = vand.u32 4294901760, %v328_v63  ;;  %v552_v53 = vsub.f32 %v6579_v9, %v6590_v2 }
  0xd6   : > { %v831_v51 = vadd.f32 %v830_v54, %v676_v19  ;;  %738 = vmatmul.f32.gmra.mxu1 %v6497_v6 }
  0xd7   : > { %538 = vmatmul.f32.gmra.mxu0 %v6563_v4  ;;  %8689 = vst [vmem:[#allocation97_spill] sm:$0xff] %v6592_v39  ;;  %2490 = vmatpush.msra.mxu3 %v1504_v29 }
  0xd8   : > { %1115 = vmatmul.f32.gmra.mxu3 %v6540_v23  ;;  %v6583_v27 = vadd.f32 %v1014_v31, %v831_v51  ;;  %914 = vmatmul.f32.gmra.mxu2 %v6529_v13  ;;  %v249_v31 = vld [vmem:[%s8221_s1 + $0xc0] sm:$0xff]  ;;  %v6602_v51 = vsub.f32 %v328_v63, %v6592_v39 }
  0xda   : > { %8690 = vst [vmem:[#allocation98_spill] sm:$0xff] %v6602_v51 }
  0xdb   : > { %v1020_v30 = vpop.f32.mrf.mxu3  ;;  %v679_v19 = vpop.f32.mrf.mxu1 }
  0xdc   : > { %v419_v56 = vpop.f32.mrf.mxu0  ;;  %v680_v54 = vadd.f32 %v679_v19, %v411_v3  ;;  %v835_v23 = vpop.f32.mrf.mxu2  ;;  %v331_v3 = vsel %vm257_vm0, %v249_v31, 0  ;;  %v6612_v19 = vand.u32 4294901760, %v6602_v51  ;;  %v250_v31 = vld [vmem:[%s8221_s1 + $0xc8] sm:$0xff] }
  0xde   : > { %v836_v50 = vadd.f32 %v835_v23, %v680_v54  ;;  %742 = vmatmul.f32.gmra.mxu1 %v6519_v60  ;;  %v6609_v23 = vand.u32 4294901760, %v552_v53  ;;  %8693 = vst [vmem:[#allocation101_spill] sm:$0xff] %v6612_v19  ;;  %v6614_v54 = vand.u32 4294901760, %v331_v3 }
  0xdf   : > { %546 = vmatmul.f32.gmra.mxu0 %v6587_v35 }
  0xe0   : > { %1121 = vmatmul.f32.gmra.mxu3 %v6566_v10  ;;  %v6606_v29 = vadd.f32 %v1020_v30, %v836_v50  ;;  %919 = vmatmul.f32.gmra.mxu2 %v6554_v36  ;;  %8692 = vst [vmem:[#allocation100_spill] sm:$0xff] %v6609_v23  ;;  %v560_v50 = vsub.f32 %v6602_v51, %v6612_v19 }
  0xe1   : > { %8694 = vst [vmem:[#allocation102_spill] sm:$0xff] %v6614_v54  ;;  %v6624_v53 = vsub.f32 %v331_v3, %v6614_v54 }
  0xe2   : > { %8691 = vst [vmem:[#allocation99_spill] sm:$0xff] %v6606_v29 }
  0xe3   : > { %v1026_v49 = vpop.f32.mrf.mxu3  ;;  %v683_v40 = vpop.f32.mrf.mxu1  ;;  %8695 = vst [vmem:[#allocation103_spill] sm:$0xff] %v6624_v53 }
  0xe4   : > { %v427_v13 = vpop.f32.mrf.mxu0  ;;  %v684_v63 = vadd.f32 %v683_v40, %v419_v56  ;;  %v840_v35 = vpop.f32.mrf.mxu2  ;;  %v334_v40 = vsel %vm257_vm0, %v250_v31, 0  ;;  %v251_v31 = vld [vmem:[%s8221_s1 + $0xd0] sm:$0xff] }
  0xe5   : > { %v6636_v36 = vand.u32 4294901760, %v334_v40 }
  0xe6   : > { %v841_v30 = vadd.f32 %v840_v35, %v684_v63  ;;  %746 = vmatmul.f32.gmra.mxu1 %v6542_v22  ;;  %v6631_v35 = vand.u32 4294901760, %v560_v50  ;;  %v6634_v63 = vand.u32 4294901760, %v6624_v53 }
  0xe7   : > { %554 = vmatmul.f32.gmra.mxu0 %v6609_v23  ;;  %8699 = vst [vmem:[#allocation107_spill] sm:$0xff] %v6636_v36  ;;  %v6646_v50 = vsub.f32 %v334_v40, %v6636_v36 }
  0xe8   : > { %1127 = vmatmul.f32.gmra.mxu3 %v6590_v2  ;;  %v6628_v56 = vadd.f32 %v1026_v49, %v841_v30  ;;  %924 = vmatmul.f32.gmra.mxu2 %v6579_v9  ;;  %8697 = vst [vmem:[#allocation105_spill] sm:$0xff] %v6631_v35  ;;  %v568_v30 = vsub.f32 %v6624_v53, %v6634_v63 }
  0xe9   : > { %8698 = vst [vmem:[#allocation106_spill] sm:$0xff] %v6634_v63 }
  0xea   : > { %8696 = vst [vmem:[#allocation104_spill] sm:$0xff] %v6628_v56 }
  0xeb   : > { %v1032_v10 = vpop.f32.mrf.mxu3  ;;  %v687_v22 = vpop.f32.mrf.mxu1  ;;  %8700 = vst [vmem:[#allocation108_spill] sm:$0xff] %v6646_v50 }
  0xec   : > { %v435_v23 = vpop.f32.mrf.mxu0  ;;  %v688_v3 = vadd.f32 %v687_v22, %v427_v13  ;;  %v845_v29 = vpop.f32.mrf.mxu2  ;;  %v337_v22 = vsel %vm257_vm0, %v251_v31, 0  ;;  %v252_v31 = vld [vmem:[%s8221_s1 + $0xd8] sm:$0xff] }
  0xed   : > { %v6658_v9 = vand.u32 4294901760, %v337_v22 }
  0xee   : > { %v846_v49 = vadd.f32 %v845_v29, %v688_v3  ;;  %750 = vmatmul.f32.gmra.mxu1 %v6568_v24  ;;  %v6653_v29 = vand.u32 4294901760, %v568_v30  ;;  %v6656_v3 = vand.u32 4294901760, %v6646_v50 }
  0xef   : > { %562 = vmatmul.f32.gmra.mxu0 %v6631_v35  ;;  %8704 = vst [vmem:[#allocation112_spill] sm:$0xff] %v6658_v9  ;;  %v6668_v30 = vsub.f32 %v337_v22, %v6658_v9 }
  0xf0   : > { %1133 = vmatmul.f32.gmra.mxu3 %v6612_v19  ;;  %v6650_v13 = vadd.f32 %v1032_v10, %v846_v49  ;;  %929 = vmatmul.f32.gmra.mxu2 %v6602_v51  ;;  %8702 = vst [vmem:[#allocation110_spill] sm:$0xff] %v6653_v29  ;;  %v576_v49 = vsub.f32 %v6646_v50, %v6656_v3 }
  0xf1   : > { %8703 = vst [vmem:[#allocation111_spill] sm:$0xff] %v6656_v3 }
  0xf2   : > { %8701 = vst [vmem:[#allocation109_spill] sm:$0xff] %v6650_v13 }
  0xf3   : > { %v1038_v2 = vpop.f32.mrf.mxu3  ;;  %v691_v24 = vpop.f32.mrf.mxu1  ;;  %8705 = vst [vmem:[#allocation113_spill] sm:$0xff] %v6668_v30 }
  0xf4   : > { %v443_v35 = vpop.f32.mrf.mxu0  ;;  %v692_v40 = vadd.f32 %v691_v24, %v435_v23  ;;  %v850_v56 = vpop.f32.mrf.mxu2  ;;  %v340_v24 = vsel %vm257_vm0, %v252_v31, 0  ;;  %v253_v31 = vld [vmem:[%s8221_s1 + $0xe0] sm:$0xff] }
  0xf5   : > { %v6680_v51 = vand.u32 4294901760, %v340_v24 }
  0xf6   : > { %v851_v10 = vadd.f32 %v850_v56, %v692_v40  ;;  %754 = vmatmul.f32.gmra.mxu1 %v6592_v39  ;;  %v6675_v56 = vand.u32 4294901760, %v576_v49  ;;  %v6678_v40 = vand.u32 4294901760, %v6668_v30 }
  0xf7   : > { %570 = vmatmul.f32.gmra.mxu0 %v6653_v29  ;;  %8709 = vst [vmem:[#allocation117_spill] sm:$0xff] %v6680_v51  ;;  %v6690_v49 = vsub.f32 %v340_v24, %v6680_v51 }
  0xf8   : > { %1139 = vmatmul.f32.gmra.mxu3 %v6634_v63  ;;  %v6672_v23 = vadd.f32 %v1038_v2, %v851_v10  ;;  %934 = vmatmul.f32.gmra.mxu2 %v6624_v53  ;;  %8707 = vst [vmem:[#allocation115_spill] sm:$0xff] %v6675_v56  ;;  %v584_v10 = vsub.f32 %v6668_v30, %v6678_v40 }
  0xf9   : > { %8708 = vst [vmem:[#allocation116_spill] sm:$0xff] %v6678_v40 }
  0xfa   : > { %8706 = vst [vmem:[#allocation114_spill] sm:$0xff] %v6672_v23 }
  0xfb   : > { %v1044_v19 = vpop.f32.mrf.mxu3  ;;  %v695_v39 = vpop.f32.mrf.mxu1  ;;  %8710 = vst [vmem:[#allocation118_spill] sm:$0xff] %v6690_v49 }
  0xfc   : > { %v451_v29 = vpop.f32.mrf.mxu0  ;;  %v696_v22 = vadd.f32 %v695_v39, %v443_v35  ;;  %v855_v13 = vpop.f32.mrf.mxu2  ;;  %v343_v39 = vsel %vm257_vm0, %v253_v31, 0  ;;  %v254_v31 = vld [vmem:[%s8221_s1 + $0xe8] sm:$0xff] }
  0xfd   : > { %v6702_v53 = vand.u32 4294901760, %v343_v39 }
  0xfe   : > { %v856_v2 = vadd.f32 %v855_v13, %v696_v22  ;;  %758 = vmatmul.f32.gmra.mxu1 %v6614_v54  ;;  %v6697_v13 = vand.u32 4294901760, %v584_v10  ;;  %v6700_v22 = vand.u32 4294901760, %v6690_v49 }
  0xff   : > { %578 = vmatmul.f32.gmra.mxu0 %v6675_v56  ;;  %8714 = vst [vmem:[#allocation122_spill] sm:$0xff] %v6702_v53  ;;  %v6712_v10 = vsub.f32 %v343_v39, %v6702_v53 }
 0x100   : > { %1145 = vmatmul.f32.gmra.mxu3 %v6656_v3  ;;  %v6694_v35 = vadd.f32 %v1044_v19, %v856_v2  ;;  %939 = vmatmul.f32.gmra.mxu2 %v6646_v50  ;;  %8712 = vst [vmem:[#allocation120_spill] sm:$0xff] %v6697_v13  ;;  %v592_v2 = vsub.f32 %v6690_v49, %v6700_v22 }
 0x101   : > { %8713 = vst [vmem:[#allocation121_spill] sm:$0xff] %v6700_v22 }
 0x102   : > { %8711 = vst [vmem:[#allocation119_spill] sm:$0xff] %v6694_v35 }
 0x103   : > { %v1050_v63 = vpop.f32.mrf.mxu3  ;;  %v699_v54 = vpop.f32.mrf.mxu1  ;;  %8715 = vst [vmem:[#allocation123_spill] sm:$0xff] %v6712_v10 }
 0x104   : > { %v459_v56 = vpop.f32.mrf.mxu0  ;;  %v700_v24 = vadd.f32 %v699_v54, %v451_v29  ;;  %v860_v23 = vpop.f32.mrf.mxu2  ;;  %v346_v54 = vsel %vm257_vm0, %v254_v31, 0  ;;  %v255_v31 = vld [vmem:[%s8221_s1 + $0xf0] sm:$0xff] }
 0x105   : > { %v6724_v50 = vand.u32 4294901760, %v346_v54 }
 0x106   : > { %v861_v19 = vadd.f32 %v860_v23, %v700_v24  ;;  %762 = vmatmul.f32.gmra.mxu1 %v6636_v36  ;;  %v6719_v23 = vand.u32 4294901760, %v592_v2  ;;  %v6722_v24 = vand.u32 4294901760, %v6712_v10 }
 0x107   : > { %586 = vmatmul.f32.gmra.mxu0 %v6697_v13  ;;  %8719 = vst [vmem:[#allocation127_spill] sm:$0xff] %v6724_v50  ;;  %v6734_v2 = vsub.f32 %v346_v54, %v6724_v50 }
 0x108   : > { %1151 = vmatmul.f32.gmra.mxu3 %v6678_v40  ;;  %v6716_v29 = vadd.f32 %v1050_v63, %v861_v19  ;;  %944 = vmatmul.f32.gmra.mxu2 %v6668_v30  ;;  %8717 = vst [vmem:[#allocation125_spill] sm:$0xff] %v6719_v23  ;;  %v600_v19 = vsub.f32 %v6712_v10, %v6722_v24 }
 0x109   : > { %8718 = vst [vmem:[#allocation126_spill] sm:$0xff] %v6722_v24 }
 0x10a   : > { %8716 = vst [vmem:[#allocation124_spill] sm:$0xff] %v6716_v29 }
 0x10b   : > { %v1056_v3 = vpop.f32.mrf.mxu3  ;;  %v703_v36 = vpop.f32.mrf.mxu1  ;;  %8720 = vst [vmem:[#allocation128_spill] sm:$0xff] %v6734_v2 }
 0x10c   : > { %v467_v13 = vpop.f32.mrf.mxu0  ;;  %v704_v39 = vadd.f32 %v703_v36, %v459_v56  ;;  %v865_v35 = vpop.f32.mrf.mxu2  ;;  %v349_v36 = vsel %vm257_vm0, %v255_v31, 0  ;;  %v256_v31 = vld [vmem:[%s8221_s1 + $0xf8] sm:$0xff] }
 0x10d   : > { %v6746_v30 = vand.u32 4294901760, %v349_v36 }
 0x10e   : > { %v866_v63 = vadd.f32 %v865_v35, %v704_v39  ;;  %766 = vmatmul.f32.gmra.mxu1 %v6658_v9  ;;  %v6741_v35 = vand.u32 4294901760, %v600_v19  ;;  %v6744_v39 = vand.u32 4294901760, %v6734_v2 }
 0x10f   : > { %594 = vmatmul.f32.gmra.mxu0 %v6719_v23  ;;  %8724 = vst [vmem:[#allocation132_spill] sm:$0xff] %v6746_v30  ;;  %v6756_v19 = vsub.f32 %v349_v36, %v6746_v30 }
 0x110   : > { %1157 = vmatmul.f32.gmra.mxu3 %v6700_v22  ;;  %v6738_v56 = vadd.f32 %v1056_v3, %v866_v63  ;;  %949 = vmatmul.f32.gmra.mxu2 %v6690_v49  ;;  %8722 = vst [vmem:[#allocation130_spill] sm:$0xff] %v6741_v35  ;;  %v608_v63 = vsub.f32 %v6734_v2, %v6744_v39 }
 0x111   : > { %8723 = vst [vmem:[#allocation131_spill] sm:$0xff] %v6744_v39 }
 0x112   : > { %8721 = vst [vmem:[#allocation129_spill] sm:$0xff] %v6738_v56 }
 0x113   : > { %v1062_v40 = vpop.f32.mrf.mxu3  ;;  %v707_v9 = vpop.f32.mrf.mxu1  ;;  %8725 = vst [vmem:[#allocation133_spill] sm:$0xff] %v6756_v19 }
 0x114   : > { %v475_v23 = vpop.f32.mrf.mxu0  ;;  %v708_v54 = vadd.f32 %v707_v9, %v467_v13  ;;  %v870_v29 = vpop.f32.mrf.mxu2  ;;  %v352_v9 = vsel %vm257_vm0, %v256_v31, 0 }
 0x115   : > { %v6768_v49 = vand.u32 4294901760, %v352_v9 }
 0x116   : > { %v871_v3 = vadd.f32 %v870_v29, %v708_v54  ;;  %770 = vmatmul.f32.gmra.mxu1 %v6680_v51  ;;  %v6763_v29 = vand.u32 4294901760, %v608_v63  ;;  %v6766_v54 = vand.u32 4294901760, %v6756_v19 }
 0x117   : > { %602 = vmatmul.f32.gmra.mxu0 %v6741_v35  ;;  %8728 = vst [vmem:[#allocation136_spill] sm:$0xff] %v6768_v49  ;;  %v6775_v31 = vsub.f32 %v352_v9, %v6768_v49 }
 0x118   : > { %1163 = vmatmul.f32.gmra.mxu3 %v6722_v24  ;;  %v6760_v13 = vadd.f32 %v1062_v40, %v871_v3  ;;  %954 = vmatmul.f32.gmra.mxu2 %v6712_v10  ;;  %8726 = vst [vmem:[#allocation134_spill] sm:$0xff] %v6763_v29  ;;  %v616_v40 = vsub.f32 %v6756_v19, %v6766_v54 }
 0x119   : > { %8727 = vst [vmem:[#allocation135_spill] sm:$0xff] %v6766_v54 }
 0x11a   : > { %8729 = vst [vmem:[#allocation137_spill] sm:$0xff] %v6775_v31 }
 0x11b   : > { %v1068_v22 = vpop.f32.mrf.mxu3  ;;  %v711_v51 = vpop.f32.mrf.mxu1 }
 0x11c   : > { %v483_v35 = vpop.f32.mrf.mxu0  ;;  %v712_v36 = vadd.f32 %v711_v51, %v475_v23  ;;  %v875_v56 = vpop.f32.mrf.mxu2  ;;  %v6781_v51 = vand.u32 4294901760, %v616_v40  ;;  %v6784_v23 = vand.u32 4294901760, %v6775_v31 }
 0x11e   : > { %v876_v4 = vadd.f32 %v875_v56, %v712_v36  ;;  %774 = vmatmul.f32.gmra.mxu1 %v6702_v53  ;;  %8730 = vst [vmem:[#allocation138_spill] sm:$0xff] %v6781_v51 }
 0x11f   : > { %610 = vmatmul.f32.gmra.mxu0 %v6763_v29  ;;  %8731 = vst [vmem:[#allocation139_spill] sm:$0xff] %v6784_v23 }
 0x120   : > { %1169 = vmatmul.f32.gmra.mxu3 %v6744_v39  ;;  %v6778_v3 = vadd.f32 %v1068_v22, %v876_v4  ;;  %959 = vmatmul.f32.gmra.mxu2 %v6734_v2  ;;  %v624_v4 = vsub.f32 %v6775_v31, %v6784_v23 }
 0x122   : > { %v6794_v40 = vand.u32 4294901760, %v624_v4 }
 0x123   : > { %v1074_v63 = vpop.f32.mrf.mxu3  ;;  %v715_v36 = vpop.f32.mrf.mxu1 }
 0x124   : > { %v491_v56 = vpop.f32.mrf.mxu0  ;;  %v716_v24 = vadd.f32 %v715_v36, %v483_v35  ;;  %v880_v10 = vpop.f32.mrf.mxu2  ;;  %8732 = vst [vmem:[#allocation140_spill] sm:$0xff] %v6794_v40 }
 0x126   : > { %v881_v29 = vadd.f32 %v880_v10, %v716_v24  ;;  %778 = vmatmul.f32.gmra.mxu1 %v6724_v50 }
 0x127   : > { %618 = vmatmul.f32.gmra.mxu0 %v6781_v51 }
 0x128   : > { %1175 = vmatmul.f32.gmra.mxu3 %v6766_v54  ;;  %v6791_v22 = vadd.f32 %v1074_v63, %v881_v29  ;;  %964 = vmatmul.f32.gmra.mxu2 %v6756_v19  ;;  %v5014_v29 = vld [vmem:[%s8222_s2] sm:$0xff]  ;;  %v6008_v63 = vmov 0  }
 0x129   : > { %5680 = vset.pattern.permute.xlu0 %v6008_v63  ;;  %5681 = vset.pattern.permute.xlu1 %v6008_v63 }
 0x12a   : > { %5048 = vperm.xlu0 %5680, %v5014_v29   ;;  %5682 = vset.pattern.permute.xlu2 %v6008_v63 }
 0x12b   : > { %v1080_v9 = vpop.f32.mrf.mxu3  ;;  %v719_v35 = vpop.f32.mrf.mxu1 }
 0x12c   : > { %v499_v39 = vpop.f32.mrf.mxu0  ;;  %v720_v36 = vadd.f32 %v719_v35, %v491_v56  ;;  %v885_v10 = vpop.f32.mrf.mxu2 }
 0x12e   : > { %v886_v24 = vadd.f32 %v885_v10, %v720_v36  ;;  %782 = vmatmul.f32.gmra.mxu1 %v6746_v30 }
 0x12f   : > { %626 = vmatmul.f32.gmra.mxu0 %v6794_v40 }
 0x130   : > { %1181 = vmatmul.f32.gmra.mxu3 %v6784_v23  ;;  %v6799_v2 = vadd.f32 %v1080_v9, %v886_v24  ;;  %969 = vmatmul.f32.gmra.mxu2 %v6775_v31  ;;  %v5015_v24 = vld [vmem:[%s8222_s2 + $0x8] sm:$0xff] }
 0x132   : > { %5053 = vperm.xlu0 %5680, %v5015_v24  }
 0x133   : > { %v1086_v56 = vpop.f32.mrf.mxu3  ;;  %v723_v35 = vpop.f32.mrf.mxu1 }
 0x134   : > { %v507_v4 = vpop.f32.mrf.mxu0  ;;  %v724_v36 = vadd.f32 %v723_v35, %v499_v39  ;;  %v890_v10 = vpop.f32.mrf.mxu2 }
 0x136   : > { %v891_v54 = vadd.f32 %v890_v10, %v724_v36  ;;  %786 = vmatmul.f32.gmra.mxu1 %v6768_v49 }
 0x137   : > { %1211 = vmatmul.f32.vlgmr.msrb.gmra.mxu0 %v6097_v16 }
 0x138   : > { %1795 = vmatmul.f32.vlgmr.msrb.gmra.mxu3 %v6097_v16  ;;  %v6808_v9 = vadd.f32 %v1086_v56, %v891_v54  ;;  %1511 = vmatmul.f32.vlgmr.msrb.gmra.mxu2 %v6135_v41  ;;  %v5016_v56 = vld [vmem:[%s8222_s2 + $0x10] sm:$0xff] }
 0x139   : > { %5058 = vperm.xlu1 %5681, %v5016_v56  }
 0x13b   : > { %v1092_v29 = vpop.f32.mrf.mxu3  ;;  %v727_v39 = vpop.f32.mrf.mxu1 }
 0x13c   : > { %v515_v63 = vpop.f32.mrf.mxu0  ;;  %v728_v35 = vadd.f32 %v727_v39, %v507_v4  ;;  %v895_v36 = vpop.f32.mrf.mxu2 }
 0x13e   : > { %v896_v10 = vadd.f32 %v895_v36, %v728_v35  ;;  %1359 = vmatmul.f32.vlgmr.msrb.gmra.mxu1 %v6097_v16 }
 0x13f   : > { %1215 = vmatmul.f32.gmra.mxu0 %v6099_v17 }
 0x140   : > { %1799 = vmatmul.f32.gmra.mxu3 %v6099_v17  ;;  %v6817_v54 = vadd.f32 %v1092_v29, %v896_v10  ;;  %1519 = vmatmul.f32.gmra.mxu2 %v6156_v55  ;;  %v5017_v10 = vld [vmem:[%s8222_s2 + $0x18] sm:$0xff] }
 0x141   : > { %5063 = vperm.xlu1 %5681, %v5017_v10  }
 0x143   : > { %v1098_v24 = vpop.f32.mrf.mxu3  ;;  %v731_v4 = vpop.f32.mrf.mxu1 }
 0x144   : > { %v523_v41 = vpop.f32.mrf.mxu0  ;;  %v732_v39 = vadd.f32 %v731_v4, %v515_v63  ;;  %v900_v35 = vpop.f32.mrf.mxu2 }
 0x146   : > { %v901_v36 = vadd.f32 %v900_v35, %v732_v39  ;;  %1363 = vmatmul.f32.gmra.mxu1 %v6099_v17 }
 0x147   : > { %1219 = vmatmul.f32.gmra.mxu0 %v6133_v37 }
 0x148   : > { %1803 = vmatmul.f32.gmra.mxu3 %v6133_v37  ;;  %v6826_v29 = vadd.f32 %v1098_v24, %v901_v36  ;;  %1527 = vmatmul.f32.gmra.mxu2 %v6177_v62 }
 0x14b   : > { %v1104_v56 = vpop.f32.mrf.mxu3  ;;  %v735_v63 = vpop.f32.mrf.mxu1 }
 0x14c   : > { %v531_v55 = vpop.f32.mrf.mxu0  ;;  %v736_v4 = vadd.f32 %v735_v63, %v523_v41  ;;  %v905_v39 = vpop.f32.mrf.mxu2 }
 0x14e   : > { %v906_v35 = vadd.f32 %v905_v39, %v736_v4  ;;  %1367 = vmatmul.f32.gmra.mxu1 %v6133_v37 }
 0x14f   : > { %1223 = vmatmul.f32.gmra.mxu0 %v6161_v57 }
 0x150   : > { %1807 = vmatmul.f32.gmra.mxu3 %v6161_v57  ;;  %v6835_v24 = vadd.f32 %v1104_v56, %v906_v35  ;;  %1535 = vmatmul.f32.gmra.mxu2 %v6199_v5 }
 0x153   : > { %v1110_v36 = vpop.f32.mrf.mxu3  ;;  %v739_v23 = vpop.f32.mrf.mxu1 }
 0x154   : > { %v539_v62 = vpop.f32.mrf.mxu0  ;;  %v740_v10 = vadd.f32 %v739_v23, %v531_v55  ;;  %v910_v31 = vpop.f32.mrf.mxu2 }
 0x156   : > { %v911_v19 = vadd.f32 %v910_v31, %v740_v10  ;;  %1371 = vmatmul.f32.gmra.mxu1 %v6161_v57 }
 0x157   : > { %1227 = vmatmul.f32.gmra.mxu0 %v6182_v0 }
 0x158   : > { %1811 = vmatmul.f32.gmra.mxu3 %v6182_v0  ;;  %v6841_v41 = vadd.f32 %v1110_v36, %v911_v19  ;;  %1543 = vmatmul.f32.gmra.mxu2 %v6219_v12  ;;  %v5020_v19 = vld [vmem:[%s8222_s2 + $0x30] sm:$0xff] }
 0x159   : > { %5078 = vperm.xlu0 %5680, %v5020_v19  }
 0x15b   : > { %v1116_v56 = vpop.f32.mrf.mxu3  ;;  %v743_v4 = vpop.f32.mrf.mxu1 }
 0x15c   : > { %v547_v63 = vpop.f32.mrf.mxu0  ;;  %v744_v39 = vadd.f32 %v743_v4, %v539_v62  ;;  %v915_v35 = vpop.f32.mrf.mxu2 }
 0x15e   : > { %v916_v5 = vadd.f32 %v915_v35, %v744_v39  ;;  %1375 = vmatmul.f32.gmra.mxu1 %v6182_v0 }
 0x15f   : > { %1231 = vmatmul.f32.gmra.mxu0 %v6204_v7 }
 0x160   : > { %1815 = vmatmul.f32.gmra.mxu3 %v6204_v7  ;;  %v6847_v55 = vadd.f32 %v1116_v56, %v916_v5  ;;  %1551 = vmatmul.f32.gmra.mxu2 %v6239_v21  ;;  %v5018_v56 = vld [vmem:[%s8222_s2 + $0x20] sm:$0xff] }
 0x161   : > { %5068 = vperm.xlu2 %5682, %v5018_v56  }
 0x163   : > { %v1122_v31 = vpop.f32.mrf.mxu3  ;;  %v747_v62 = vpop.f32.mrf.mxu1 }
 0x164   : > { %v555_v23 = vpop.f32.mrf.mxu0  ;;  %v748_v36 = vadd.f32 %v747_v62, %v547_v63  ;;  %v920_v10 = vpop.f32.mrf.mxu2  ;;  %v5021_v63 = vld [vmem:[%s8222_s2 + $0x38] sm:$0xff] }
 0x165   : > { %5083 = vperm.xlu1 %5681, %v5021_v63  }
 0x166   : > { %v921_v4 = vadd.f32 %v920_v10, %v748_v36  ;;  %1379 = vmatmul.f32.gmra.mxu1 %v6204_v7 }
 0x167   : > { %1235 = vmatmul.f32.gmra.mxu0 %v6224_v14 }
 0x168   : > { %1819 = vmatmul.f32.gmra.mxu3 %v6224_v14  ;;  %v6856_v5 = vadd.f32 %v1122_v31, %v921_v4  ;;  %1559 = vmatmul.f32.gmra.mxu2 %v6259_v32  ;;  %v5019_v4 = vld [vmem:[%s8222_s2 + $0x28] sm:$0xff]  ;;  %v5029_v32 = vld [vmem:[%s8222_s2 + $0x78] sm:$0xff] }
 0x169   : > { %5073 = vperm.xlu2 %5682, %v5019_v4  }
 0x16b   : > { %v1128_v39 = vpop.f32.mrf.mxu3  ;;  %v751_v19 = vpop.f32.mrf.mxu1 }
 0x16c   : > { %v563_v35 = vpop.f32.mrf.mxu0  ;;  %v752_v62 = vadd.f32 %v751_v19, %v555_v23  ;;  %v925_v36 = vpop.f32.mrf.mxu2 }
 0x16e   : > { %v926_v10 = vadd.f32 %v925_v36, %v752_v62  ;;  %1383 = vmatmul.f32.gmra.mxu1 %v6224_v14 }
 0x16f   : > { %1239 = vmatmul.f32.gmra.mxu0 %v6244_v25 }
 0x170   : > { %1823 = vmatmul.f32.gmra.mxu3 %v6244_v25  ;;  %v6868_v31 = vadd.f32 %v1128_v39, %v926_v10  ;;  %1567 = vmatmul.f32.gmra.mxu2 %v6279_v44  ;;  %v5023_v10 = vld [vmem:[%s8222_s2 + $0x48] sm:$0xff] }
 0x171   : > { %5093 = vperm.xlu0 %5680, %v5023_v10  }
 0x173   : > { %v1134_v56 = vpop.f32.mrf.mxu3  ;;  %v755_v23 = vpop.f32.mrf.mxu1 }
 0x174   : > { %v571_v63 = vpop.f32.mrf.mxu0  ;;  %v756_v19 = vadd.f32 %v755_v23, %v563_v35  ;;  %v930_v62 = vpop.f32.mrf.mxu2 }
 0x176   : > { %v931_v36 = vadd.f32 %v930_v62, %v756_v19  ;;  %1387 = vmatmul.f32.gmra.mxu1 %v6244_v25 }
 0x177   : > { %1243 = vmatmul.f32.gmra.mxu0 %v6264_v34 }
 0x178   : > { %1827 = vmatmul.f32.gmra.mxu3 %v6264_v34  ;;  %v6877_v39 = vadd.f32 %v1134_v56, %v931_v36  ;;  %1575 = vmatmul.f32.gmra.mxu2 %v6307_v58  ;;  %v5024_v36 = vld [vmem:[%s8222_s2 + $0x50] sm:$0xff] }
 0x179   : > { %5098 = vperm.xlu1 %5681, %v5024_v36  }
 0x17b   : > { %v1140_v4 = vpop.f32.mrf.mxu3  ;;  %v759_v35 = vpop.f32.mrf.mxu1 }
 0x17c   : > { %v579_v44 = vpop.f32.mrf.mxu0  ;;  %v760_v23 = vadd.f32 %v759_v35, %v571_v63  ;;  %v935_v19 = vpop.f32.mrf.mxu2 }
 0x17e   : > { %v936_v62 = vadd.f32 %v935_v19, %v760_v23  ;;  %1391 = vmatmul.f32.gmra.mxu1 %v6264_v34 }
 0x17f   : > { %1247 = vmatmul.f32.gmra.mxu0 %v6284_v46 }
 0x180   : > { %1831 = vmatmul.f32.gmra.mxu3 %v6284_v46  ;;  %v6886_v56 = vadd.f32 %v1140_v4, %v936_v62  ;;  %1583 = vmatmul.f32.gmra.mxu2 %v6332_v18  ;;  %v5022_v62 = vld [vmem:[%s8222_s2 + $0x40] sm:$0xff] }
 0x181   : > { %5088 = vperm.xlu2 %5682, %v5022_v62  }
 0x183   : > { %v1146_v10 = vpop.f32.mrf.mxu3  ;;  %v763_v63 = vpop.f32.mrf.mxu1 }
 0x184   : > { %v587_v58 = vpop.f32.mrf.mxu0  ;;  %v764_v35 = vadd.f32 %v763_v63, %v579_v44  ;;  %v940_v23 = vpop.f32.mrf.mxu2 }
 0x186   : > { %v941_v19 = vadd.f32 %v940_v23, %v764_v35  ;;  %1395 = vmatmul.f32.gmra.mxu1 %v6284_v46 }
 0x187   : > { %1251 = vmatmul.f32.gmra.mxu0 %v6312_v61 }
 0x188   : > { %1835 = vmatmul.f32.gmra.mxu3 %v6312_v61  ;;  %v6895_v4 = vadd.f32 %v1146_v10, %v941_v19  ;;  %1591 = vmatmul.f32.gmra.mxu2 %v6352_v43  ;;  %v5026_v19 = vld [vmem:[%s8222_s2 + $0x60] sm:$0xff] }
 0x189   : > { %5108 = vperm.xlu0 %5680, %v5026_v19  }
 0x18b   : > { %v1152_v36 = vpop.f32.mrf.mxu3  ;;  %v767_v44 = vpop.f32.mrf.mxu1 }
 0x18c   : > { %v595_v18 = vpop.f32.mrf.mxu0  ;;  %v768_v63 = vadd.f32 %v767_v44, %v587_v58  ;;  %v945_v35 = vpop.f32.mrf.mxu2 }
 0x18e   : > { %v946_v23 = vadd.f32 %v945_v35, %v768_v63  ;;  %1399 = vmatmul.f32.gmra.mxu1 %v6312_v61 }
 0x18f   : > { %1255 = vmatmul.f32.gmra.mxu0 %v6337_v26 }
 0x190   : > { %1839 = vmatmul.f32.gmra.mxu3 %v6337_v26  ;;  %v6904_v10 = vadd.f32 %v1152_v36, %v946_v23  ;;  %1599 = vmatmul.f32.gmra.mxu2 %v6372_v8  ;;  %v5027_v23 = vld [vmem:[%s8222_s2 + $0x68] sm:$0xff] }
 0x191   : > { %5113 = vperm.xlu1 %5681, %v5027_v23   ;;  %5123 = vperm.xlu0 %5680, %v5029_v32   ;;  %v5030_v32 = vld [vmem:[%s8222_s2 + $0x80] sm:$0xff] }
 0x193   : > { %v1158_v62 = vpop.f32.mrf.mxu3  ;;  %v771_v58 = vpop.f32.mrf.mxu1 }
 0x194   : > { %v603_v43 = vpop.f32.mrf.mxu0  ;;  %v772_v44 = vadd.f32 %v771_v58, %v595_v18  ;;  %v950_v63 = vpop.f32.mrf.mxu2 }
 0x196   : > { %v951_v35 = vadd.f32 %v950_v63, %v772_v44  ;;  %1403 = vmatmul.f32.gmra.mxu1 %v6337_v26 }
 0x197   : > { %1259 = vmatmul.f32.gmra.mxu0 %v6357_v48 }
 0x198   : > { %1843 = vmatmul.f32.gmra.mxu3 %v6357_v48  ;;  %v6913_v36 = vadd.f32 %v1158_v62, %v951_v35  ;;  %1607 = vmatmul.f32.gmra.mxu2 %v6392_v52  ;;  %v5025_v62 = vld [vmem:[%s8222_s2 + $0x58] sm:$0xff] }
 0x199   : > { %5103 = vperm.xlu2 %5682, %v5025_v62   ;;  %5128 = vperm.xlu1 %5681, %v5030_v32  }
 0x19b   : > { %v1164_v19 = vpop.f32.mrf.mxu3  ;;  %v775_v18 = vpop.f32.mrf.mxu1 }
 0x19c   : > { %v611_v8 = vpop.f32.mrf.mxu0  ;;  %v776_v58 = vadd.f32 %v775_v18, %v603_v43  ;;  %v955_v44 = vpop.f32.mrf.mxu2 }
 0x19e   : > { %v956_v63 = vadd.f32 %v955_v44, %v776_v58  ;;  %1407 = vmatmul.f32.gmra.mxu1 %v6357_v48 }
 0x19f   : > { %1263 = vmatmul.f32.gmra.mxu0 %v6377_v15 }
 0x1a0   : > { %1847 = vmatmul.f32.gmra.mxu3 %v6377_v15  ;;  %v6925_v35 = vadd.f32 %v1164_v19, %v956_v63  ;;  %1615 = vmatmul.f32.gmra.mxu2 %v6412_v47 }
 0x1a3   : > { %v1170_v23 = vpop.f32.mrf.mxu3  ;;  %v779_v43 = vpop.f32.mrf.mxu1 }
 0x1a4   : > { %v619_v52 = vpop.f32.mrf.mxu0  ;;  %v780_v18 = vadd.f32 %v779_v43, %v611_v8  ;;  %v960_v58 = vpop.f32.mrf.mxu2 }
 0x1a6   : > { %v961_v44 = vadd.f32 %v960_v58, %v780_v18  ;;  %1411 = vmatmul.f32.gmra.mxu1 %v6377_v15 }
 0x1a7   : > { %1267 = vmatmul.f32.gmra.mxu0 %v6397_v42 }
 0x1a8   : > { %1851 = vmatmul.f32.gmra.mxu3 %v6397_v42  ;;  %v6934_v19 = vadd.f32 %v1170_v23, %v961_v44  ;;  %1623 = vmatmul.f32.gmra.mxu2 %v6432_v11 }
 0x1ab   : > { %v1176_v63 = vpop.f32.mrf.mxu3  ;;  %v783_v8 = vpop.f32.mrf.mxu1 }
 0x1ac   : > { %v627_v62 = vpop.f32.mrf.mxu0  ;;  %v784_v43 = vadd.f32 %v783_v8, %v619_v52  ;;  %v965_v18 = vpop.f32.mrf.mxu2 }
 0x1ae   : > { %v966_v58 = vadd.f32 %v965_v18, %v784_v43  ;;  %1415 = vmatmul.f32.gmra.mxu1 %v6397_v42 }
 0x1af   : > { %1271 = vmatmul.f32.gmra.mxu0 %v6417_v59 }
 0x1b0   : > { %1855 = vmatmul.f32.gmra.mxu3 %v6417_v59  ;;  %v6943_v23 = vadd.f32 %v1176_v63, %v966_v58  ;;  %1631 = vmatmul.f32.gmra.mxu2 %v6452_v1  ;;  %v5028_v63 = vld [vmem:[%s8222_s2 + $0x70] sm:$0xff] }
 0x1b1   : > { %5118 = vperm.xlu2 %5682, %v5028_v63   ;;  %v8734_v63 = vld [vmem:[#allocation79_spill] sm:$0xff] }
 0x1b3   : > { %v1182_v44 = vpop.f32.mrf.mxu3  ;;  %v787_v11 = vpop.f32.mrf.mxu1 }
 0x1b4   : > { %v1212_v52 = vpop.f32.mrf.mxu0  ;;  %v788_v8 = vadd.f32 %v787_v11, %v627_v62  ;;  %v970_v43 = vpop.f32.mrf.mxu2 }
 0x1b6   : > { %v971_v18 = vadd.f32 %v970_v43, %v788_v8  ;;  %1419 = vmatmul.f32.gmra.mxu1 %v6417_v59  ;;  %v1213_v43 = vadd.f32 %v1212_v52, %v6511_v28 }
 0x1b7   : > { %1275 = vmatmul.f32.gmra.mxu0 %v6437_v45 }
 0x1b8   : > { %1859 = vmatmul.f32.gmra.mxu3 %v6437_v45  ;;  %v6952_v58 = vadd.f32 %v1182_v44, %v971_v18  ;;  %1639 = vmatmul.f32.gmra.mxu2 %v6472_v38  ;;  %v5032_v44 = vld [vmem:[%s8222_s2 + $0x90] sm:$0xff]  ;;  %v6965_v38 = vpop.permute.xlu0 %5048 }
 0x1b9   : > { %8735 = vst [vmem:[#allocation142_spill] sm:$0xff] %v6965_v38  ;;  %5138 = vperm.xlu0 %5680, %v5032_v44  }
 0x1bb   : > { %v1796_v32 = vpop.f32.mrf.mxu3  ;;  %v1360_v11 = vpop.f32.mrf.mxu1 }
 0x1bc   : > { %v1216_v1 = vpop.f32.mrf.mxu0  ;;  %v1512_v62 = vpop.f32.mrf.mxu2  ;;  %v1361_v18 = vadd.f32 %v1360_v11, %v1213_v43  ;;  %v5033_v11 = vld [vmem:[%s8222_s2 + $0x98] sm:$0xff] }
 0x1bd   : > { %v6955_v8 = vadd.f32 %v1796_v32, %v1512_v62  ;;  %v8736_v32 = vld [vmem:[#allocation86_spill] sm:$0xff]  ;;  %5143 = vperm.xlu1 %5681, %v5033_v11   ;;  %v8741_v11 = vld [vmem:[#allocation87_spill] sm:$0xff] }
 0x1be   : > { %1423 = vmatmul.f32.gmra.mxu1 %v6437_v45  ;;  %v1217_v62 = vadd.f32 %v1216_v1, %v8736_v32  ;;  %5683 = vtanh.f32 %v1361_v18  ;;  %v8738_v45 = vld [vmem:[#allocation77_spill] sm:$0xff]  ;;  %v8739_v1 = vld [vmem:[#allocation82_spill] sm:$0xff] }
 0x1bf   : > { %8733 = vst [vmem:[#allocation141_spill] sm:$0xff] %v6955_v8  ;;  %1279 = vmatmul.f32.gmra.mxu0 %v6457_v33 }
 0x1c0   : > { %1863 = vmatmul.f32.gmra.mxu3 %v6457_v33  ;;  %1647 = vmatmul.f32.gmra.mxu2 %v8734_v63  ;;  %v6978_v18 = vpop.permute.xlu0 %5053 }
 0x1c1   : > { %8740 = vst [vmem:[#allocation143_spill] sm:$0xff] %v6978_v18 }
 0x1c3   : > { %v1800_v47 = vpop.f32.mrf.mxu3  ;;  %v1364_v52 = vpop.f32.mrf.mxu1 }
 0x1c4   : > { %v1220_v28 = vpop.f32.mrf.mxu0  ;;  %v1365_v21 = vadd.f32 %v1364_v52, %v1217_v62  ;;  %v1520_v12 = vpop.f32.mrf.mxu2 }
 0x1c5   : > { %v6968_v8 = vadd.f32 %v1800_v47, %v1520_v12  ;;  %v5684_v43 = vpop.eup %5683  ;;  %v1221_v44 = vadd.f32 %v1220_v28, %v6560_v20  ;;  %v5031_v28 = vld [vmem:[%s8222_s2 + $0x88] sm:$0xff] }
 0x1c6   : > { %5685 = vtanh.f32 %v1365_v21  ;;  %1427 = vmatmul.f32.gmra.mxu1 %v6457_v33  ;;  %v5206_v63 = vmul.f32 %v5684_v43, %v6965_v38  ;;  %5133 = vperm.xlu2 %5682, %v5031_v28   ;;  %v8745_v28 = vld [vmem:[#allocation99_spill] sm:$0xff] }
 0x1c7   : > { %8737 = vst [vmem:[#allocation86_spill] sm:$0xff] %v6968_v8  ;;  %1283 = vmatmul.f32.gmra.mxu0 %v8738_v45 }
 0x1c8   : > { %1867 = vmatmul.f32.gmra.mxu3 %v8738_v45  ;;  %1655 = vmatmul.f32.gmra.mxu2 %v8739_v1 }
 0x1cb   : > { %v1804_v12 = vpop.f32.mrf.mxu3  ;;  %v1368_v47 = vpop.f32.mrf.mxu1 }
 0x1cc   : > { %v1224_v21 = vpop.f32.mrf.mxu0  ;;  %v5686_v32 = vpop.eup %5685  ;;  %v1369_v62 = vadd.f32 %v1368_v47, %v1221_v44 }
 0x1cd   : > { %v1528_v52 = vpop.f32.mrf.mxu2  ;;  %v5210_v8 = vmul.f32 %v5686_v32, %v6978_v18  ;;  %v6991_v44 = vpop.permute.xlu1 %5058  ;;  %v1225_v43 = vadd.f32 %v1224_v21, %v6583_v27  ;;  %v5035_v27 = vld [vmem:[%s8222_s2 + $0xa8] sm:$0xff]  ;;  %v8744_v21 = vld [vmem:[#allocation91_spill] sm:$0xff]  ;;  %v8748_v18 = vld [vmem:[#allocation89_spill] sm:$0xff] }
 0x1ce   : > { %v6982_v33 = vadd.f32 %v1804_v12, %v1528_v52  ;;  %5687 = vtanh.f32 %v1369_v62  ;;  %1431 = vmatmul.f32.gmra.mxu1 %v8738_v45  ;;  %8742 = vst [vmem:[#allocation144_spill] sm:$0xff] %v6991_v44  ;;  %5153 = vperm.xlu0 %5680, %v5035_v27  }
 0x1cf   : > { %1287 = vmatmul.f32.gmra.mxu0 %v6497_v6  ;;  %v5334_v20 = vadd.f32 %v5210_v8, %v5206_v63 }
 0x1d0   : > { %1871 = vmatmul.f32.gmra.mxu3 %v6497_v6  ;;  %1663 = vmatmul.f32.gmra.mxu2 %v8741_v11 }
 0x1d3   : > { %v1808_v12 = vpop.f32.mrf.mxu3  ;;  %v1372_v32 = vpop.f32.mrf.mxu1 }
 0x1d4   : > { %v1228_v47 = vpop.f32.mrf.mxu0  ;;  %v5688_v62 = vpop.eup %5687  ;;  %v1373_v52 = vadd.f32 %v1372_v32, %v1225_v43 }
 0x1d5   : > { %v1536_v1 = vpop.f32.mrf.mxu2  ;;  %v5214_v8 = vmul.f32 %v5688_v62, %v6991_v44  ;;  %v1229_v43 = vadd.f32 %v1228_v47, %v8745_v28  ;;  %v7005_v32 = vpop.permute.xlu1 %5063  ;;  %v5036_v47 = vld [vmem:[%s8222_s2 + $0xb0] sm:$0xff] }
 0x1d6   : > { %v6995_v63 = vadd.f32 %v1808_v12, %v1536_v1  ;;  %5689 = vtanh.f32 %v1373_v52  ;;  %1435 = vmatmul.f32.gmra.mxu1 %v6497_v6  ;;  %8746 = vst [vmem:[#allocation99_spill] sm:$0xff] %v7005_v32  ;;  %v8749_v28 = vld [vmem:[#allocation95_spill] sm:$0xff]  ;;  %5158 = vperm.xlu1 %5681, %v5036_v47   ;;  %v8754_v47 = vld [vmem:[#allocation100_spill] sm:$0xff] }
 0x1d7   : > { %1291 = vmatmul.f32.gmra.mxu0 %v6519_v60  ;;  %v5335_v11 = vadd.f32 %v5334_v20, %v5214_v8 }
 0x1d8   : > { %8743 = vst [vmem:[#allocation145_spill] sm:$0xff] %v6995_v63  ;;  %1875 = vmatmul.f32.gmra.mxu3 %v6519_v60  ;;  %1671 = vmatmul.f32.gmra.mxu2 %v8744_v21 }
 0x1db   : > { %v1812_v1 = vpop.f32.mrf.mxu3  ;;  %v1376_v62 = vpop.f32.mrf.mxu1 }
 0x1dc   : > { %v1232_v12 = vpop.f32.mrf.mxu0  ;;  %v5690_v52 = vpop.eup %5689  ;;  %v1377_v44 = vadd.f32 %v1376_v62, %v1229_v43  ;;  %v8751_v62 = vld [vmem:[#allocation104_spill] sm:$0xff] }
 0x1dd   : > { %v1544_v63 = vpop.f32.mrf.mxu2  ;;  %v5218_v20 = vmul.f32 %v5690_v52, %v7005_v32  ;;  %v7017_v43 = vpop.permute.xlu2 %5068 }
 0x1de   : > { %v7008_v8 = vadd.f32 %v1812_v1, %v1544_v63  ;;  %5691 = vtanh.f32 %v1377_v44  ;;  %1439 = vmatmul.f32.gmra.mxu1 %v6519_v60  ;;  %8750 = vst [vmem:[#allocation147_spill] sm:$0xff] %v7017_v43  ;;  %v1233_v63 = vadd.f32 %v1232_v12, %v8751_v62  ;;  %v8753_v60 = vld [vmem:[#allocation93_spill] sm:$0xff] }
 0x1df   : > { %1295 = vmatmul.f32.gmra.mxu0 %v8748_v18  ;;  %v5336_v27 = vadd.f32 %v5335_v11, %v5218_v20  ;;  %v5034_v12 = vld [vmem:[%s8222_s2 + $0xa0] sm:$0xff] }
 0x1e0   : > { %8747 = vst [vmem:[#allocation146_spill] sm:$0xff] %v7008_v8  ;;  %1879 = vmatmul.f32.gmra.mxu3 %v8748_v18  ;;  %1679 = vmatmul.f32.gmra.mxu2 %v8749_v28  ;;  %v8755_v62 = vld [vmem:[#allocation109_spill] sm:$0xff] }
 0x1e1   : > { %5148 = vperm.xlu2 %5682, %v5034_v12  }
 0x1e3   : > { %v1816_v1 = vpop.f32.mrf.mxu3  ;;  %v1380_v52 = vpop.f32.mrf.mxu1 }
 0x1e4   : > { %v1236_v44 = vpop.f32.mrf.mxu0  ;;  %v5692_v21 = vpop.eup %5691  ;;  %v1381_v32 = vadd.f32 %v1380_v52, %v1233_v63 }
 0x1e5   : > { %v1552_v8 = vpop.f32.mrf.mxu2  ;;  %v5222_v11 = vmul.f32 %v5692_v21, %v7017_v43  ;;  %v1237_v63 = vadd.f32 %v1236_v44, %v8755_v62  ;;  %v7031_v21 = vpop.permute.xlu2 %5073  ;;  %v5038_v44 = vld [vmem:[%s8222_s2 + $0xc0] sm:$0xff] }
 0x1e6   : > { %v7021_v20 = vadd.f32 %v1816_v1, %v1552_v8  ;;  %5693 = vtanh.f32 %v1381_v32  ;;  %1443 = vmatmul.f32.gmra.mxu1 %v8748_v18  ;;  %8756 = vst [vmem:[#allocation109_spill] sm:$0xff] %v7031_v21  ;;  %v8758_v18 = vld [vmem:[#allocation97_spill] sm:$0xff]  ;;  %5168 = vperm.xlu0 %5680, %v5038_v44  }
 0x1e7   : > { %1299 = vmatmul.f32.gmra.mxu0 %v8753_v60  ;;  %v5337_v28 = vadd.f32 %v5336_v27, %v5222_v11  ;;  %v8759_v62 = vld [vmem:[#allocation105_spill] sm:$0xff] }
 0x1e8   : > { %8752 = vst [vmem:[#allocation104_spill] sm:$0xff] %v7021_v20  ;;  %1883 = vmatmul.f32.gmra.mxu3 %v8753_v60  ;;  %1687 = vmatmul.f32.gmra.mxu2 %v8754_v47 }
 0x1eb   : > { %v1820_v8 = vpop.f32.mrf.mxu3  ;;  %v1384_v1 = vpop.f32.mrf.mxu1 }
 0x1ec   : > { %v1240_v32 = vpop.f32.mrf.mxu0  ;;  %v5694_v52 = vpop.eup %5693  ;;  %v1385_v43 = vadd.f32 %v1384_v1, %v1237_v63  ;;  %v8760_v63 = vld [vmem:[#allocation114_spill] sm:$0xff] }
 0x1ed   : > { %v1560_v20 = vpop.f32.mrf.mxu2  ;;  %v5226_v27 = vmul.f32 %v5694_v52, %v7031_v21  ;;  %v1241_v1 = vadd.f32 %v1240_v32, %v8760_v63  ;;  %v7044_v52 = vpop.permute.xlu0 %5078  ;;  %v5039_v32 = vld [vmem:[%s8222_s2 + $0xc8] sm:$0xff] }
 0x1ee   : > { %v7034_v11 = vadd.f32 %v1820_v8, %v1560_v20  ;;  %5695 = vtanh.f32 %v1385_v43  ;;  %1447 = vmatmul.f32.gmra.mxu1 %v8753_v60  ;;  %8761 = vst [vmem:[#allocation114_spill] sm:$0xff] %v7044_v52  ;;  %v8763_v60 = vld [vmem:[#allocation102_spill] sm:$0xff]  ;;  %5173 = vperm.xlu1 %5681, %v5039_v32  }
 0x1ef   : > { %1303 = vmatmul.f32.gmra.mxu0 %v8758_v18  ;;  %v5338_v12 = vadd.f32 %v5337_v28, %v5226_v27  ;;  %v8764_v63 = vld [vmem:[#allocation110_spill] sm:$0xff] }
 0x1f0   : > { %8757 = vst [vmem:[#allocation148_spill] sm:$0xff] %v7034_v11  ;;  %1887 = vmatmul.f32.gmra.mxu3 %v8758_v18  ;;  %1695 = vmatmul.f32.gmra.mxu2 %v8759_v62 }
 0x1f3   : > { %v1824_v20 = vpop.f32.mrf.mxu3  ;;  %v1388_v8 = vpop.f32.mrf.mxu1 }
 0x1f4   : > { %v1244_v43 = vpop.f32.mrf.mxu0  ;;  %v5696_v47 = vpop.eup %5695  ;;  %v1389_v21 = vadd.f32 %v1388_v8, %v1241_v1  ;;  %v8765_v1 = vld [vmem:[#allocation119_spill] sm:$0xff] }
 0x1f5   : > { %v1568_v11 = vpop.f32.mrf.mxu2  ;;  %v5230_v28 = vmul.f32 %v5696_v47, %v7044_v52  ;;  %v1245_v8 = vadd.f32 %v1244_v43, %v8765_v1  ;;  %v7057_v47 = vpop.permute.xlu1 %5083  ;;  %v5037_v43 = vld [vmem:[%s8222_s2 + $0xb8] sm:$0xff]  ;;  %v8769_v1 = vld [vmem:[#allocation115_spill] sm:$0xff] }
 0x1f6   : > { %v7047_v27 = vadd.f32 %v1824_v20, %v1568_v11  ;;  %5697 = vtanh.f32 %v1389_v21  ;;  %1451 = vmatmul.f32.gmra.mxu1 %v8758_v18  ;;  %8766 = vst [vmem:[#allocation119_spill] sm:$0xff] %v7057_v47  ;;  %v8768_v18 = vld [vmem:[#allocation107_spill] sm:$0xff]  ;;  %5163 = vperm.xlu2 %5682, %v5037_v43  }
 0x1f7   : > { %1307 = vmatmul.f32.gmra.mxu0 %v8763_v60  ;;  %v5339_v44 = vadd.f32 %v5338_v12, %v5230_v28 }
 0x1f8   : > { %8762 = vst [vmem:[#allocation149_spill] sm:$0xff] %v7047_v27  ;;  %1891 = vmatmul.f32.gmra.mxu3 %v8763_v60  ;;  %1703 = vmatmul.f32.gmra.mxu2 %v8764_v63 }
 0x1fb   : > { %v1828_v11 = vpop.f32.mrf.mxu3  ;;  %v1392_v20 = vpop.f32.mrf.mxu1 }
 0x1fc   : > { %v1248_v21 = vpop.f32.mrf.mxu0  ;;  %v5698_v62 = vpop.eup %5697  ;;  %v1393_v52 = vadd.f32 %v1392_v20, %v1245_v8  ;;  %v8770_v8 = vld [vmem:[#allocation124_spill] sm:$0xff] }
 0x1fd   : > { %v1576_v27 = vpop.f32.mrf.mxu2  ;;  %v5234_v12 = vmul.f32 %v5698_v62, %v7057_v47  ;;  %v1249_v20 = vadd.f32 %v1248_v21, %v8770_v8  ;;  %v7070_v62 = vpop.permute.xlu2 %5088  ;;  %v5041_v21 = vld [vmem:[%s8222_s2 + $0xd8] sm:$0xff] }
 0x1fe   : > { %v7060_v28 = vadd.f32 %v1828_v11, %v1576_v27  ;;  %5699 = vtanh.f32 %v1393_v52  ;;  %1455 = vmatmul.f32.gmra.mxu1 %v8763_v60  ;;  %8771 = vst [vmem:[#allocation124_spill] sm:$0xff] %v7070_v62  ;;  %v8773_v60 = vld [vmem:[#allocation112_spill] sm:$0xff]  ;;  %5183 = vperm.xlu0 %5680, %v5041_v21  }
 0x1ff   : > { %1311 = vmatmul.f32.gmra.mxu0 %v8768_v18  ;;  %v5340_v32 = vadd.f32 %v5339_v44, %v5234_v12  ;;  %v8774_v8 = vld [vmem:[#allocation120_spill] sm:$0xff] }
 0x200   : > { %8767 = vst [vmem:[#allocation150_spill] sm:$0xff] %v7060_v28  ;;  %1895 = vmatmul.f32.gmra.mxu3 %v8768_v18  ;;  %1711 = vmatmul.f32.gmra.mxu2 %v8769_v1 }
 0x203   : > { %v1832_v27 = vpop.f32.mrf.mxu3  ;;  %v1396_v11 = vpop.f32.mrf.mxu1 }
 0x204   : > { %v1252_v52 = vpop.f32.mrf.mxu0  ;;  %v5700_v63 = vpop.eup %5699  ;;  %v1397_v47 = vadd.f32 %v1396_v11, %v1249_v20  ;;  %v8775_v20 = vld [vmem:[#allocation129_spill] sm:$0xff] }
 0x205   : > { %v1584_v28 = vpop.f32.mrf.mxu2  ;;  %v5238_v44 = vmul.f32 %v5700_v63, %v7070_v62  ;;  %v1253_v11 = vadd.f32 %v1252_v52, %v8775_v20  ;;  %v7083_v63 = vpop.permute.xlu0 %5093  ;;  %v5042_v52 = vld [vmem:[%s8222_s2 + $0xe0] sm:$0xff] }
 0x206   : > { %v7073_v12 = vadd.f32 %v1832_v27, %v1584_v28  ;;  %5701 = vtanh.f32 %v1397_v47  ;;  %1459 = vmatmul.f32.gmra.mxu1 %v8768_v18  ;;  %8776 = vst [vmem:[#allocation129_spill] sm:$0xff] %v7083_v63  ;;  %v8777_v18 = vld [vmem:[#allocation117_spill] sm:$0xff]  ;;  %5188 = vperm.xlu1 %5681, %v5042_v52  }
 0x207   : > { %1315 = vmatmul.f32.gmra.mxu0 %v8773_v60  ;;  %v5341_v43 = vadd.f32 %v5340_v32, %v5238_v44  ;;  %v8778_v20 = vld [vmem:[#allocation125_spill] sm:$0xff] }
 0x208   : > { %8772 = vst [vmem:[#allocation151_spill] sm:$0xff] %v7073_v12  ;;  %1899 = vmatmul.f32.gmra.mxu3 %v8773_v60  ;;  %1719 = vmatmul.f32.gmra.mxu2 %v8774_v8 }
 0x20b   : > { %v1836_v28 = vpop.f32.mrf.mxu3  ;;  %v1400_v27 = vpop.f32.mrf.mxu1 }
 0x20c   : > { %v1256_v47 = vpop.f32.mrf.mxu0  ;;  %v5702_v1 = vpop.eup %5701  ;;  %v1401_v62 = vadd.f32 %v1400_v27, %v1253_v11 }
 0x20d   : > { %v1592_v12 = vpop.f32.mrf.mxu2  ;;  %v5242_v32 = vmul.f32 %v5702_v1, %v7083_v63  ;;  %v1257_v11 = vadd.f32 %v1256_v47, %v6760_v13  ;;  %v7096_v1 = vpop.permute.xlu1 %5098  ;;  %v5040_v13 = vld [vmem:[%s8222_s2 + $0xd0] sm:$0xff]  ;;  %v8781_v47 = vld [vmem:[#allocation130_spill] sm:$0xff] }
 0x20e   : > { %v7086_v44 = vadd.f32 %v1836_v28, %v1592_v12  ;;  %5703 = vtanh.f32 %v1401_v62  ;;  %1463 = vmatmul.f32.gmra.mxu1 %v8773_v60  ;;  %8779 = vst [vmem:[#allocation152_spill] sm:$0xff] %v7096_v1  ;;  %5178 = vperm.xlu2 %5682, %v5040_v13  }
 0x20f   : > { %1319 = vmatmul.f32.gmra.mxu0 %v8777_v18  ;;  %v5342_v21 = vadd.f32 %v5341_v43, %v5242_v32 }
 0x210   : > { %1903 = vmatmul.f32.gmra.mxu3 %v8777_v18  ;;  %1727 = vmatmul.f32.gmra.mxu2 %v8778_v20 }
 0x213   : > { %v1840_v12 = vpop.f32.mrf.mxu3  ;;  %v1404_v28 = vpop.f32.mrf.mxu1 }
 0x214   : > { %v1260_v62 = vpop.f32.mrf.mxu0  ;;  %v5704_v27 = vpop.eup %5703  ;;  %v1405_v8 = vadd.f32 %v1404_v28, %v1257_v11  ;;  %v223_v11 = vld [vmem:[%s6104_s17 + $0x50] sm:$0xff] }
 0x215   : > { %v1600_v43 = vpop.f32.mrf.mxu2  ;;  %v5246_v32 = vmul.f32 %v5704_v27, %v7096_v1  ;;  %v7109_v28 = vand.u32 4294901760, %v223_v11 }
 0x216   : > { %v7099_v63 = vadd.f32 %v1840_v12, %v1600_v43  ;;  %5705 = vtanh.f32 %v1405_v8  ;;  %1467 = vmatmul.f32.gmra.mxu1 %v8777_v18  ;;  %v1261_v12 = vadd.f32 %v1260_v62, %v6778_v3  ;;  %v7112_v8 = vpop.permute.xlu2 %5103  ;;  %v8784_v62 = vld [vmem:[#allocation134_spill] sm:$0xff] }
 0x217   : > { %1323 = vmatmul.f32.gmra.mxu0 %v6702_v53  ;;  %v5343_v52 = vadd.f32 %v5342_v21, %v5246_v32  ;;  %8782 = vst [vmem:[#allocation154_spill] sm:$0xff] %v7112_v8  ;;  %v7115_v21 = vsub.f32 %v223_v11, %v7109_v28  ;;  %3253 = vmatpush.msrb.mxu3 %v7109_v28 }
 0x218   : > { %8780 = vst [vmem:[#allocation153_spill] sm:$0xff] %v7099_v63  ;;  %1907 = vmatmul.f32.gmra.mxu3 %v6702_v53  ;;  %1735 = vmatmul.f32.gmra.mxu2 %v8781_v47 }
 0x219   : > { %2634 = vmatpush.msrb.mxu0 %v7109_v28  ;;  %3071 = vmatpush.msrb.mxu2 %v7115_v21 }
 0x21b   : > { %v1844_v27 = vpop.f32.mrf.mxu3  ;;  %v1408_v20 = vpop.f32.mrf.mxu1 }
 0x21c   : > { %v1264_v43 = vpop.f32.mrf.mxu0  ;;  %v5706_v32 = vpop.eup %5705  ;;  %v1409_v47 = vadd.f32 %v1408_v20, %v1261_v12  ;;  %v5044_v20 = vld [vmem:[%s8222_s2 + $0xf0] sm:$0xff] }
 0x21d   : > { %v1608_v13 = vpop.f32.mrf.mxu2  ;;  %v5250_v1 = vmul.f32 %v5706_v32, %v7112_v8  ;;  %v1265_v11 = vadd.f32 %v1264_v43, %v6791_v22  ;;  %v7131_v12 = vpop.permute.xlu0 %5108  ;;  %5198 = vperm.xlu0 %5680, %v5044_v20   ;;  %v5045_v22 = vld [vmem:[%s8222_s2 + $0xf8] sm:$0xff] }
 0x21e   : > { %v7120_v63 = vadd.f32 %v1844_v27, %v1608_v13  ;;  %5707 = vtanh.f32 %v1409_v47  ;;  %1471 = vmatmul.f32.gmra.mxu1 %v6702_v53  ;;  %8785 = vst [vmem:[#allocation156_spill] sm:$0xff] %v7131_v12  ;;  %v7144_v20 = vpop.permute.xlu1 %5113  ;;  %5203 = vperm.xlu1 %5681, %v5045_v22   ;;  %v5043_v22 = vld [vmem:[%s8222_s2 + $0xe8] sm:$0xff] }
 0x21f   : > { %1327 = vmatmul.f32.gmra.mxu0 %v6724_v50  ;;  %v5344_v3 = vadd.f32 %v5343_v52, %v5250_v1  ;;  %8786 = vst [vmem:[#allocation157_spill] sm:$0xff] %v7144_v20  ;;  %5193 = vperm.xlu2 %5682, %v5043_v22  }
 0x220   : > { %8783 = vst [vmem:[#allocation155_spill] sm:$0xff] %v7120_v63  ;;  %1911 = vmatmul.f32.gmra.mxu3 %v6724_v50  ;;  %1743 = vmatmul.f32.gmra.mxu2 %v8784_v62 }
 0x223   : > { %v1848_v27 = vpop.f32.mrf.mxu3  ;;  %v1412_v32 = vpop.f32.mrf.mxu1 }
 0x224   : > { %v1268_v47 = vpop.f32.mrf.mxu0  ;;  %v5708_v13 = vpop.eup %5707  ;;  %v1413_v8 = vadd.f32 %v1412_v32, %v1265_v11 }
 0x225   : > { %v1616_v63 = vpop.f32.mrf.mxu2  ;;  %v5254_v1 = vmul.f32 %v5708_v13, %v7131_v12  ;;  %v1269_v43 = vadd.f32 %v1268_v47, %v6799_v2 }
 0x226   : > { %v7134_v52 = vadd.f32 %v1848_v27, %v1616_v63  ;;  %5709 = vtanh.f32 %v1413_v8  ;;  %1475 = vmatmul.f32.gmra.mxu1 %v6724_v50  ;;  %v8467_v27 = vand.u32 4294901760, %v7115_v21 }
 0x227   : > { %1331 = vmatmul.f32.gmra.mxu0 %v6746_v30  ;;  %v5345_v62 = vadd.f32 %v5344_v3, %v5254_v1 }
 0x228   : > { %1915 = vmatmul.f32.gmra.mxu3 %v6746_v30  ;;  %1751 = vmatmul.f32.gmra.mxu2 %v6781_v51  ;;  %v2912_v12 = vsub.f32 %v7115_v21, %v8467_v27 }
 0x22a   : > { %v2913_v47 = vand.u32 4294901760, %v2912_v12 }
 0x22b   : > { %v1852_v63 = vpop.f32.mrf.mxu3  ;;  %v1416_v11 = vpop.f32.mrf.mxu1 }
 0x22c   : > { %v1272_v8 = vpop.f32.mrf.mxu0  ;;  %v5710_v32 = vpop.eup %5709  ;;  %v1417_v3 = vadd.f32 %v1416_v11, %v1269_v43  ;;  %2914 = vmatpush.msrb.mxu1 %v2913_v47 }
 0x22d   : > { %v1624_v13 = vpop.f32.mrf.mxu2  ;;  %v5258_v1 = vmul.f32 %v5710_v32, %v7144_v20  ;;  %v1273_v43 = vadd.f32 %v1272_v8, %v6808_v9  ;;  %v7170_v9 = vpop.permute.xlu0 %5123 }
 0x22e   : > { %v7148_v51 = vadd.f32 %v1852_v63, %v1624_v13  ;;  %5711 = vtanh.f32 %v1417_v3  ;;  %1479 = vmatmul.f32.gmra.mxu1 %v6746_v30  ;;  %v7161_v63 = vpop.permute.xlu2 %5118  ;;  %8790 = vst [vmem:[#allocation160_spill] sm:$0xff] %v7170_v9 }
 0x22f   : > { %1335 = vmatmul.f32.gmra.mxu0 %v6768_v49  ;;  %v5346_v2 = vadd.f32 %v5345_v62, %v5258_v1  ;;  %8787 = vst [vmem:[#allocation158_spill] sm:$0xff] %v7161_v63 }
 0x230   : > { %1919 = vmatmul.f32.gmra.mxu3 %v6768_v49  ;;  %1759 = vmatmul.f32.gmra.mxu2 %v6794_v40  ;;  %v8789_v40 = vld [vmem:[#allocation8_spill] sm:$0xff] }
 0x233   : > { %v1856_v11 = vpop.f32.mrf.mxu3  ;;  %v1420_v3 = vpop.f32.mrf.mxu1 }
 0x234   : > { %v1276_v32 = vpop.f32.mrf.mxu0  ;;  %v5712_v13 = vpop.eup %5711  ;;  %v1421_v62 = vadd.f32 %v1420_v3, %v1273_v43 }
 0x235   : > { %v1632_v1 = vpop.f32.mrf.mxu2  ;;  %v5262_v12 = vmul.f32 %v5712_v13, %v7161_v63 }
 0x236   : > { %v7164_v27 = vadd.f32 %v1856_v11, %v1632_v1  ;;  %5713 = vtanh.f32 %v1421_v62  ;;  %1483 = vmatmul.f32.gmra.mxu1 %v6768_v49  ;;  %v1277_v62 = vadd.f32 %v1276_v32, %v6817_v54  ;;  %v8791_v1 = vld [vmem:[#allocation9_spill] sm:$0xff]  ;;  %v8794_v32 = vld [vmem:[#allocation14_spill] sm:$0xff] }
 0x237   : > { %1947 = vmatmul.f32.vlgmr.msra.gmra.mxu0 %v8789_v40  ;;  %v5347_v47 = vadd.f32 %v5346_v2, %v5262_v12  ;;  %v8792_v2 = vld [vmem:[#allocation10_spill] sm:$0xff] }
 0x238   : > { %8788 = vst [vmem:[#allocation159_spill] sm:$0xff] %v7164_v27  ;;  %2492 = vmatmul.f32.vlgmr.msra.gmra.mxu3 %v6097_v16  ;;  %2344 = vmatmul.f32.vlgmr.msra.gmra.mxu2 %v6097_v16 }
 0x23b   : > { %v1860_v8 = vpop.f32.mrf.mxu3  ;;  %v1424_v43 = vpop.f32.mrf.mxu1 }
 0x23c   : > { %v1280_v22 = vpop.f32.mrf.mxu0  ;;  %v5714_v3 = vpop.eup %5713  ;;  %v1425_v16 = vadd.f32 %v1424_v43, %v1277_v62 }
 0x23d   : > { %v1640_v20 = vpop.f32.mrf.mxu2  ;;  %v5266_v11 = vmul.f32 %v5714_v3, %v7170_v9  ;;  %v1281_v63 = vadd.f32 %v1280_v22, %v6826_v29  ;;  %v7189_v43 = vpop.permute.xlu1 %5128 }
 0x23e   : > { %v7173_v13 = vadd.f32 %v1860_v8, %v1640_v20  ;;  %2128 = vmatmul.f32.vlgmr.msra.gmra.mxu1 %v8792_v2  ;;  %5715 = vtanh.f32 %v1425_v16  ;;  %8796 = vst [vmem:[#allocation162_spill] sm:$0xff] %v7189_v43 }
 0x23f   : > { %1952 = vmatmul.f32.gmra.mxu0 %v8791_v1  ;;  %v7178_v12 = vadd.f32 %v5347_v47, %v5266_v11  ;;  %v8795_v47 = vld [vmem:[#allocation11_spill] sm:$0xff]  ;;  %v7192_v11 = vpop.permute.xlu2 %5133 }
 0x240   : > { %2496 = vmatmul.f32.gmra.mxu3 %v6099_v17  ;;  %2348 = vmatmul.f32.gmra.mxu2 %v6099_v17  ;;  %8797 = vst [vmem:[#allocation163_spill] sm:$0xff] %v7192_v11 }
 0x243   : > { %v1864_v40 = vpop.f32.mrf.mxu3  ;;  %v1428_v3 = vpop.f32.mrf.mxu1 }
 0x244   : > { %v1284_v27 = vpop.f32.mrf.mxu0  ;;  %v1429_v20 = vadd.f32 %v1428_v3, %v1281_v63  ;;  %v5716_v29 = vpop.eup %5715 }
 0x245   : > { %v1648_v8 = vpop.f32.mrf.mxu2  ;;  %v1285_v22 = vadd.f32 %v1284_v27, %v6835_v24 }
 0x246   : > { %v7183_v54 = vadd.f32 %v1864_v40, %v1648_v8  ;;  %5717 = vtanh.f32 %v1429_v20  ;;  %2134 = vmatmul.f32.gmra.mxu1 %v8795_v47  ;;  %v5270_v8 = vmul.f32 %v5716_v29, %v7189_v43 }
 0x247   : > { %1957 = vmatmul.f32.gmra.mxu0 %v8794_v32 }
 0x248   : > { %8793 = vst [vmem:[#allocation161_spill] sm:$0xff] %v7183_v54  ;;  %2500 = vmatmul.f32.gmra.mxu3 %v6133_v37  ;;  %2352 = vmatmul.f32.gmra.mxu2 %v6133_v37  ;;  %v8798_v37 = vld [vmem:[#allocation18_spill] sm:$0xff]  ;;  %v8799_v54 = vld [vmem:[#allocation16_spill] sm:$0xff] }
 0x24b   : > { %v1868_v16 = vpop.f32.mrf.mxu3  ;;  %v1432_v40 = vpop.f32.mrf.mxu1 }
 0x24c   : > { %v1288_v63 = vpop.f32.mrf.mxu0  ;;  %v5718_v62 = vpop.eup %5717  ;;  %v1433_v3 = vadd.f32 %v1432_v40, %v1285_v22 }
 0x24d   : > { %v1656_v20 = vpop.f32.mrf.mxu2  ;;  %v5274_v32 = vmul.f32 %v5718_v62, %v7192_v11  ;;  %v1289_v27 = vadd.f32 %v1288_v63, %v6841_v41  ;;  %v7203_v22 = vpop.permute.xlu0 %5138 }
 0x24e   : > { %v7196_v17 = vadd.f32 %v1868_v16, %v1656_v20  ;;  %5719 = vtanh.f32 %v1433_v3  ;;  %2140 = vmatmul.f32.gmra.mxu1 %v8799_v54  ;;  %8800 = vst [vmem:[#allocation164_spill] sm:$0xff] %v7203_v22  ;;  %v7213_v63 = vpop.permute.xlu1 %5143 }
 0x24f   : > { %1962 = vmatmul.f32.gmra.mxu0 %v8798_v37  ;;  %v5418_v24 = vadd.f32 %v5274_v32, %v5270_v8  ;;  %v8801_v32 = vld [vmem:[#allocation22_spill] sm:$0xff]  ;;  %v8802_v8 = vld [vmem:[#allocation20_spill] sm:$0xff]  ;;  %8803 = vst [vmem:[#allocation165_spill] sm:$0xff] %v7213_v63 }
 0x250   : > { %2504 = vmatmul.f32.gmra.mxu3 %v6161_v57  ;;  %2356 = vmatmul.f32.gmra.mxu2 %v6161_v57 }
 0x253   : > { %v1872_v40 = vpop.f32.mrf.mxu3  ;;  %v1436_v43 = vpop.f32.mrf.mxu1 }
 0x254   : > { %v1292_v29 = vpop.f32.mrf.mxu0  ;;  %v5720_v62 = vpop.eup %5719  ;;  %v1437_v16 = vadd.f32 %v1436_v43, %v1289_v27 }
 0x255   : > { %v1664_v20 = vpop.f32.mrf.mxu2  ;;  %v5278_v3 = vmul.f32 %v5720_v62, %v7203_v22  ;;  %v1293_v41 = vadd.f32 %v1292_v29, %v6847_v55  ;;  %v7223_v29 = vpop.permute.xlu2 %5148 }
 0x256   : > { %v7206_v11 = vadd.f32 %v1872_v40, %v1664_v20  ;;  %5721 = vtanh.f32 %v1437_v16  ;;  %2146 = vmatmul.f32.gmra.mxu1 %v8802_v8  ;;  %8806 = vst [vmem:[#allocation166_spill] sm:$0xff] %v7223_v29 }
 0x257   : > { %1967 = vmatmul.f32.gmra.mxu0 %v8801_v32  ;;  %v5419_v57 = vadd.f32 %v5418_v24, %v5278_v3  ;;  %v8804_v24 = vld [vmem:[#allocation26_spill] sm:$0xff]  ;;  %v8805_v3 = vld [vmem:[#allocation24_spill] sm:$0xff] }
 0x258   : > { %2508 = vmatmul.f32.gmra.mxu3 %v6182_v0  ;;  %2360 = vmatmul.f32.gmra.mxu2 %v6182_v0 }
 0x25b   : > { %v1876_v43 = vpop.f32.mrf.mxu3  ;;  %v1440_v37 = vpop.f32.mrf.mxu1 }
 0x25c   : > { %v1296_v27 = vpop.f32.mrf.mxu0  ;;  %v5722_v62 = vpop.eup %5721  ;;  %v1441_v40 = vadd.f32 %v1440_v37, %v1293_v41 }
 0x25d   : > { %v1672_v20 = vpop.f32.mrf.mxu2  ;;  %v5282_v16 = vmul.f32 %v5722_v62, %v7213_v63  ;;  %v1297_v55 = vadd.f32 %v1296_v27, %v6856_v5  ;;  %v7233_v27 = vpop.permute.xlu0 %5153 }
 0x25e   : > { %v7216_v22 = vadd.f32 %v1876_v43, %v1672_v20  ;;  %5723 = vtanh.f32 %v1441_v40  ;;  %2152 = vmatmul.f32.gmra.mxu1 %v8805_v3  ;;  %8809 = vst [vmem:[#allocation167_spill] sm:$0xff] %v7233_v27 }
 0x25f   : > { %1972 = vmatmul.f32.gmra.mxu0 %v8804_v24  ;;  %v5420_v0 = vadd.f32 %v5419_v57, %v5282_v16  ;;  %v8807_v57 = vld [vmem:[#allocation30_spill] sm:$0xff]  ;;  %v8808_v16 = vld [vmem:[#allocation28_spill] sm:$0xff] }
 0x260   : > { %2512 = vmatmul.f32.gmra.mxu3 %v6204_v7  ;;  %2364 = vmatmul.f32.gmra.mxu2 %v6204_v7 }
 0x263   : > { %v1880_v37 = vpop.f32.mrf.mxu3  ;;  %v1444_v32 = vpop.f32.mrf.mxu1 }
 0x264   : > { %v1300_v41 = vpop.f32.mrf.mxu0  ;;  %v5724_v62 = vpop.eup %5723  ;;  %v1445_v43 = vadd.f32 %v1444_v32, %v1297_v55 }
 0x265   : > { %v1680_v20 = vpop.f32.mrf.mxu2  ;;  %v5286_v40 = vmul.f32 %v5724_v62, %v7223_v29  ;;  %v1301_v5 = vadd.f32 %v1300_v41, %v6868_v31  ;;  %v219_v31 = vld [vmem:[%s6104_s17 + $0x30] sm:$0xff] }
 0x266   : > { %v7226_v63 = vadd.f32 %v1880_v37, %v1680_v20  ;;  %5725 = vtanh.f32 %v1445_v43  ;;  %2158 = vmatmul.f32.gmra.mxu1 %v8808_v16  ;;  %v7243_v41 = vand.u32 4294901760, %v219_v31 }
 0x267   : > { %1977 = vmatmul.f32.gmra.mxu0 %v8807_v57  ;;  %v5421_v7 = vadd.f32 %v5420_v0, %v5286_v40  ;;  %v8811_v0 = vld [vmem:[#allocation34_spill] sm:$0xff]  ;;  %v8812_v40 = vld [vmem:[#allocation32_spill] sm:$0xff] }
 0x268   : > { %2516 = vmatmul.f32.gmra.mxu3 %v6224_v14  ;;  %2368 = vmatmul.f32.gmra.mxu2 %v6224_v14 }
 0x269   : > { %2636 = vmatpush.msrb.mxu0 %v7243_v41  ;;  %3255 = vmatpush.msrb.mxu3 %v7243_v41 }
 0x26b   : > { %v1884_v32 = vpop.f32.mrf.mxu3  ;;  %v1448_v62 = vpop.f32.mrf.mxu1 }
 0x26c   : > { %v1304_v55 = vpop.f32.mrf.mxu0  ;;  %v5726_v37 = vpop.eup %5725  ;;  %v1449_v20 = vadd.f32 %v1448_v62, %v1301_v5 }
 0x26d   : > { %v1688_v43 = vpop.f32.mrf.mxu2  ;;  %v5290_v29 = vmul.f32 %v5726_v37, %v7233_v27  ;;  %v1305_v5 = vadd.f32 %v1304_v55, %v6877_v39  ;;  %v7246_v62 = vpop.permute.xlu1 %5158  ;;  %v8815_v55 = vld [vmem:[#allocation38_spill] sm:$0xff] }
 0x26e   : > { %v7236_v57 = vadd.f32 %v1884_v32, %v1688_v43  ;;  %5727 = vtanh.f32 %v1449_v20  ;;  %2164 = vmatmul.f32.gmra.mxu1 %v8812_v40  ;;  %8813 = vst [vmem:[#allocation169_spill] sm:$0xff] %v7246_v62  ;;  %v7249_v32 = vsub.f32 %v219_v31, %v7243_v41  ;;  %v8816_v31 = vld [vmem:[#allocation36_spill] sm:$0xff] }
 0x26f   : > { %1982 = vmatmul.f32.gmra.mxu0 %v8811_v0  ;;  %v5422_v14 = vadd.f32 %v5421_v7, %v5290_v29 }
 0x270   : > { %8810 = vst [vmem:[#allocation168_spill] sm:$0xff] %v7236_v57  ;;  %2520 = vmatmul.f32.gmra.mxu3 %v6244_v25  ;;  %2372 = vmatmul.f32.gmra.mxu2 %v6244_v25  ;;  %v8506_v57 = vand.u32 4294901760, %v7249_v32 }
 0x271   : > { %3074 = vmatpush.msrb.mxu2 %v7249_v32 }
 0x273   : > { %v1888_v37 = vpop.f32.mrf.mxu3  ;;  %v1452_v29 = vpop.f32.mrf.mxu1 }
 0x274   : > { %v1308_v7 = vpop.f32.mrf.mxu0  ;;  %v5728_v20 = vpop.eup %5727  ;;  %v1453_v43 = vadd.f32 %v1452_v29, %v1305_v5  ;;  %v2918_v5 = vsub.f32 %v7249_v32, %v8506_v57  ;;  %v8819_v57 = vld [vmem:[#allocation40_spill] sm:$0xff] }
 0x275   : > { %v1696_v27 = vpop.f32.mrf.mxu2  ;;  %v5294_v25 = vmul.f32 %v5728_v20, %v7246_v62  ;;  %v1309_v29 = vadd.f32 %v1308_v7, %v6886_v56 }
 0x276   : > { %v7255_v39 = vadd.f32 %v1888_v37, %v1696_v27  ;;  %5729 = vtanh.f32 %v1453_v43  ;;  %2170 = vmatmul.f32.gmra.mxu1 %v8816_v31  ;;  %v7266_v27 = vpop.permute.xlu2 %5163  ;;  %v2919_v62 = vand.u32 4294901760, %v2918_v5  ;;  %v7276_v5 = vpop.permute.xlu0 %5168 }
 0x277   : > { %1987 = vmatmul.f32.gmra.mxu0 %v8815_v55  ;;  %v5423_v0 = vadd.f32 %v5422_v14, %v5294_v25  ;;  %8817 = vst [vmem:[#allocation171_spill] sm:$0xff] %v7266_v27 }
 0x278   : > { %8814 = vst [vmem:[#allocation170_spill] sm:$0xff] %v7255_v39  ;;  %2524 = vmatmul.f32.gmra.mxu3 %v6264_v34  ;;  %2376 = vmatmul.f32.gmra.mxu2 %v6264_v34  ;;  %v8818_v34 = vld [vmem:[#allocation42_spill] sm:$0xff] }
 0x279   : > { %2920 = vmatpush.msrb.mxu1 %v2919_v62  ;;  %8820 = vst [vmem:[#allocation172_spill] sm:$0xff] %v7276_v5 }
 0x27b   : > { %v1892_v37 = vpop.f32.mrf.mxu3  ;;  %v1456_v43 = vpop.f32.mrf.mxu1 }
 0x27c   : > { %v1312_v20 = vpop.f32.mrf.mxu0  ;;  %v5730_v55 = vpop.eup %5729  ;;  %v1457_v14 = vadd.f32 %v1456_v43, %v1309_v29 }
 0x27d   : > { %v1704_v25 = vpop.f32.mrf.mxu2  ;;  %v5298_v39 = vmul.f32 %v5730_v55, %v7266_v27  ;;  %v1313_v7 = vadd.f32 %v1312_v20, %v6895_v4  ;;  %v7286_v20 = vpop.permute.xlu1 %5173 }
 0x27e   : > { %v7269_v31 = vadd.f32 %v1892_v37, %v1704_v25  ;;  %5731 = vtanh.f32 %v1457_v14  ;;  %2176 = vmatmul.f32.gmra.mxu1 %v8819_v57  ;;  %8823 = vst [vmem:[#allocation173_spill] sm:$0xff] %v7286_v20 }
 0x27f   : > { %1992 = vmatmul.f32.gmra.mxu0 %v8818_v34  ;;  %v5424_v56 = vadd.f32 %v5423_v0, %v5298_v39  ;;  %v8821_v0 = vld [vmem:[#allocation46_spill] sm:$0xff]  ;;  %v8822_v39 = vld [vmem:[#allocation44_spill] sm:$0xff] }
 0x280   : > { %2528 = vmatmul.f32.gmra.mxu3 %v6284_v46  ;;  %2380 = vmatmul.f32.gmra.mxu2 %v6284_v46 }
 0x283   : > { %v1896_v29 = vpop.f32.mrf.mxu3  ;;  %v1460_v55 = vpop.f32.mrf.mxu1 }
 0x284   : > { %v1316_v43 = vpop.f32.mrf.mxu0  ;;  %v5732_v37 = vpop.eup %5731  ;;  %v1461_v25 = vadd.f32 %v1460_v55, %v1313_v7 }
 0x285   : > { %v1712_v62 = vpop.f32.mrf.mxu2  ;;  %v5302_v14 = vmul.f32 %v5732_v37, %v7276_v5  ;;  %v1317_v4 = vadd.f32 %v1316_v43, %v6904_v10  ;;  %v7296_v43 = vpop.permute.xlu2 %5178 }
 0x286   : > { %v7279_v27 = vadd.f32 %v1896_v29, %v1712_v62  ;;  %5733 = vtanh.f32 %v1461_v25  ;;  %2182 = vmatmul.f32.gmra.mxu1 %v8822_v39  ;;  %8826 = vst [vmem:[#allocation174_spill] sm:$0xff] %v7296_v43 }
 0x287   : > { %1997 = vmatmul.f32.gmra.mxu0 %v8821_v0  ;;  %v5425_v46 = vadd.f32 %v5424_v56, %v5302_v14  ;;  %v8824_v56 = vld [vmem:[#allocation50_spill] sm:$0xff]  ;;  %v8825_v14 = vld [vmem:[#allocation48_spill] sm:$0xff] }
 0x288   : > { %2532 = vmatmul.f32.gmra.mxu3 %v6312_v61  ;;  %2384 = vmatmul.f32.gmra.mxu2 %v6312_v61 }
 0x28b   : > { %v1900_v7 = vpop.f32.mrf.mxu3  ;;  %v1464_v34 = vpop.f32.mrf.mxu1 }
 0x28c   : > { %v1320_v55 = vpop.f32.mrf.mxu0  ;;  %v5734_v37 = vpop.eup %5733  ;;  %v1465_v29 = vadd.f32 %v1464_v34, %v1317_v4 }
 0x28d   : > { %v1720_v62 = vpop.f32.mrf.mxu2  ;;  %v5306_v25 = vmul.f32 %v5734_v37, %v7286_v20  ;;  %v1321_v10 = vadd.f32 %v1320_v55, %v6913_v36  ;;  %v7306_v55 = vpop.permute.xlu0 %5183 }
 0x28e   : > { %v7289_v5 = vadd.f32 %v1900_v7, %v1720_v62  ;;  %5735 = vtanh.f32 %v1465_v29  ;;  %2188 = vmatmul.f32.gmra.mxu1 %v8825_v14  ;;  %8829 = vst [vmem:[#allocation175_spill] sm:$0xff] %v7306_v55 }
 0x28f   : > { %2002 = vmatmul.f32.gmra.mxu0 %v8824_v56  ;;  %v5426_v61 = vadd.f32 %v5425_v46, %v5306_v25  ;;  %v8827_v46 = vld [vmem:[#allocation54_spill] sm:$0xff]  ;;  %v8828_v25 = vld [vmem:[#allocation52_spill] sm:$0xff] }
 0x290   : > { %2536 = vmatmul.f32.gmra.mxu3 %v6337_v26  ;;  %2388 = vmatmul.f32.gmra.mxu2 %v6337_v26 }
 0x293   : > { %v1904_v34 = vpop.f32.mrf.mxu3  ;;  %v1468_v0 = vpop.f32.mrf.mxu1 }
 0x294   : > { %v1324_v4 = vpop.f32.mrf.mxu0  ;;  %v5736_v37 = vpop.eup %5735  ;;  %v1469_v7 = vadd.f32 %v1468_v0, %v1321_v10 }
 0x295   : > { %v1728_v62 = vpop.f32.mrf.mxu2  ;;  %v5310_v29 = vmul.f32 %v5736_v37, %v7296_v43  ;;  %v1325_v36 = vadd.f32 %v1324_v4, %v6925_v35  ;;  %v7316_v4 = vpop.permute.xlu1 %5188 }
 0x296   : > { %v7299_v20 = vadd.f32 %v1904_v34, %v1728_v62  ;;  %5737 = vtanh.f32 %v1469_v7  ;;  %2194 = vmatmul.f32.gmra.mxu1 %v8828_v25  ;;  %8833 = vst [vmem:[#allocation177_spill] sm:$0xff] %v7316_v4 }
 0x297   : > { %2007 = vmatmul.f32.gmra.mxu0 %v8827_v46  ;;  %v5427_v26 = vadd.f32 %v5426_v61, %v5310_v29  ;;  %v8831_v61 = vld [vmem:[#allocation58_spill] sm:$0xff]  ;;  %v8832_v29 = vld [vmem:[#allocation56_spill] sm:$0xff] }
 0x298   : > { %2540 = vmatmul.f32.gmra.mxu3 %v6357_v48  ;;  %2392 = vmatmul.f32.gmra.mxu2 %v6357_v48 }
 0x29b   : > { %v1908_v0 = vpop.f32.mrf.mxu3  ;;  %v1472_v56 = vpop.f32.mrf.mxu1 }
 0x29c   : > { %v1328_v10 = vpop.f32.mrf.mxu0  ;;  %v5738_v37 = vpop.eup %5737  ;;  %v1473_v34 = vadd.f32 %v1472_v56, %v1325_v36 }
 0x29d   : > { %v1736_v62 = vpop.f32.mrf.mxu2  ;;  %v5314_v7 = vmul.f32 %v5738_v37, %v7306_v55  ;;  %v1329_v35 = vadd.f32 %v1328_v10, %v6934_v19 }
 0x29e   : > { %v7309_v43 = vadd.f32 %v1908_v0, %v1736_v62  ;;  %5739 = vtanh.f32 %v1473_v34  ;;  %2200 = vmatmul.f32.gmra.mxu1 %v8832_v29 }
 0x29f   : > { %2012 = vmatmul.f32.gmra.mxu0 %v8831_v61  ;;  %v5428_v48 = vadd.f32 %v5427_v26, %v5314_v7  ;;  %v8835_v26 = vld [vmem:[#allocation62_spill] sm:$0xff]  ;;  %v8836_v7 = vld [vmem:[#allocation60_spill] sm:$0xff] }
 0x2a0   : > { %8830 = vst [vmem:[#allocation176_spill] sm:$0xff] %v7309_v43  ;;  %2544 = vmatmul.f32.gmra.mxu3 %v6377_v15  ;;  %2396 = vmatmul.f32.gmra.mxu2 %v6377_v15  ;;  %v7326_v15 = vpop.permute.xlu2 %5193 }
 0x2a1   : > { %8837 = vst [vmem:[#allocation179_spill] sm:$0xff] %v7326_v15 }
 0x2a3   : > { %v1912_v56 = vpop.f32.mrf.mxu3  ;;  %v1476_v46 = vpop.f32.mrf.mxu1 }
 0x2a4   : > { %v1332_v36 = vpop.f32.mrf.mxu0  ;;  %v5740_v37 = vpop.eup %5739  ;;  %v1477_v0 = vadd.f32 %v1476_v46, %v1329_v35 }
 0x2a5   : > { %v1744_v62 = vpop.f32.mrf.mxu2  ;;  %v5318_v34 = vmul.f32 %v5740_v37, %v7316_v4  ;;  %v1333_v10 = vadd.f32 %v1332_v36, %v6943_v23  ;;  %v7336_v36 = vpop.permute.xlu0 %5198 }
 0x2a6   : > { %v7319_v55 = vadd.f32 %v1912_v56, %v1744_v62  ;;  %5741 = vtanh.f32 %v1477_v0  ;;  %2206 = vmatmul.f32.gmra.mxu1 %v8836_v7  ;;  %8841 = vst [vmem:[#allocation181_spill] sm:$0xff] %v7336_v36 }
 0x2a7   : > { %2017 = vmatmul.f32.gmra.mxu0 %v8835_v26  ;;  %v5429_v19 = vadd.f32 %v5428_v48, %v5318_v34  ;;  %v8839_v26 = vld [vmem:[#allocation66_spill] sm:$0xff]  ;;  %v8840_v48 = vld [vmem:[#allocation64_spill] sm:$0xff] }
 0x2a8   : > { %8834 = vst [vmem:[#allocation178_spill] sm:$0xff] %v7319_v55  ;;  %2548 = vmatmul.f32.gmra.mxu3 %v6397_v42  ;;  %2400 = vmatmul.f32.gmra.mxu2 %v6397_v42  ;;  %v8851_v55 = vld [vmem:[#allocation86_spill] sm:$0xff] }
 0x2ab   : > { %v1916_v46 = vpop.f32.mrf.mxu3  ;;  %v1480_v61 = vpop.f32.mrf.mxu1 }
 0x2ac   : > { %v1336_v35 = vpop.f32.mrf.mxu0  ;;  %v5742_v37 = vpop.eup %5741  ;;  %v1481_v56 = vadd.f32 %v1480_v61, %v1333_v10  ;;  %v5349_v10 = vrot.slane %v7178_v12, 4 }
 0x2ad   : > { %v1752_v62 = vpop.f32.mrf.mxu2  ;;  %v5322_v0 = vmul.f32 %v5742_v37, %v7326_v15  ;;  %v1337_v23 = vadd.f32 %v1336_v35, %v6952_v58 }
 0x2ae   : > { %v7329_v4 = vadd.f32 %v1916_v46, %v1752_v62  ;;  %5743 = vtanh.f32 %v1481_v56  ;;  %2212 = vmatmul.f32.gmra.mxu1 %v8840_v48  ;;  %v5350_v58 = vadd.f32 %v5349_v10, %v7178_v12  ;;  %v8848_v12 = vld [vmem:[#allocation74_spill] sm:$0xff] }
 0x2af   : > { %2022 = vmatmul.f32.gmra.mxu0 %v8839_v26  ;;  %v5430_v34 = vadd.f32 %v5429_v19, %v5322_v0  ;;  %v8843_v19 = vld [vmem:[#allocation70_spill] sm:$0xff]  ;;  %v8844_v0 = vld [vmem:[#allocation68_spill] sm:$0xff] }
 0x2b0   : > { %8838 = vst [vmem:[#allocation180_spill] sm:$0xff] %v7329_v4  ;;  %2552 = vmatmul.f32.gmra.mxu3 %v6417_v59  ;;  %2404 = vmatmul.f32.gmra.mxu2 %v6417_v59  ;;  %v8845_v59 = vld [vmem:[#allocation69_spill] sm:$0xff] }
 0x2b1   : > { %v8846_v4 = vld [vmem:[#allocation141_spill] sm:$0xff] }
 0x2b3   : > { %v1920_v61 = vpop.f32.mrf.mxu3  ;;  %v1484_v37 = vpop.f32.mrf.mxu1 }
 0x2b4   : > { %v1948_v46 = vpop.f32.mrf.mxu0  ;;  %v5744_v62 = vpop.eup %5743  ;;  %v1485_v56 = vadd.f32 %v1484_v37, %v1337_v23 }
 0x2b5   : > { %v1760_v15 = vpop.f32.mrf.mxu2  ;;  %v5326_v26 = vmul.f32 %v5744_v62, %v7336_v36  ;;  %v1949_v48 = vadd.f32 %v1948_v46, %v8846_v4  ;;  %v7348_v23 = vpop.permute.xlu1 %5203  ;;  %v5351_v62 = vrot.slane %v5350_v58, 2 }
 0x2b6   : > { %v7340_v42 = vadd.f32 %v1920_v61, %v1760_v15  ;;  %5745 = vtanh.f32 %v1485_v56  ;;  %2218 = vmatmul.f32.gmra.mxu1 %v8844_v0  ;;  %8847 = vst [vmem:[#allocation141_spill] sm:$0xff] %v7348_v23 }
 0x2b7   : > { %2027 = vmatmul.f32.gmra.mxu0 %v8843_v19  ;;  %v5431_v35 = vadd.f32 %v5430_v34, %v5326_v26  ;;  %v8849_v26 = vld [vmem:[#allocation72_spill] sm:$0xff]  ;;  %v5352_v34 = vadd.f32 %v5351_v62, %v5350_v58  ;;  %v8852_v58 = vld [vmem:[#allocation78_spill] sm:$0xff] }
 0x2b8   : > { %8842 = vst [vmem:[#allocation182_spill] sm:$0xff] %v7340_v42  ;;  %2556 = vmatmul.f32.gmra.mxu3 %v8845_v59  ;;  %2408 = vmatmul.f32.gmra.mxu2 %v8845_v59  ;;  %v8850_v59 = vld [vmem:[#allocation73_spill] sm:$0xff] }
 0x2bb   : > { %v2493_v37 = vpop.f32.mrf.mxu3  ;;  %v2129_v61 = vpop.f32.mrf.mxu1 }
 0x2bc   : > { %v1953_v15 = vpop.f32.mrf.mxu0  ;;  %v5746_v56 = vpop.eup %5745  ;;  %v2130_v36 = vadd.f32 %v2129_v61, %v1949_v48  ;;  %v5353_v48 = vrot.slane %v5352_v34, 1 }
 0x2bd   : > { %v2345_v19 = vpop.f32.mrf.mxu2  ;;  %v5330_v42 = vmul.f32 %v5746_v56, %v7348_v23  ;;  %v1954_v7 = vadd.f32 %v1953_v15, %v8851_v55 }
 0x2be   : > { %v2346_v0 = vadd.f32 %v2345_v19, %v2130_v36  ;;  %2224 = vmatmul.f32.gmra.mxu1 %v8849_v26 }
 0x2bf   : > { %2032 = vmatmul.f32.gmra.mxu0 %v8848_v12  ;;  %v5432_v10 = vadd.f32 %v5431_v35, %v5330_v42  ;;  %v8853_v42 = vld [vmem:[#allocation76_spill] sm:$0xff] }
 0x2c0   : > { %2560 = vmatmul.f32.gmra.mxu3 %v8850_v59  ;;  %v2494_v4 = vadd.f32 %v2493_v37, %v2346_v0  ;;  %2412 = vmatmul.f32.gmra.mxu2 %v8850_v59  ;;  %v5354_v0 = vadd.f32 %v5353_v48, %v5352_v34 }
 0x2c1   : > { %v5433_v46 = vrot.slane %v5432_v10, 4 }
 0x2c2   : > { %5747 = vtanh.f32 %v2494_v4 }
 0x2c3   : > { %v2497_v43 = vpop.f32.mrf.mxu3  ;;  %v5434_v61 = vadd.f32 %v5433_v46, %v5432_v10  ;;  %v2135_v56 = vpop.f32.mrf.mxu1  ;;  %v5939_v10 = vld [vmem:[%s6104_s17 + $0x40] sm:$0xff] }
 0x2c4   : > { %v1958_v29 = vpop.f32.mrf.mxu0  ;;  %v2136_v36 = vadd.f32 %v2135_v56, %v1954_v7  ;;  %v5502_v46 = vmul.f32 %v5939_v10, %v5354_v0  ;;  %v215_v10 = vld [vmem:[%s6104_s17 + $0x10] sm:$0xff] }
 0x2c5   : > { %v2349_v19 = vpop.f32.mrf.mxu2  ;;  %v5435_v23 = vrot.slane %v5434_v61, 2  ;;  %v1959_v62 = vadd.f32 %v1958_v29, %v6982_v33 }
 0x2c6   : > { %v2350_v12 = vadd.f32 %v2349_v19, %v2136_v36  ;;  %2230 = vmatmul.f32.gmra.mxu1 %v8853_v42 }
 0x2c7   : > { %2037 = vmatmul.f32.gmra.mxu0 %v8852_v58  ;;  %v5436_v35 = vadd.f32 %v5435_v23, %v5434_v61  ;;  %v8857_v61 = vld [vmem:[#allocation143_spill] sm:$0xff] }
 0x2c8   : > { %2564 = vmatmul.f32.gmra.mxu3 %v8738_v45  ;;  %v2498_v55 = vadd.f32 %v2497_v43, %v2350_v12  ;;  %2416 = vmatmul.f32.gmra.mxu2 %v8738_v45  ;;  %v5748_v23 = vpop.eup %5747  ;;  %v8855_v43 = vld [vmem:[#allocation81_spill] sm:$0xff]  ;;  %v8856_v12 = vld [vmem:[#allocation80_spill] sm:$0xff] }
 0x2c9   : > { %v5437_v37 = vrot.slane %v5436_v35, 1  ;;  %v5207_v48 = vmul.f32 %v5748_v23, %v6965_v38  ;;  %v8861_v23 = vld [vmem:[#allocation84_spill] sm:$0xff] }
 0x2ca   : > { %5749 = vtanh.f32 %v2498_v55 }
 0x2cb   : > { %v2501_v7 = vpop.f32.mrf.mxu3  ;;  %v5438_v15 = vadd.f32 %v5437_v37, %v5436_v35  ;;  %v2141_v36 = vpop.f32.mrf.mxu1  ;;  %v8858_v35 = vld [vmem:[#allocation145_spill] sm:$0xff] }
 0x2cc   : > { %v1963_v56 = vpop.f32.mrf.mxu0  ;;  %v2142_v19 = vadd.f32 %v2141_v36, %v1959_v62 }
 0x2cd   : > { %v2353_v58 = vpop.f32.mrf.mxu2  ;;  %v7362_v34 = vadd.f32 %v5502_v46, %v5438_v15  ;;  %v1964_v55 = vadd.f32 %v1963_v56, %v8858_v35  ;;  %v8863_v35 = vand.u32 4294901760, %v7115_v21  ;;  %v8867_v21 = vld [vmem:[#allocation88_spill] sm:$0xff] }
 0x2ce   : > { %v2354_v4 = vadd.f32 %v2353_v58, %v2142_v19  ;;  %2236 = vmatmul.f32.gmra.mxu1 %v8856_v12  ;;  %v2637_v19 = vand.u32 4294901760, %v215_v10 }
 0x2cf   : > { %8854 = vst [vmem:[#allocation86_spill] sm:$0xff] %v7362_v34  ;;  %2042 = vmatmul.f32.gmra.mxu0 %v8855_v43  ;;  %v8859_v43 = vld [vmem:[#allocation85_spill] sm:$0xff] }
 0x2d0   : > { %2568 = vmatmul.f32.gmra.mxu3 %v6497_v6  ;;  %v5750_v33 = vpop.eup %5749  ;;  %v2502_v29 = vadd.f32 %v2501_v7, %v2354_v4  ;;  %2420 = vmatmul.f32.gmra.mxu2 %v6497_v6  ;;  %v8860_v7 = vld [vmem:[#allocation83_spill] sm:$0xff]  ;;  %v2922_v4 = vsub.f32 %v215_v10, %v2637_v19 }
 0x2d1   : > { %v5211_v0 = vmul.f32 %v5750_v33, %v8857_v61  ;;  %2638 = vmatpush.msrb.mxu0 %v2637_v19  ;;  %3257 = vmatpush.msrb.mxu3 %v2637_v19 }
 0x2d2   : > { %5751 = vtanh.f32 %v2502_v29  ;;  %v2923_v29 = vand.u32 4294901760, %v2922_v4  ;;  %3077 = vmatpush.msrb.mxu2 %v2922_v4 }
 0x2d3   : > { %v2505_v37 = vpop.f32.mrf.mxu3  ;;  %v5355_v62 = vadd.f32 %v5211_v0, %v5207_v48  ;;  %v2147_v15 = vpop.f32.mrf.mxu1  ;;  %v8862_v48 = vld [vmem:[#allocation144_spill] sm:$0xff]  ;;  %3467 = vmatpush.msra.mxu0 %v8863_v35  ;;  %v8868_v35 = vld [vmem:[#allocation89_spill] sm:$0xff] }
 0x2d4   : > { %v1968_v58 = vpop.f32.mrf.mxu0  ;;  %v2148_v46 = vadd.f32 %v2147_v15, %v1964_v55  ;;  %v8864_v55 = vld [vmem:[#allocation146_spill] sm:$0xff]  ;;  %v2924_v10 = vsub.f32 %v2922_v4, %v2923_v29 }
 0x2d5   : > { %v2357_v36 = vpop.f32.mrf.mxu2  ;;  %v1969_v15 = vadd.f32 %v1968_v58, %v8864_v55 }
 0x2d6   : > { %v2358_v34 = vadd.f32 %v2357_v36, %v2148_v46  ;;  %2242 = vmatmul.f32.gmra.mxu1 %v8860_v7 }
 0x2d7   : > { %2047 = vmatmul.f32.gmra.mxu0 %v8859_v43  ;;  %v2925_v43 = vand.u32 4294901760, %v2924_v10 }
 0x2d8   : > { %2572 = vmatmul.f32.gmra.mxu3 %v8861_v23  ;;  %v5752_v33 = vpop.eup %5751  ;;  %v2506_v56 = vadd.f32 %v2505_v37, %v2358_v34  ;;  %2424 = vmatmul.f32.gmra.mxu2 %v8861_v23  ;;  %v8865_v34 = vand.u32 4294901760, %v7249_v32  ;;  %v8869_v32 = vld [vmem:[#allocation99_spill] sm:$0xff] }
 0x2d9   : > { %v5215_v0 = vmul.f32 %v5752_v33, %v8862_v48  ;;  %v8866_v48 = vld [vmem:[#allocation90_spill] sm:$0xff]  ;;  %2926 = vmatpush.msrb.mxu1 %v2925_v43 }
 0x2da   : > { %5753 = vtanh.f32 %v2506_v56  ;;  %3471 = vmatpush.msra.mxu0 %v8865_v34  ;;  %v8872_v34 = vld [vmem:[#allocation92_spill] sm:$0xff] }
 0x2db   : > { %v2509_v46 = vpop.f32.mrf.mxu3  ;;  %v5356_v36 = vadd.f32 %v5355_v62, %v5215_v0  ;;  %v2153_v38 = vpop.f32.mrf.mxu1  ;;  %3619 = vmatpush.msra.mxu1 %v7109_v28  ;;  %v8873_v28 = vld [vmem:[#allocation93_spill] sm:$0xff] }
 0x2dc   : > { %v1973_v61 = vpop.f32.mrf.mxu0  ;;  %v2154_v37 = vadd.f32 %v2153_v38, %v1969_v15  ;;  %3475 = vmatpush.msra.mxu0 %v2923_v29  ;;  %v8870_v38 = vld [vmem:[#allocation104_spill] sm:$0xff] }
 0x2dd   : > { %v2361_v23 = vpop.f32.mrf.mxu2  ;;  %v1974_v56 = vadd.f32 %v1973_v61, %v8870_v38  ;;  %3621 = vmatpush.msra.mxu1 %v7243_v41  ;;  %v8874_v61 = vld [vmem:[#allocation147_spill] sm:$0xff]  ;;  %v8875_v41 = vld [vmem:[#allocation148_spill] sm:$0xff] }
 0x2de   : > { %v2362_v33 = vadd.f32 %v2361_v23, %v2154_v37  ;;  %2248 = vmatmul.f32.gmra.mxu1 %v8867_v21 }
 0x2df   : > { %2052 = vmatmul.f32.gmra.mxu0 %v8866_v48  ;;  %3623 = vmatpush.msra.mxu1 %v2637_v19 }
 0x2e0   : > { %2576 = vmatmul.f32.gmra.mxu3 %v8868_v35  ;;  %v5754_v58 = vpop.eup %5753  ;;  %v2510_v4 = vadd.f32 %v2509_v46, %v2362_v33  ;;  %2428 = vmatmul.f32.gmra.mxu2 %v8868_v35  ;;  %v8871_v46 = vld [vmem:[#allocation94_spill] sm:$0xff] }
 0x2e1   : > { %v5219_v62 = vmul.f32 %v5754_v58, %v8869_v32  ;;  %v8877_v32 = vld [vmem:[#allocation96_spill] sm:$0xff] }
 0x2e2   : > { %5755 = vtanh.f32 %v2510_v4 }
 0x2e3   : > { %v2513_v29 = vpop.f32.mrf.mxu3  ;;  %v5357_v23 = vadd.f32 %v5356_v36, %v5219_v62  ;;  %v2159_v55 = vpop.f32.mrf.mxu1 }
 0x2e4   : > { %v1978_v0 = vpop.f32.mrf.mxu0  ;;  %v2160_v15 = vadd.f32 %v2159_v55, %v1974_v56 }
 0x2e5   : > { %v2365_v10 = vpop.f32.mrf.mxu2  ;;  %v1979_v36 = vadd.f32 %v1978_v0, %v8875_v41 }
 0x2e6   : > { %v2366_v43 = vadd.f32 %v2365_v10, %v2160_v15  ;;  %2254 = vmatmul.f32.gmra.mxu1 %v8872_v34  ;;  %v8876_v10 = vld [vmem:[#allocation98_spill] sm:$0xff] }
 0x2e7   : > { %2057 = vmatmul.f32.gmra.mxu0 %v8871_v46  ;;  %v8878_v46 = vld [vmem:[#allocation97_spill] sm:$0xff] }
 0x2e8   : > { %2580 = vmatmul.f32.gmra.mxu3 %v8873_v28  ;;  %v5756_v37 = vpop.eup %5755  ;;  %v2514_v33 = vadd.f32 %v2513_v29, %v2366_v43  ;;  %2432 = vmatmul.f32.gmra.mxu2 %v8873_v28  ;;  %v8882_v28 = vld [vmem:[#allocation101_spill] sm:$0xff] }
 0x2e9   : > { %v5223_v58 = vmul.f32 %v5756_v37, %v8874_v61  ;;  %v8879_v37 = vld [vmem:[#allocation109_spill] sm:$0xff] }
 0x2ea   : > { %5757 = vtanh.f32 %v2514_v33  ;;  %v8880_v33 = vld [vmem:[#allocation149_spill] sm:$0xff] }
 0x2eb   : > { %v2517_v4 = vpop.f32.mrf.mxu3  ;;  %v5358_v62 = vadd.f32 %v5357_v23, %v5223_v58  ;;  %v2165_v19 = vpop.f32.mrf.mxu1 }
 0x2ec   : > { %v1983_v38 = vpop.f32.mrf.mxu0  ;;  %v2166_v56 = vadd.f32 %v2165_v19, %v1979_v36 }
 0x2ed   : > { %v2369_v55 = vpop.f32.mrf.mxu2  ;;  %v1984_v41 = vadd.f32 %v1983_v38, %v8880_v33 }
 0x2ee   : > { %v2370_v15 = vadd.f32 %v2369_v55, %v2166_v56  ;;  %2260 = vmatmul.f32.gmra.mxu1 %v8877_v32  ;;  %v8883_v32 = vld [vmem:[#allocation102_spill] sm:$0xff] }
 0x2ef   : > { %2062 = vmatmul.f32.gmra.mxu0 %v8876_v10  ;;  %v8881_v10 = vld [vmem:[#allocation103_spill] sm:$0xff] }
 0x2f0   : > { %2584 = vmatmul.f32.gmra.mxu3 %v8878_v46  ;;  %v5758_v29 = vpop.eup %5757  ;;  %v2518_v43 = vadd.f32 %v2517_v4, %v2370_v15  ;;  %2436 = vmatmul.f32.gmra.mxu2 %v8878_v46  ;;  %v8887_v46 = vld [vmem:[#allocation106_spill] sm:$0xff] }
 0x2f1   : > { %v5227_v0 = vmul.f32 %v5758_v29, %v8879_v37  ;;  %v8884_v29 = vld [vmem:[#allocation114_spill] sm:$0xff] }
 0x2f2   : > { %5759 = vtanh.f32 %v2518_v43  ;;  %v8885_v43 = vld [vmem:[#allocation150_spill] sm:$0xff] }
 0x2f3   : > { %v2521_v23 = vpop.f32.mrf.mxu3  ;;  %v5359_v58 = vadd.f32 %v5358_v62, %v5227_v0  ;;  %v2171_v19 = vpop.f32.mrf.mxu1 }
 0x2f4   : > { %v1988_v36 = vpop.f32.mrf.mxu0  ;;  %v2172_v56 = vadd.f32 %v2171_v19, %v1984_v41 }
 0x2f5   : > { %v2373_v55 = vpop.f32.mrf.mxu2  ;;  %v1989_v33 = vadd.f32 %v1988_v36, %v8885_v43 }
 0x2f6   : > { %v2374_v61 = vadd.f32 %v2373_v55, %v2172_v56  ;;  %2266 = vmatmul.f32.gmra.mxu1 %v8882_v28  ;;  %v8888_v28 = vld [vmem:[#allocation107_spill] sm:$0xff] }
 0x2f7   : > { %2067 = vmatmul.f32.gmra.mxu0 %v8881_v10  ;;  %v8886_v10 = vld [vmem:[#allocation108_spill] sm:$0xff] }
 0x2f8   : > { %2588 = vmatmul.f32.gmra.mxu3 %v8883_v32  ;;  %v5760_v4 = vpop.eup %5759  ;;  %v2522_v15 = vadd.f32 %v2521_v23, %v2374_v61  ;;  %2440 = vmatmul.f32.gmra.mxu2 %v8883_v32  ;;  %v8892_v32 = vld [vmem:[#allocation111_spill] sm:$0xff] }
 0x2f9   : > { %v5231_v38 = vmul.f32 %v5760_v4, %v8884_v29  ;;  %v8889_v4 = vld [vmem:[#allocation119_spill] sm:$0xff] }
 0x2fa   : > { %5761 = vtanh.f32 %v2522_v15  ;;  %v8890_v15 = vld [vmem:[#allocation151_spill] sm:$0xff] }
 0x2fb   : > { %v2525_v62 = vpop.f32.mrf.mxu3  ;;  %v5360_v0 = vadd.f32 %v5359_v58, %v5231_v38  ;;  %v2177_v19 = vpop.f32.mrf.mxu1 }
 0x2fc   : > { %v1993_v41 = vpop.f32.mrf.mxu0  ;;  %v2178_v56 = vadd.f32 %v2177_v19, %v1989_v33 }
 0x2fd   : > { %v2377_v55 = vpop.f32.mrf.mxu2  ;;  %v1994_v43 = vadd.f32 %v1993_v41, %v8890_v15 }
 0x2fe   : > { %v2378_v37 = vadd.f32 %v2377_v55, %v2178_v56  ;;  %2272 = vmatmul.f32.gmra.mxu1 %v8887_v46 }
 0x2ff   : > { %2072 = vmatmul.f32.gmra.mxu0 %v8886_v10  ;;  %v8891_v10 = vld [vmem:[#allocation113_spill] sm:$0xff] }
 0x300   : > { %2592 = vmatmul.f32.gmra.mxu3 %v8888_v28  ;;  %v5762_v61 = vpop.eup %5761  ;;  %v2526_v23 = vadd.f32 %v2525_v62, %v2378_v37  ;;  %2444 = vmatmul.f32.gmra.mxu2 %v8888_v28 }
 0x301   : > { %v5235_v36 = vmul.f32 %v5762_v61, %v8889_v4  ;;  %v8893_v61 = vld [vmem:[#allocation124_spill] sm:$0xff]  ;;  %v8894_v4 = vld [vmem:[#allocation118_spill] sm:$0xff] }
 0x302   : > { %5763 = vtanh.f32 %v2526_v23 }
 0x303   : > { %v2529_v58 = vpop.f32.mrf.mxu3  ;;  %v5361_v38 = vadd.f32 %v5360_v0, %v5235_v36  ;;  %v2183_v19 = vpop.f32.mrf.mxu1 }
 0x304   : > { %v1998_v33 = vpop.f32.mrf.mxu0  ;;  %v2184_v56 = vadd.f32 %v2183_v19, %v1994_v43 }
 0x305   : > { %v2381_v55 = vpop.f32.mrf.mxu2  ;;  %v1999_v23 = vadd.f32 %v1998_v33, %v7086_v44  ;;  %v8897_v33 = vld [vmem:[#allocation153_spill] sm:$0xff] }
 0x306   : > { %v2382_v29 = vadd.f32 %v2381_v55, %v2184_v56  ;;  %2278 = vmatmul.f32.gmra.mxu1 %v8892_v32 }
 0x307   : > { %2077 = vmatmul.f32.gmra.mxu0 %v8891_v10  ;;  %v8895_v10 = vld [vmem:[#allocation116_spill] sm:$0xff] }
 0x308   : > { %2596 = vmatmul.f32.gmra.mxu3 %v8773_v60  ;;  %v5764_v37 = vpop.eup %5763  ;;  %v2530_v62 = vadd.f32 %v2529_v58, %v2382_v29  ;;  %2448 = vmatmul.f32.gmra.mxu2 %v8773_v60  ;;  %v8899_v60 = vld [vmem:[#allocation121_spill] sm:$0xff] }
 0x309   : > { %v5239_v41 = vmul.f32 %v5764_v37, %v8893_v61  ;;  %v8896_v37 = vld [vmem:[#allocation129_spill] sm:$0xff] }
 0x30a   : > { %5765 = vtanh.f32 %v2530_v62 }
 0x30b   : > { %v2533_v0 = vpop.f32.mrf.mxu3  ;;  %v5362_v36 = vadd.f32 %v5361_v38, %v5239_v41  ;;  %v2189_v43 = vpop.f32.mrf.mxu1 }
 0x30c   : > { %v2003_v15 = vpop.f32.mrf.mxu0  ;;  %v2190_v19 = vadd.f32 %v2189_v43, %v1999_v23 }
 0x30d   : > { %v2385_v56 = vpop.f32.mrf.mxu2  ;;  %v2004_v62 = vadd.f32 %v2003_v15, %v8897_v33 }
 0x30e   : > { %v2386_v55 = vadd.f32 %v2385_v56, %v2190_v19  ;;  %2284 = vmatmul.f32.gmra.mxu1 %v8895_v10 }
 0x30f   : > { %2082 = vmatmul.f32.gmra.mxu0 %v8894_v4  ;;  %v8898_v4 = vld [vmem:[#allocation123_spill] sm:$0xff] }
 0x310   : > { %2600 = vmatmul.f32.gmra.mxu3 %v8777_v18  ;;  %v5766_v29 = vpop.eup %5765  ;;  %v2534_v58 = vadd.f32 %v2533_v0, %v2386_v55  ;;  %2452 = vmatmul.f32.gmra.mxu2 %v8777_v18  ;;  %v8903_v18 = vld [vmem:[#allocation126_spill] sm:$0xff] }
 0x311   : > { %v5243_v44 = vmul.f32 %v5766_v29, %v8896_v37  ;;  %v8900_v29 = vld [vmem:[#allocation152_spill] sm:$0xff] }
 0x312   : > { %5767 = vtanh.f32 %v2534_v58  ;;  %v8901_v58 = vld [vmem:[#allocation155_spill] sm:$0xff] }
 0x313   : > { %v2537_v38 = vpop.f32.mrf.mxu3  ;;  %v5363_v41 = vadd.f32 %v5362_v36, %v5243_v44  ;;  %v2195_v43 = vpop.f32.mrf.mxu1 }
 0x314   : > { %v2008_v23 = vpop.f32.mrf.mxu0  ;;  %v2196_v19 = vadd.f32 %v2195_v43, %v2004_v62 }
 0x315   : > { %v2389_v56 = vpop.f32.mrf.mxu2  ;;  %v2009_v33 = vadd.f32 %v2008_v23, %v8901_v58 }
 0x316   : > { %v2390_v61 = vadd.f32 %v2389_v56, %v2196_v19  ;;  %2290 = vmatmul.f32.gmra.mxu1 %v8899_v60 }
 0x317   : > { %2087 = vmatmul.f32.gmra.mxu0 %v8898_v4  ;;  %v8902_v4 = vld [vmem:[#allocation128_spill] sm:$0xff] }
 0x318   : > { %2604 = vmatmul.f32.gmra.mxu3 %v6702_v53  ;;  %v5768_v0 = vpop.eup %5767  ;;  %v2538_v55 = vadd.f32 %v2537_v38, %v2390_v61  ;;  %2456 = vmatmul.f32.gmra.mxu2 %v6702_v53 }
 0x319   : > { %v5247_v15 = vmul.f32 %v5768_v0, %v8900_v29  ;;  %v8904_v0 = vld [vmem:[#allocation154_spill] sm:$0xff]  ;;  %v8905_v29 = vld [vmem:[#allocation133_spill] sm:$0xff] }
 0x31a   : > { %5769 = vtanh.f32 %v2538_v55 }
 0x31b   : > { %v2541_v36 = vpop.f32.mrf.mxu3  ;;  %v5364_v44 = vadd.f32 %v5363_v41, %v5247_v15  ;;  %v2201_v43 = vpop.f32.mrf.mxu1 }
 0x31c   : > { %v2013_v62 = vpop.f32.mrf.mxu0  ;;  %v2202_v19 = vadd.f32 %v2201_v43, %v2009_v33 }
 0x31d   : > { %v2393_v56 = vpop.f32.mrf.mxu2  ;;  %v2014_v55 = vadd.f32 %v2013_v62, %v7134_v52  ;;  %v8907_v52 = vld [vmem:[#allocation156_spill] sm:$0xff] }
 0x31e   : > { %v2394_v37 = vadd.f32 %v2393_v56, %v2202_v19  ;;  %2296 = vmatmul.f32.gmra.mxu1 %v8903_v18 }
 0x31f   : > { %2092 = vmatmul.f32.gmra.mxu0 %v8902_v4  ;;  %v8906_v4 = vld [vmem:[#allocation131_spill] sm:$0xff] }
 0x320   : > { %2608 = vmatmul.f32.gmra.mxu3 %v6724_v50  ;;  %v5770_v61 = vpop.eup %5769  ;;  %v2542_v38 = vadd.f32 %v2541_v36, %v2394_v37  ;;  %2460 = vmatmul.f32.gmra.mxu2 %v6724_v50  ;;  %v8917_v50 = vld [vmem:[#allocation6_spill] sm:$0xff] }
 0x321   : > { %v5251_v23 = vmul.f32 %v5770_v61, %v8904_v0  ;;  %v8908_v0 = vld [vmem:[#allocation137_spill] sm:$0xff] }
 0x322   : > { %5771 = vtanh.f32 %v2542_v38 }
 0x323   : > { %v2545_v41 = vpop.f32.mrf.mxu3  ;;  %v5365_v15 = vadd.f32 %v5364_v44, %v5251_v23  ;;  %v2207_v33 = vpop.f32.mrf.mxu1 }
 0x324   : > { %v2018_v58 = vpop.f32.mrf.mxu0  ;;  %v2208_v43 = vadd.f32 %v2207_v33, %v2014_v55 }
 0x325   : > { %v2397_v19 = vpop.f32.mrf.mxu2  ;;  %v2019_v44 = vadd.f32 %v2018_v58, %v7148_v51  ;;  %v8910_v58 = vld [vmem:[#allocation157_spill] sm:$0xff] }
 0x326   : > { %v2398_v56 = vadd.f32 %v2397_v19, %v2208_v43  ;;  %2302 = vmatmul.f32.gmra.mxu1 %v8906_v4 }
 0x327   : > { %2097 = vmatmul.f32.gmra.mxu0 %v8905_v29  ;;  %v8909_v29 = vld [vmem:[#allocation135_spill] sm:$0xff] }
 0x328   : > { %2612 = vmatmul.f32.gmra.mxu3 %v6746_v30  ;;  %v5772_v37 = vpop.eup %5771  ;;  %v2546_v36 = vadd.f32 %v2545_v41, %v2398_v56  ;;  %2464 = vmatmul.f32.gmra.mxu2 %v6746_v30  ;;  %v224_v41 = vld [vmem:[%s6104_s17 + $0x58] sm:$0xff] }
 0x329   : > { %v5255_v62 = vmul.f32 %v5772_v37, %v8907_v52  ;;  %v7449_v51 = vand.u32 4294901760, %v224_v41  ;;  %v8911_v37 = vld [vmem:[#allocation159_spill] sm:$0xff] }
 0x32a   : > { %5773 = vtanh.f32 %v2546_v36 }
 0x32b   : > { %v2549_v61 = vpop.f32.mrf.mxu3  ;;  %v5366_v38 = vadd.f32 %v5365_v15, %v5255_v62  ;;  %v2213_v55 = vpop.f32.mrf.mxu1  ;;  %3767 = vmatpush.msra.mxu2 %v7449_v51 }
 0x32c   : > { %v2023_v23 = vpop.f32.mrf.mxu0  ;;  %v2214_v33 = vadd.f32 %v2213_v55, %v2019_v44  ;;  %v7455_v44 = vsub.f32 %v224_v41, %v7449_v51  ;;  %v8914_v41 = vld [vmem:[#allocation8_spill] sm:$0xff] }
 0x32d   : > { %v2401_v43 = vpop.f32.mrf.mxu2  ;;  %v2024_v36 = vadd.f32 %v2023_v23, %v8911_v37  ;;  %v8915_v37 = vld [vmem:[#allocation158_spill] sm:$0xff] }
 0x32e   : > { %v2402_v19 = vadd.f32 %v2401_v43, %v2214_v33  ;;  %2308 = vmatmul.f32.gmra.mxu1 %v8909_v29  ;;  %v8916_v29 = vld [vmem:[#allocation15_spill] sm:$0xff] }
 0x32f   : > { %2102 = vmatmul.f32.gmra.mxu0 %v8908_v0  ;;  %v8912_v0 = vld [vmem:[#allocation139_spill] sm:$0xff] }
 0x330   : > { %2616 = vmatmul.f32.gmra.mxu3 %v6768_v49  ;;  %v5774_v56 = vpop.eup %5773  ;;  %v2550_v30 = vadd.f32 %v2549_v61, %v2402_v19  ;;  %2468 = vmatmul.f32.gmra.mxu2 %v6768_v49  ;;  %v8552_v19 = vand.u32 4294901760, %v7455_v44 }
 0x331   : > { %v5259_v15 = vmul.f32 %v5774_v56, %v8910_v58  ;;  %v8913_v56 = vld [vmem:[#allocation13_spill] sm:$0xff] }
 0x332   : > { %5775 = vtanh.f32 %v2550_v30  ;;  %v4045_v30 = vsub.f32 %v7455_v44, %v8552_v19 }
 0x333   : > { %v2553_v62 = vpop.f32.mrf.mxu3  ;;  %v5367_v55 = vadd.f32 %v5366_v38, %v5259_v15  ;;  %v2219_v43 = vpop.f32.mrf.mxu1 }
 0x334   : > { %v2028_v33 = vpop.f32.mrf.mxu0  ;;  %v2220_v52 = vadd.f32 %v2219_v43, %v2024_v36  ;;  %v4046_v15 = vand.u32 4294901760, %v4045_v30 }
 0x335   : > { %v2405_v61 = vpop.f32.mrf.mxu2 }
 0x336   : > { %v2406_v49 = vadd.f32 %v2405_v61, %v2220_v52  ;;  %2314 = vmatmul.f32.gmra.mxu1 %v8912_v0  ;;  %v2029_v52 = vadd.f32 %v2028_v33, %v7173_v13  ;;  %4047 = vmatpush.msra.mxu3 %v4046_v15 }
 0x337   : > { %2644 = vmatmul.f32.vlgmr.msrb.gmra.mxu0 %v8913_v56 }
 0x338   : > { %3261 = vmatmul.f32.vlgmr.msrb.gmra.mxu3 %v8792_v2  ;;  %4204 = vmatpush.msrb.mxu0 %v7455_v44  ;;  %v5776_v38 = vpop.eup %5775  ;;  %v2554_v23 = vadd.f32 %v2553_v62, %v2406_v49 }
 0x339   : > { %3080 = vmatmul.f32.vlgmr.msrb.gmra.mxu2 %v8914_v41  ;;  %v5263_v36 = vmul.f32 %v5776_v38, %v8915_v37  ;;  %v8927_v37 = vld [vmem:[#allocation27_spill] sm:$0xff] }
 0x33a   : > { %5777 = vtanh.f32 %v2554_v23 }
 0x33b   : > { %v2557_v43 = vpop.f32.mrf.mxu3  ;;  %v5368_v61 = vadd.f32 %v5367_v55, %v5263_v36  ;;  %v2225_v56 = vpop.f32.mrf.mxu1  ;;  %v8918_v55 = vld [vmem:[#allocation161_spill] sm:$0xff]  ;;  %v8919_v36 = vld [vmem:[#allocation19_spill] sm:$0xff] }
 0x33c   : > { %v2033_v58 = vpop.f32.mrf.mxu0  ;;  %v2226_v19 = vadd.f32 %v2225_v56, %v2029_v52  ;;  %v8920_v52 = vld [vmem:[#allocation7_spill] sm:$0xff] }
 0x33d   : > { %v2409_v0 = vpop.f32.mrf.mxu2  ;;  %v2034_v33 = vadd.f32 %v2033_v58, %v8918_v55 }
 0x33e   : > { %v2410_v2 = vadd.f32 %v2409_v0, %v2226_v19  ;;  %2928 = vmatmul.f32.vlgmr.msrb.gmra.mxu1 %v8917_v50 }
 0x33f   : > { %2652 = vmatmul.f32.gmra.mxu0 %v8916_v29  ;;  %4386 = vmatpush.msrb.mxu1 %v7449_v51 }
 0x340   : > { %3267 = vmatmul.f32.gmra.mxu3 %v8795_v47  ;;  %v5778_v49 = vpop.eup %5777  ;;  %v2558_v62 = vadd.f32 %v2557_v43, %v2410_v2  ;;  %v8921_v43 = vld [vmem:[#allocation14_spill] sm:$0xff]  ;;  %v8923_v47 = vld [vmem:[#allocation12_spill] sm:$0xff] }
 0x341   : > { %3085 = vmatmul.f32.gmra.mxu2 %v8791_v1  ;;  %v5267_v13 = vmul.f32 %v5778_v49, %v7170_v9 }
 0x342   : > { %5779 = vtanh.f32 %v2558_v62 }
 0x343   : > { %v2561_v30 = vpop.f32.mrf.mxu3  ;;  %v7475_v56 = vadd.f32 %v5368_v61, %v5267_v13  ;;  %v2231_v19 = vpop.f32.mrf.mxu1 }
 0x344   : > { %v2038_v0 = vpop.f32.mrf.mxu0  ;;  %v2232_v38 = vadd.f32 %v2231_v19, %v2034_v33 }
 0x345   : > { %v2413_v23 = vpop.f32.mrf.mxu2  ;;  %v2039_v58 = vadd.f32 %v2038_v0, %v7196_v17  ;;  %v8926_v0 = vld [vmem:[#allocation163_spill] sm:$0xff] }
 0x346   : > { %v2414_v15 = vadd.f32 %v2413_v23, %v2232_v38  ;;  %2932 = vmatmul.f32.gmra.mxu1 %v8920_v52  ;;  %v8922_v23 = vld [vmem:[#allocation23_spill] sm:$0xff] }
 0x347   : > { %2660 = vmatmul.f32.gmra.mxu0 %v8919_v36 }
 0x348   : > { %3273 = vmatmul.f32.gmra.mxu3 %v8799_v54  ;;  %v2562_v2 = vadd.f32 %v2561_v30, %v2414_v15  ;;  %v5780_v19 = vpop.eup %5779  ;;  %v8924_v15 = vld [vmem:[#allocation18_spill] sm:$0xff] }
 0x349   : > { %3090 = vmatmul.f32.gmra.mxu2 %v8921_v43  ;;  %v8925_v54 = vld [vmem:[#allocation162_spill] sm:$0xff] }
 0x34a   : > { %5781 = vtanh.f32 %v2562_v2  ;;  %v5271_v17 = vmul.f32 %v5780_v19, %v8925_v54  ;;  %v8945_v54 = vld [vmem:[#allocation43_spill] sm:$0xff] }
 0x34b   : > { %v2565_v61 = vpop.f32.mrf.mxu3  ;;  %v2237_v13 = vpop.f32.mrf.mxu1 }
 0x34c   : > { %v2043_v49 = vpop.f32.mrf.mxu0  ;;  %v2238_v55 = vadd.f32 %v2237_v13, %v2039_v58 }
 0x34d   : > { %v2417_v33 = vpop.f32.mrf.mxu2  ;;  %v2044_v43 = vadd.f32 %v2043_v49, %v7206_v11 }
 0x34e   : > { %v2418_v38 = vadd.f32 %v2417_v33, %v2238_v55  ;;  %2936 = vmatmul.f32.gmra.mxu1 %v8923_v47 }
 0x34f   : > { %2668 = vmatmul.f32.gmra.mxu0 %v8922_v23 }
 0x350   : > { %3279 = vmatmul.f32.gmra.mxu3 %v8802_v8  ;;  %v5782_v62 = vpop.eup %5781  ;;  %v2566_v30 = vadd.f32 %v2565_v61, %v2418_v38  ;;  %v8928_v8 = vld [vmem:[#allocation17_spill] sm:$0xff]  ;;  %v8929_v38 = vld [vmem:[#allocation22_spill] sm:$0xff] }
 0x351   : > { %3095 = vmatmul.f32.gmra.mxu2 %v8924_v15  ;;  %v5275_v2 = vmul.f32 %v5782_v62, %v8926_v0  ;;  %v8930_v62 = vld [vmem:[#allocation164_spill] sm:$0xff]  ;;  %v8931_v15 = vld [vmem:[#allocation31_spill] sm:$0xff]  ;;  %v8932_v0 = vld [vmem:[#allocation21_spill] sm:$0xff] }
 0x352   : > { %5783 = vtanh.f32 %v2566_v30 }
 0x353   : > { %v2569_v58 = vpop.f32.mrf.mxu3  ;;  %v5439_v13 = vadd.f32 %v5275_v2, %v5271_v17  ;;  %v2243_v33 = vpop.f32.mrf.mxu1 }
 0x354   : > { %v2048_v55 = vpop.f32.mrf.mxu0  ;;  %v2244_v1 = vadd.f32 %v2243_v33, %v2044_v43 }
 0x355   : > { %v2421_v9 = vpop.f32.mrf.mxu2  ;;  %v2049_v49 = vadd.f32 %v2048_v55, %v7216_v22 }
 0x356   : > { %v2422_v41 = vadd.f32 %v2421_v9, %v2244_v1  ;;  %2940 = vmatmul.f32.gmra.mxu1 %v8928_v8 }
 0x357   : > { %2676 = vmatmul.f32.gmra.mxu0 %v8927_v37 }
 0x358   : > { %3285 = vmatmul.f32.gmra.mxu3 %v8805_v3  ;;  %v5784_v61 = vpop.eup %5783  ;;  %v2570_v19 = vadd.f32 %v2569_v58, %v2422_v41  ;;  %v8934_v3 = vld [vmem:[#allocation35_spill] sm:$0xff] }
 0x359   : > { %3100 = vmatmul.f32.gmra.mxu2 %v8929_v38  ;;  %v5279_v11 = vmul.f32 %v5784_v61, %v8930_v62  ;;  %v8933_v61 = vld [vmem:[#allocation165_spill] sm:$0xff] }
 0x35a   : > { %5785 = vtanh.f32 %v2570_v19  ;;  %v8935_v38 = vld [vmem:[#allocation25_spill] sm:$0xff] }
 0x35b   : > { %v2573_v30 = vpop.f32.mrf.mxu3  ;;  %v5440_v17 = vadd.f32 %v5439_v13, %v5279_v11  ;;  %v2249_v2 = vpop.f32.mrf.mxu1  ;;  %v8940_v62 = vld [vmem:[#allocation29_spill] sm:$0xff] }
 0x35c   : > { %v2053_v43 = vpop.f32.mrf.mxu0  ;;  %v2250_v9 = vadd.f32 %v2249_v2, %v2049_v49 }
 0x35d   : > { %v2425_v1 = vpop.f32.mrf.mxu2  ;;  %v2054_v55 = vadd.f32 %v2053_v43, %v7226_v63  ;;  %v8938_v43 = vld [vmem:[#allocation168_spill] sm:$0xff] }
 0x35e   : > { %v2426_v33 = vadd.f32 %v2425_v1, %v2250_v9  ;;  %2944 = vmatmul.f32.gmra.mxu1 %v8932_v0 }
 0x35f   : > { %2684 = vmatmul.f32.gmra.mxu0 %v8931_v15 }
 0x360   : > { %3291 = vmatmul.f32.gmra.mxu3 %v8808_v16  ;;  %v5786_v41 = vpop.eup %5785  ;;  %v2574_v58 = vadd.f32 %v2573_v30, %v2426_v33  ;;  %v8936_v16 = vld [vmem:[#allocation30_spill] sm:$0xff] }
 0x361   : > { %3105 = vmatmul.f32.gmra.mxu2 %v8804_v24  ;;  %v5283_v22 = vmul.f32 %v5786_v41, %v8933_v61  ;;  %v8937_v41 = vld [vmem:[#allocation166_spill] sm:$0xff]  ;;  %v8939_v61 = vld [vmem:[#allocation39_spill] sm:$0xff] }
 0x362   : > { %5787 = vtanh.f32 %v2574_v58 }
 0x363   : > { %v2577_v13 = vpop.f32.mrf.mxu3  ;;  %v5441_v19 = vadd.f32 %v5440_v17, %v5283_v22  ;;  %v2255_v49 = vpop.f32.mrf.mxu1 }
 0x364   : > { %v2058_v11 = vpop.f32.mrf.mxu0  ;;  %v2256_v2 = vadd.f32 %v2255_v49, %v2054_v55 }
 0x365   : > { %v2429_v9 = vpop.f32.mrf.mxu2  ;;  %v2059_v58 = vadd.f32 %v2058_v11, %v8938_v43 }
 0x366   : > { %v2430_v1 = vadd.f32 %v2429_v9, %v2256_v2  ;;  %2948 = vmatmul.f32.gmra.mxu1 %v8935_v38 }
 0x367   : > { %2692 = vmatmul.f32.gmra.mxu0 %v8934_v3 }
 0x368   : > { %3297 = vmatmul.f32.gmra.mxu3 %v8812_v40  ;;  %v5788_v30 = vpop.eup %5787  ;;  %v2578_v33 = vadd.f32 %v2577_v13, %v2430_v1  ;;  %v8941_v40 = vld [vmem:[#allocation36_spill] sm:$0xff] }
 0x369   : > { %3110 = vmatmul.f32.gmra.mxu2 %v8936_v16  ;;  %v5287_v63 = vmul.f32 %v5788_v30, %v8937_v41  ;;  %v8942_v16 = vld [vmem:[#allocation34_spill] sm:$0xff]  ;;  %v8943_v30 = vld [vmem:[#allocation167_spill] sm:$0xff] }
 0x36a   : > { %5789 = vtanh.f32 %v2578_v33  ;;  %v8944_v33 = vld [vmem:[#allocation170_spill] sm:$0xff] }
 0x36b   : > { %v2581_v17 = vpop.f32.mrf.mxu3  ;;  %v5442_v22 = vadd.f32 %v5441_v19, %v5287_v63  ;;  %v2261_v49 = vpop.f32.mrf.mxu1 }
 0x36c   : > { %v2063_v55 = vpop.f32.mrf.mxu0  ;;  %v2262_v2 = vadd.f32 %v2261_v49, %v2059_v58 }
 0x36d   : > { %v2433_v9 = vpop.f32.mrf.mxu2  ;;  %v2064_v43 = vadd.f32 %v2063_v55, %v8944_v33  ;;  %v8948_v55 = vld [vmem:[#allocation169_spill] sm:$0xff] }
 0x36e   : > { %v2434_v24 = vadd.f32 %v2433_v9, %v2262_v2  ;;  %2952 = vmatmul.f32.gmra.mxu1 %v8940_v62 }
 0x36f   : > { %2700 = vmatmul.f32.gmra.mxu0 %v8939_v61 }
 0x370   : > { %3303 = vmatmul.f32.gmra.mxu3 %v8941_v40  ;;  %v5790_v13 = vpop.eup %5789  ;;  %v2582_v1 = vadd.f32 %v2581_v17, %v2434_v24  ;;  %v8946_v40 = vld [vmem:[#allocation33_spill] sm:$0xff] }
 0x371   : > { %3115 = vmatmul.f32.gmra.mxu2 %v8942_v16  ;;  %v5291_v11 = vmul.f32 %v5790_v13, %v8943_v30  ;;  %v8947_v13 = vld [vmem:[#allocation38_spill] sm:$0xff] }
 0x372   : > { %5791 = vtanh.f32 %v2582_v1 }
 0x373   : > { %v2585_v19 = vpop.f32.mrf.mxu3  ;;  %v5443_v63 = vadd.f32 %v5442_v22, %v5291_v11  ;;  %v2267_v49 = vpop.f32.mrf.mxu1 }
 0x374   : > { %v2068_v58 = vpop.f32.mrf.mxu0  ;;  %v2268_v2 = vadd.f32 %v2267_v49, %v2064_v43 }
 0x375   : > { %v2437_v9 = vpop.f32.mrf.mxu2  ;;  %v2069_v22 = vadd.f32 %v2068_v58, %v7269_v31  ;;  %v8951_v58 = vld [vmem:[#allocation42_spill] sm:$0xff] }
 0x376   : > { %v2438_v41 = vadd.f32 %v2437_v9, %v2268_v2  ;;  %2956 = vmatmul.f32.gmra.mxu1 %v8946_v40  ;;  %v220_v2 = vld [vmem:[%s6104_s17 + $0x38] sm:$0xff] }
 0x377   : > { %2708 = vmatmul.f32.gmra.mxu0 %v8945_v54  ;;  %v7520_v30 = vand.u32 4294901760, %v220_v2 }
 0x378   : > { %3309 = vmatmul.f32.gmra.mxu3 %v8819_v57  ;;  %v5792_v24 = vpop.eup %5791  ;;  %v2586_v17 = vadd.f32 %v2585_v19, %v2438_v41  ;;  %v8949_v57 = vld [vmem:[#allocation47_spill] sm:$0xff]  ;;  %v8950_v41 = vld [vmem:[#allocation37_spill] sm:$0xff] }
 0x379   : > { %3120 = vmatmul.f32.gmra.mxu2 %v8947_v13  ;;  %v5295_v1 = vmul.f32 %v5792_v24, %v8948_v55  ;;  %v7525_v19 = vsub.f32 %v220_v2, %v7520_v30  ;;  %4388 = vmatpush.msrb.mxu1 %v7520_v30  ;;  %v8953_v55 = vld [vmem:[#allocation51_spill] sm:$0xff] }
 0x37a   : > { %5793 = vtanh.f32 %v2586_v17  ;;  %3769 = vmatpush.msra.mxu2 %v7520_v30 }
 0x37b   : > { %v2589_v11 = vpop.f32.mrf.mxu3  ;;  %v5444_v33 = vadd.f32 %v5443_v63, %v5295_v1  ;;  %v2273_v49 = vpop.f32.mrf.mxu1  ;;  %v8568_v24 = vand.u32 4294901760, %v7525_v19  ;;  %4207 = vmatpush.msrb.mxu0 %v7525_v19 }
 0x37c   : > { %v2073_v43 = vpop.f32.mrf.mxu0  ;;  %v2274_v9 = vadd.f32 %v2273_v49, %v2069_v22 }
 0x37d   : > { %v2441_v16 = vpop.f32.mrf.mxu2  ;;  %v2074_v1 = vadd.f32 %v2073_v43, %v7279_v27  ;;  %v4051_v49 = vsub.f32 %v7525_v19, %v8568_v24 }
 0x37e   : > { %v2442_v54 = vadd.f32 %v2441_v16, %v2274_v9  ;;  %2960 = vmatmul.f32.gmra.mxu1 %v8950_v41  ;;  %v8952_v16 = vld [vmem:[#allocation171_spill] sm:$0xff] }
 0x37f   : > { %2716 = vmatmul.f32.gmra.mxu0 %v8949_v57  ;;  %v8957_v57 = vld [vmem:[#allocation55_spill] sm:$0xff] }
 0x380   : > { %3315 = vmatmul.f32.gmra.mxu3 %v8822_v39  ;;  %v5794_v31 = vpop.eup %5793  ;;  %v2590_v63 = vadd.f32 %v2589_v11, %v2442_v54 }
 0x381   : > { %3125 = vmatmul.f32.gmra.mxu2 %v8951_v58  ;;  %v5299_v17 = vmul.f32 %v5794_v31, %v8952_v16  ;;  %v4052_v58 = vand.u32 4294901760, %v4051_v49  ;;  %v8954_v31 = vld [vmem:[#allocation41_spill] sm:$0xff]  ;;  %v8956_v16 = vld [vmem:[#allocation172_spill] sm:$0xff] }
 0x382   : > { %5795 = vtanh.f32 %v2590_v63  ;;  %v8955_v63 = vld [vmem:[#allocation46_spill] sm:$0xff] }
 0x383   : > { %v2593_v22 = vpop.f32.mrf.mxu3  ;;  %v5445_v2 = vadd.f32 %v5444_v33, %v5299_v17  ;;  %v2279_v11 = vpop.f32.mrf.mxu1  ;;  %4053 = vmatpush.msra.mxu3 %v4052_v58 }
 0x384   : > { %v2078_v54 = vpop.f32.mrf.mxu0  ;;  %v2280_v9 = vadd.f32 %v2279_v11, %v2074_v1 }
 0x385   : > { %v2445_v39 = vpop.f32.mrf.mxu2  ;;  %v2079_v33 = vadd.f32 %v2078_v54, %v7289_v5 }
 0x386   : > { %v2446_v13 = vadd.f32 %v2445_v39, %v2280_v9  ;;  %2964 = vmatmul.f32.gmra.mxu1 %v8954_v31 }
 0x387   : > { %2724 = vmatmul.f32.gmra.mxu0 %v8953_v55 }
 0x388   : > { %3321 = vmatmul.f32.gmra.mxu3 %v8825_v14  ;;  %v5796_v27 = vpop.eup %5795  ;;  %v2594_v43 = vadd.f32 %v2593_v22, %v2446_v13  ;;  %v8958_v14 = vld [vmem:[#allocation45_spill] sm:$0xff]  ;;  %v8959_v22 = vld [vmem:[#allocation50_spill] sm:$0xff] }
 0x389   : > { %3130 = vmatmul.f32.gmra.mxu2 %v8955_v63  ;;  %v5303_v24 = vmul.f32 %v5796_v27, %v8956_v16  ;;  %v8960_v27 = vld [vmem:[#allocation173_spill] sm:$0xff]  ;;  %v8961_v63 = vld [vmem:[#allocation59_spill] sm:$0xff] }
 0x38a   : > { %5797 = vtanh.f32 %v2594_v43  ;;  %v8962_v16 = vld [vmem:[#allocation49_spill] sm:$0xff] }
 0x38b   : > { %v2597_v17 = vpop.f32.mrf.mxu3  ;;  %v5446_v1 = vadd.f32 %v5445_v2, %v5303_v24  ;;  %v2285_v39 = vpop.f32.mrf.mxu1 }
 0x38c   : > { %v2083_v49 = vpop.f32.mrf.mxu0  ;;  %v2286_v11 = vadd.f32 %v2285_v39, %v2079_v33 }
 0x38d   : > { %v2449_v9 = vpop.f32.mrf.mxu2  ;;  %v2084_v54 = vadd.f32 %v2083_v49, %v7299_v20  ;;  %v8966_v49 = vld [vmem:[#allocation176_spill] sm:$0xff] }
 0x38e   : > { %v2450_v55 = vadd.f32 %v2449_v9, %v2286_v11  ;;  %2968 = vmatmul.f32.gmra.mxu1 %v8958_v14 }
 0x38f   : > { %2732 = vmatmul.f32.gmra.mxu0 %v8957_v57  ;;  %v8968_v57 = vld [vmem:[#allocation53_spill] sm:$0xff] }
 0x390   : > { %3327 = vmatmul.f32.gmra.mxu3 %v8828_v25  ;;  %v5798_v13 = vpop.eup %5797  ;;  %v2598_v58 = vadd.f32 %v2597_v17, %v2450_v55  ;;  %v8963_v25 = vld [vmem:[#allocation56_spill] sm:$0xff] }
 0x391   : > { %3135 = vmatmul.f32.gmra.mxu2 %v8959_v22  ;;  %v5307_v5 = vmul.f32 %v5798_v13, %v8960_v27  ;;  %v8964_v22 = vld [vmem:[#allocation54_spill] sm:$0xff] }
 0x392   : > { %5799 = vtanh.f32 %v2598_v58  ;;  %v8965_v13 = vld [vmem:[#allocation174_spill] sm:$0xff] }
 0x393   : > { %v2601_v24 = vpop.f32.mrf.mxu3  ;;  %v5447_v2 = vadd.f32 %v5446_v1, %v5307_v5  ;;  %v2291_v33 = vpop.f32.mrf.mxu1 }
 0x394   : > { %v2088_v43 = vpop.f32.mrf.mxu0  ;;  %v2292_v39 = vadd.f32 %v2291_v33, %v2084_v54 }
 0x395   : > { %v2453_v11 = vpop.f32.mrf.mxu2  ;;  %v2089_v58 = vadd.f32 %v2088_v43, %v8966_v49 }
 0x396   : > { %v2454_v9 = vadd.f32 %v2453_v11, %v2292_v39  ;;  %2972 = vmatmul.f32.gmra.mxu1 %v8962_v16 }
 0x397   : > { %2740 = vmatmul.f32.gmra.mxu0 %v8961_v63  ;;  %v8967_v63 = vld [vmem:[#allocation63_spill] sm:$0xff] }
 0x398   : > { %3333 = vmatmul.f32.gmra.mxu3 %v8963_v25  ;;  %v5800_v55 = vpop.eup %5799  ;;  %v2602_v17 = vadd.f32 %v2601_v24, %v2454_v9  ;;  %v8969_v25 = vld [vmem:[#allocation60_spill] sm:$0xff] }
 0x399   : > { %3140 = vmatmul.f32.gmra.mxu2 %v8964_v22  ;;  %v5311_v20 = vmul.f32 %v5800_v55, %v8965_v13  ;;  %v8970_v22 = vld [vmem:[#allocation58_spill] sm:$0xff]  ;;  %v8971_v55 = vld [vmem:[#allocation175_spill] sm:$0xff] }
 0x39a   : > { %5801 = vtanh.f32 %v2602_v17  ;;  %v8972_v17 = vld [vmem:[#allocation178_spill] sm:$0xff] }
 0x39b   : > { %v2605_v1 = vpop.f32.mrf.mxu3  ;;  %v5448_v5 = vadd.f32 %v5447_v2, %v5311_v20  ;;  %v2297_v33 = vpop.f32.mrf.mxu1 }
 0x39c   : > { %v2093_v54 = vpop.f32.mrf.mxu0  ;;  %v2298_v39 = vadd.f32 %v2297_v33, %v2089_v58 }
 0x39d   : > { %v2457_v11 = vpop.f32.mrf.mxu2  ;;  %v2094_v49 = vadd.f32 %v2093_v54, %v8972_v17 }
 0x39e   : > { %v2458_v27 = vadd.f32 %v2457_v11, %v2298_v39  ;;  %2976 = vmatmul.f32.gmra.mxu1 %v8968_v57  ;;  %v8974_v57 = vld [vmem:[#allocation57_spill] sm:$0xff] }
 0x39f   : > { %2748 = vmatmul.f32.gmra.mxu0 %v8967_v63  ;;  %v8973_v63 = vld [vmem:[#allocation67_spill] sm:$0xff] }
 0x3a0   : > { %3339 = vmatmul.f32.gmra.mxu3 %v8969_v25  ;;  %v5802_v24 = vpop.eup %5801  ;;  %v2606_v9 = vadd.f32 %v2605_v1, %v2458_v27  ;;  %v8975_v25 = vld [vmem:[#allocation64_spill] sm:$0xff] }
 0x3a1   : > { %3145 = vmatmul.f32.gmra.mxu2 %v8970_v22  ;;  %v5315_v43 = vmul.f32 %v5802_v24, %v8971_v55  ;;  %v8976_v22 = vld [vmem:[#allocation62_spill] sm:$0xff]  ;;  %v8977_v24 = vld [vmem:[#allocation177_spill] sm:$0xff] }
 0x3a2   : > { %5803 = vtanh.f32 %v2606_v9  ;;  %v8978_v9 = vld [vmem:[#allocation180_spill] sm:$0xff] }
 0x3a3   : > { %v2609_v2 = vpop.f32.mrf.mxu3  ;;  %v5449_v20 = vadd.f32 %v5448_v5, %v5315_v43  ;;  %v2303_v33 = vpop.f32.mrf.mxu1 }
 0x3a4   : > { %v2098_v58 = vpop.f32.mrf.mxu0  ;;  %v2304_v39 = vadd.f32 %v2303_v33, %v2094_v49 }
 0x3a5   : > { %v2461_v11 = vpop.f32.mrf.mxu2  ;;  %v2099_v17 = vadd.f32 %v2098_v58, %v8978_v9 }
 0x3a6   : > { %v2462_v13 = vadd.f32 %v2461_v11, %v2304_v39  ;;  %2980 = vmatmul.f32.gmra.mxu1 %v8974_v57  ;;  %v8980_v57 = vld [vmem:[#allocation61_spill] sm:$0xff] }
 0x3a7   : > { %2756 = vmatmul.f32.gmra.mxu0 %v8973_v63  ;;  %v8979_v63 = vld [vmem:[#allocation71_spill] sm:$0xff] }
 0x3a8   : > { %3345 = vmatmul.f32.gmra.mxu3 %v8975_v25  ;;  %v5804_v27 = vpop.eup %5803  ;;  %v2610_v1 = vadd.f32 %v2609_v2, %v2462_v13  ;;  %v8981_v25 = vld [vmem:[#allocation68_spill] sm:$0xff] }
 0x3a9   : > { %3150 = vmatmul.f32.gmra.mxu2 %v8976_v22  ;;  %v5319_v54 = vmul.f32 %v5804_v27, %v8977_v24  ;;  %v8982_v22 = vld [vmem:[#allocation66_spill] sm:$0xff]  ;;  %v8983_v27 = vld [vmem:[#allocation179_spill] sm:$0xff] }
 0x3aa   : > { %5805 = vtanh.f32 %v2610_v1  ;;  %v8984_v1 = vld [vmem:[#allocation182_spill] sm:$0xff] }
 0x3ab   : > { %v2613_v5 = vpop.f32.mrf.mxu3  ;;  %v5450_v43 = vadd.f32 %v5449_v20, %v5319_v54  ;;  %v2309_v33 = vpop.f32.mrf.mxu1 }
 0x3ac   : > { %v2103_v49 = vpop.f32.mrf.mxu0  ;;  %v2310_v39 = vadd.f32 %v2309_v33, %v2099_v17 }
 0x3ad   : > { %v2465_v11 = vpop.f32.mrf.mxu2  ;;  %v2104_v9 = vadd.f32 %v2103_v49, %v8984_v1  ;;  %v8988_v49 = vld [vmem:[#allocation181_spill] sm:$0xff] }
 0x3ae   : > { %v2466_v55 = vadd.f32 %v2465_v11, %v2310_v39  ;;  %2984 = vmatmul.f32.gmra.mxu1 %v8980_v57  ;;  %v8986_v57 = vld [vmem:[#allocation65_spill] sm:$0xff] }
 0x3af   : > { %2764 = vmatmul.f32.gmra.mxu0 %v8979_v63  ;;  %v8985_v63 = vld [vmem:[#allocation75_spill] sm:$0xff] }
 0x3b0   : > { %3351 = vmatmul.f32.gmra.mxu3 %v8981_v25  ;;  %v5806_v13 = vpop.eup %5805  ;;  %v2614_v2 = vadd.f32 %v2613_v5, %v2466_v55  ;;  %v5370_v55 = vrot.slane %v7475_v56, 4  ;;  %v8987_v25 = vld [vmem:[#allocation70_spill] sm:$0xff] }
 0x3b1   : > { %3155 = vmatmul.f32.gmra.mxu2 %v8982_v22  ;;  %v5323_v58 = vmul.f32 %v5806_v13, %v8983_v27  ;;  %v8989_v27 = vld [vmem:[#allocation79_spill] sm:$0xff] }
 0x3b2   : > { %5807 = vtanh.f32 %v2614_v2 }
 0x3b3   : > { %v2617_v20 = vpop.f32.mrf.mxu3  ;;  %v5451_v54 = vadd.f32 %v5450_v43, %v5323_v58  ;;  %v2315_v17 = vpop.f32.mrf.mxu1  ;;  %v5371_v58 = vadd.f32 %v5370_v55, %v7475_v56 }
 0x3b4   : > { %v2645_v33 = vpop.f32.mrf.mxu0  ;;  %v2316_v39 = vadd.f32 %v2315_v17, %v2104_v9 }
 0x3b5   : > { %v2469_v11 = vpop.f32.mrf.mxu2 }
 0x3b6   : > { %v2470_v24 = vadd.f32 %v2469_v11, %v2316_v39  ;;  %2988 = vmatmul.f32.gmra.mxu1 %v8986_v57 }
 0x3b7   : > { %2772 = vmatmul.f32.gmra.mxu0 %v8985_v63  ;;  %v8990_v63 = vld [vmem:[#allocation69_spill] sm:$0xff] }
 0x3b8   : > { %3357 = vmatmul.f32.gmra.mxu3 %v8849_v26  ;;  %v5808_v5 = vpop.eup %5807  ;;  %v2618_v13 = vadd.f32 %v2617_v20, %v2470_v24  ;;  %v5372_v26 = vrot.slane %v5371_v58, 2 }
 0x3b9   : > { %3160 = vmatmul.f32.gmra.mxu2 %v8987_v25  ;;  %v5327_v2 = vmul.f32 %v5808_v5, %v8988_v49  ;;  %v8991_v5 = vld [vmem:[#allocation74_spill] sm:$0xff] }
 0x3ba   : > { %5809 = vtanh.f32 %v2618_v13  ;;  %v8992_v13 = vld [vmem:[#allocation141_spill] sm:$0xff]  ;;  %v5373_v55 = vadd.f32 %v5372_v26, %v5371_v58  ;;  %v216_v26 = vld [vmem:[%s6104_s17 + $0x18] sm:$0xff] }
 0x3bb   : > { %v3262_v43 = vpop.f32.mrf.mxu3  ;;  %v5452_v1 = vadd.f32 %v5451_v54, %v5327_v2  ;;  %v2929_v17 = vpop.f32.mrf.mxu1 }
 0x3bc   : > { %v2653_v9 = vpop.f32.mrf.mxu0  ;;  %v2930_v39 = vadd.f32 %v2929_v17, %v2645_v33 }
 0x3bd   : > { %v3081_v11 = vpop.f32.mrf.mxu2 }
 0x3be   : > { %v3082_v22 = vadd.f32 %v3081_v11, %v2930_v39  ;;  %2992 = vmatmul.f32.gmra.mxu1 %v8990_v63 }
 0x3bf   : > { %2780 = vmatmul.f32.gmra.mxu0 %v8989_v27  ;;  %v8993_v27 = vld [vmem:[#allocation82_spill] sm:$0xff] }
 0x3c0   : > { %3363 = vmatmul.f32.gmra.mxu3 %v8853_v42  ;;  %v5810_v24 = vpop.eup %5809  ;;  %v7584_v20 = vadd.f32 %v3262_v43, %v3082_v22  ;;  %v5374_v22 = vrot.slane %v5373_v55, 1 }
 0x3c1   : > { %3165 = vmatmul.f32.gmra.mxu2 %v8991_v5  ;;  %v5331_v56 = vmul.f32 %v5810_v24, %v8992_v13  ;;  %v8994_v24 = vld [vmem:[#allocation78_spill] sm:$0xff] }
 0x3c3   : > { %v3268_v54 = vpop.f32.mrf.mxu3  ;;  %v5453_v33 = vadd.f32 %v5452_v1, %v5331_v56  ;;  %v2933_v17 = vpop.f32.mrf.mxu1  ;;  %v3770_v1 = vand.u32 4294901760, %v216_v26 }
 0x3c4   : > { %v2661_v2 = vpop.f32.mrf.mxu0  ;;  %v2934_v39 = vadd.f32 %v2933_v17, %v2653_v9  ;;  %v5375_v9 = vadd.f32 %v5374_v22, %v5373_v55  ;;  %v8997_v22 = vand.u32 4294901760, %v7525_v19 }
 0x3c5   : > { %v3086_v11 = vpop.f32.mrf.mxu2  ;;  %v5454_v25 = vrot.slane %v5453_v33, 4  ;;  %3771 = vmatpush.msra.mxu2 %v3770_v1  ;;  %4390 = vmatpush.msrb.mxu1 %v3770_v1 }
 0x3c6   : > { %v3087_v49 = vadd.f32 %v3086_v11, %v2934_v39  ;;  %2996 = vmatmul.f32.gmra.mxu1 %v8850_v59  ;;  %v4055_v11 = vsub.f32 %v216_v26, %v3770_v1 }
 0x3c7   : > { %2788 = vmatmul.f32.gmra.mxu0 %v8993_v27  ;;  %v5455_v43 = vadd.f32 %v5454_v25, %v5453_v33  ;;  %v8995_v33 = vand.u32 4294901760, %v7455_v44 }
 0x3c8   : > { %3369 = vmatmul.f32.gmra.mxu3 %v8856_v12  ;;  %v7591_v42 = vadd.f32 %v3268_v54, %v3087_v49  ;;  %v4056_v54 = vand.u32 4294901760, %v4055_v11  ;;  %4210 = vmatpush.msrb.mxu0 %v4055_v11 }
 0x3c9   : > { %3170 = vmatmul.f32.gmra.mxu2 %v8994_v24  ;;  %v5456_v58 = vrot.slane %v5455_v43, 2  ;;  %v8996_v24 = vld [vmem:[#allocation87_spill] sm:$0xff] }
 0x3ca   : > { %4600 = vmatpush.msrb.mxu2 %v8995_v33  ;;  %v4057_v55 = vsub.f32 %v4055_v11, %v4056_v54 }
 0x3cb   : > { %v3274_v56 = vpop.f32.mrf.mxu3  ;;  %v5457_v17 = vadd.f32 %v5456_v58, %v5455_v43  ;;  %v2937_v39 = vpop.f32.mrf.mxu1  ;;  %v5940_v43 = vld [vmem:[%s6104_s17 + $0x48] sm:$0xff] }
 0x3cc   : > { %v2669_v5 = vpop.f32.mrf.mxu0  ;;  %v2938_v13 = vadd.f32 %v2937_v39, %v2661_v2  ;;  %4604 = vmatpush.msrb.mxu2 %v8997_v22  ;;  %v5503_v26 = vmul.f32 %v5940_v43, %v5375_v9  ;;  %v5515_v44 = vrot.slane %v5940_v43, 1  ;;  %v8998_v39 = vld [vmem:[#allocation81_spill] sm:$0xff]  ;;  %v4058_v33 = vand.u32 4294901760, %v4057_v55  ;;  %v8999_v9 = vld [vmem:[#allocation86_spill] sm:$0xff] }
 0x3cd   : > { %v3091_v25 = vpop.f32.mrf.mxu2  ;;  %v5458_v49 = vrot.slane %v5457_v17, 1 }
 0x3ce   : > { %v3092_v12 = vadd.f32 %v3091_v25, %v2938_v13  ;;  %3000 = vmatmul.f32.gmra.mxu1 %v8738_v45  ;;  %4608 = vmatpush.msrb.mxu2 %v4056_v54  ;;  %v5941_v25 = vld [vmem:[%s6104_s17 + $0x40] sm:$0xff] }
 0x3cf   : > { %2796 = vmatmul.f32.gmra.mxu0 %v8996_v24  ;;  %v5459_v2 = vadd.f32 %v5458_v49, %v5457_v17  ;;  %v5514_v24 = vrot.slane %v5941_v25, 1  ;;  %4059 = vmatpush.msra.mxu3 %v4058_v33  ;;  %v9000_v49 = vld [vmem:[#allocation91_spill] sm:$0xff]  ;;  %v9004_v33 = vld [vmem:[#allocation84_spill] sm:$0xff] }
 0x3d0   : > { %3375 = vmatmul.f32.gmra.mxu3 %v8860_v7  ;;  %v7603_v58 = vadd.f32 %v3274_v56, %v3092_v12 }
 0x3d1   : > { %3175 = vmatmul.f32.gmra.mxu2 %v8998_v39  ;;  %v5507_v13 = vadd.f32 %v5503_v26, %v5459_v2  ;;  %4752 = vmatpush.msrb.mxu3 %v7449_v51  ;;  %v5522_v12 = vadd.f32 %v5514_v24, %v8999_v9  ;;  %v9002_v2 = vld [vmem:[#allocation85_spill] sm:$0xff] }
 0x3d3   : > { %v3280_v27 = vpop.f32.mrf.mxu3  ;;  %v2941_v7 = vpop.f32.mrf.mxu1  ;;  %v5523_v11 = vadd.f32 %v5515_v44, %v5507_v13  ;;  %4754 = vmatpush.msrb.mxu3 %v7520_v30  ;;  %v9003_v44 = vld [vmem:[#allocation95_spill] sm:$0xff] }
 0x3d4   : > { %v2677_v45 = vpop.f32.mrf.mxu0  ;;  %v2942_v19 = vadd.f32 %v2941_v7, %v2669_v5 }
 0x3d5   : > { %v3096_v22 = vpop.f32.mrf.mxu2  ;;  %v5530_v56 = vrot.slane %v5523_v11, 7  ;;  %4756 = vmatpush.msrb.mxu3 %v3770_v1 }
 0x3d6   : > { %v3097_v17 = vadd.f32 %v3096_v22, %v2942_v19  ;;  %3004 = vmatmul.f32.gmra.mxu1 %v6497_v6  ;;  %v9005_v22 = vld [vmem:[#allocation100_spill] sm:$0xff] }
 0x3d7   : > { %2804 = vmatmul.f32.gmra.mxu0 %v9000_v49  ;;  %v7612_v54 = vsel %vm5533_vm1, %v5522_v12, %v5530_v56  ;;  %v9007_v12 = vld [vmem:[#allocation94_spill] sm:$0xff] }
 0x3d8   : > { %3381 = vmatmul.f32.gmra.mxu3 %v8867_v21  ;;  %9001 = vst [vmem:[#allocation145_spill] sm:$0xff] %v7612_v54  ;;  %v7614_v55 = vadd.f32 %v3280_v27, %v3097_v17  ;;  %v9012_v21 = vld [vmem:[#allocation110_spill] sm:$0xff] }
 0x3d9   : > { %3180 = vmatmul.f32.gmra.mxu2 %v9002_v2  ;;  %v9015_v2 = vld [vmem:[#allocation115_spill] sm:$0xff] }
 0x3db   : > { %v3286_v7 = vpop.f32.mrf.mxu3  ;;  %v2945_v5 = vpop.f32.mrf.mxu1 }
 0x3dc   : > { %v2685_v51 = vpop.f32.mrf.mxu0  ;;  %v2946_v24 = vadd.f32 %v2945_v5, %v2677_v45  ;;  %v9006_v45 = vld [vmem:[#allocation96_spill] sm:$0xff] }
 0x3dd   : > { %v3101_v43 = vpop.f32.mrf.mxu2 }
 0x3de   : > { %v3102_v26 = vadd.f32 %v3101_v43, %v2946_v24  ;;  %3008 = vmatmul.f32.gmra.mxu1 %v9004_v33 }
 0x3df   : > { %2812 = vmatmul.f32.gmra.mxu0 %v9003_v44 }
 0x3e0   : > { %3387 = vmatmul.f32.gmra.mxu3 %v8872_v34  ;;  %v7621_v13 = vadd.f32 %v3286_v7, %v3102_v26  ;;  %v9008_v26 = vld [vmem:[#allocation105_spill] sm:$0xff] }
 0x3e1   : > { %3185 = vmatmul.f32.gmra.mxu2 %v8866_v48 }
 0x3e3   : > { %v3292_v27 = vpop.f32.mrf.mxu3  ;;  %v2949_v30 = vpop.f32.mrf.mxu1 }
 0x3e4   : > { %v2693_v25 = vpop.f32.mrf.mxu0  ;;  %v2950_v11 = vadd.f32 %v2949_v30, %v2685_v51  ;;  %v9009_v51 = vld [vmem:[#allocation93_spill] sm:$0xff] }
 0x3e5   : > { %v3106_v1 = vpop.f32.mrf.mxu2  ;;  %v9010_v30 = vld [vmem:[#allocation101_spill] sm:$0xff] }
 0x3e6   : > { %v3107_v19 = vadd.f32 %v3106_v1, %v2950_v11  ;;  %3012 = vmatmul.f32.gmra.mxu1 %v8868_v35  ;;  %v9011_v1 = vld [vmem:[#allocation98_spill] sm:$0xff] }
 0x3e7   : > { %2820 = vmatmul.f32.gmra.mxu0 %v9005_v22 }
 0x3e8   : > { %3393 = vmatmul.f32.gmra.mxu3 %v9006_v45  ;;  %v7627_v9 = vadd.f32 %v3292_v27, %v3107_v19 }
 0x3e9   : > { %3190 = vmatmul.f32.gmra.mxu2 %v9007_v12 }
 0x3eb   : > { %v3298_v56 = vpop.f32.mrf.mxu3  ;;  %v2953_v7 = vpop.f32.mrf.mxu1 }
 0x3ec   : > { %v2701_v17 = vpop.f32.mrf.mxu0  ;;  %v2954_v5 = vadd.f32 %v2953_v7, %v2693_v25  ;;  %v9013_v25 = vld [vmem:[#allocation97_spill] sm:$0xff] }
 0x3ed   : > { %v3111_v24 = vpop.f32.mrf.mxu2 }
 0x3ee   : > { %v3112_v43 = vadd.f32 %v3111_v24, %v2954_v5  ;;  %3016 = vmatmul.f32.gmra.mxu1 %v9009_v51  ;;  %v9014_v5 = vld [vmem:[#allocation103_spill] sm:$0xff] }
 0x3ef   : > { %2828 = vmatmul.f32.gmra.mxu0 %v9008_v26 }
 0x3f0   : > { %3399 = vmatmul.f32.gmra.mxu3 %v9010_v30  ;;  %v7633_v11 = vadd.f32 %v3298_v56, %v3112_v43 }
 0x3f1   : > { %3195 = vmatmul.f32.gmra.mxu2 %v9011_v1 }
 0x3f3   : > { %v3304_v27 = vpop.f32.mrf.mxu3  ;;  %v2957_v54 = vpop.f32.mrf.mxu1 }
 0x3f4   : > { %v2709_v19 = vpop.f32.mrf.mxu0  ;;  %v2958_v45 = vadd.f32 %v2957_v54, %v2701_v17  ;;  %v9016_v54 = vld [vmem:[#allocation102_spill] sm:$0xff] }
 0x3f5   : > { %v3116_v34 = vpop.f32.mrf.mxu2 }
 0x3f6   : > { %v3117_v12 = vadd.f32 %v3116_v34, %v2958_v45  ;;  %3020 = vmatmul.f32.gmra.mxu1 %v9013_v25  ;;  %v9017_v45 = vld [vmem:[#allocation108_spill] sm:$0xff] }
 0x3f7   : > { %2836 = vmatmul.f32.gmra.mxu0 %v9012_v21  ;;  %v9018_v21 = vld [vmem:[#allocation120_spill] sm:$0xff] }
 0x3f8   : > { %3405 = vmatmul.f32.gmra.mxu3 %v8887_v46  ;;  %v7639_v7 = vadd.f32 %v3304_v27, %v3117_v12 }
 0x3f9   : > { %3200 = vmatmul.f32.gmra.mxu2 %v9014_v5 }
 0x3fb   : > { %v3310_v56 = vpop.f32.mrf.mxu3  ;;  %v2961_v43 = vpop.f32.mrf.mxu1 }
 0x3fc   : > { %v2717_v24 = vpop.f32.mrf.mxu0  ;;  %v2962_v30 = vadd.f32 %v2961_v43, %v2709_v19 }
 0x3fd   : > { %v3121_v1 = vpop.f32.mrf.mxu2 }
 0x3fe   : > { %v3122_v48 = vadd.f32 %v3121_v1, %v2962_v30  ;;  %3024 = vmatmul.f32.gmra.mxu1 %v9016_v54  ;;  %v9020_v1 = vld [vmem:[#allocation113_spill] sm:$0xff] }
 0x3ff   : > { %2844 = vmatmul.f32.gmra.mxu0 %v9015_v2  ;;  %v9021_v2 = vld [vmem:[#allocation125_spill] sm:$0xff] }
 0x400   : > { %3411 = vmatmul.f32.gmra.mxu3 %v8892_v32  ;;  %v7645_v34 = vadd.f32 %v3310_v56, %v3122_v48 }
 0x401   : > { %3205 = vmatmul.f32.gmra.mxu2 %v9017_v45 }
 0x403   : > { %v3316_v12 = vpop.f32.mrf.mxu3  ;;  %v2965_v27 = vpop.f32.mrf.mxu1 }
 0x404   : > { %v2725_v17 = vpop.f32.mrf.mxu0  ;;  %v2966_v46 = vadd.f32 %v2965_v27, %v2717_v24  ;;  %v9022_v24 = vld [vmem:[#allocation112_spill] sm:$0xff] }
 0x405   : > { %v3126_v5 = vpop.f32.mrf.mxu2 }
 0x406   : > { %v3127_v39 = vadd.f32 %v3126_v5, %v2966_v46  ;;  %3028 = vmatmul.f32.gmra.mxu1 %v8888_v28  ;;  %v9024_v5 = vld [vmem:[#allocation118_spill] sm:$0xff] }
 0x407   : > { %2852 = vmatmul.f32.gmra.mxu0 %v9018_v21 }
 0x408   : > { %3417 = vmatmul.f32.gmra.mxu3 %v8895_v10  ;;  %v7651_v30 = vadd.f32 %v3316_v12, %v3127_v39 }
 0x409   : > { %3210 = vmatmul.f32.gmra.mxu2 %v9020_v1 }
 0x40a   : > { %9019 = vst [vmem:[#allocation146_spill] sm:$0xff] %v7651_v30  ;;  %v9025_v30 = vld [vmem:[#allocation130_spill] sm:$0xff] }
 0x40b   : > { %v3322_v48 = vpop.f32.mrf.mxu3  ;;  %v2969_v56 = vpop.f32.mrf.mxu1 }
 0x40c   : > { %v2733_v19 = vpop.f32.mrf.mxu0  ;;  %v2970_v43 = vadd.f32 %v2969_v56, %v2725_v17  ;;  %v9026_v17 = vld [vmem:[#allocation117_spill] sm:$0xff]  ;;  %v9027_v56 = vld [vmem:[#allocation123_spill] sm:$0xff] }
 0x40d   : > { %v3131_v32 = vpop.f32.mrf.mxu2 }
 0x40e   : > { %v3132_v45 = vadd.f32 %v3131_v32, %v2970_v43  ;;  %3032 = vmatmul.f32.gmra.mxu1 %v9022_v24 }
 0x40f   : > { %2860 = vmatmul.f32.gmra.mxu0 %v9021_v2 }
 0x410   : > { %3423 = vmatmul.f32.gmra.mxu3 %v8899_v60  ;;  %v7657_v46 = vadd.f32 %v3322_v48, %v3132_v45 }
 0x411   : > { %3215 = vmatmul.f32.gmra.mxu2 %v9024_v5 }
 0x412   : > { %9023 = vst [vmem:[#allocation89_spill] sm:$0xff] %v7657_v46  ;;  %v9028_v46 = vld [vmem:[#allocation134_spill] sm:$0xff] }
 0x413   : > { %v3328_v39 = vpop.f32.mrf.mxu3  ;;  %v2973_v27 = vpop.f32.mrf.mxu1 }
 0x414   : > { %v2741_v12 = vpop.f32.mrf.mxu0  ;;  %v2974_v10 = vadd.f32 %v2973_v27, %v2733_v19 }
 0x415   : > { %v3136_v1 = vpop.f32.mrf.mxu2 }
 0x416   : > { %v3137_v21 = vadd.f32 %v3136_v1, %v2974_v10  ;;  %3036 = vmatmul.f32.gmra.mxu1 %v9026_v17  ;;  %v9030_v1 = vld [vmem:[#allocation128_spill] sm:$0xff] }
 0x417   : > { %2868 = vmatmul.f32.gmra.mxu0 %v9025_v30  ;;  %v9031_v30 = vld [vmem:[#allocation138_spill] sm:$0xff] }
 0x418   : > { %3429 = vmatmul.f32.gmra.mxu3 %v8903_v18  ;;  %v7663_v32 = vadd.f32 %v3328_v39, %v3137_v21 }
 0x419   : > { %3220 = vmatmul.f32.gmra.mxu2 %v9027_v56 }
 0x41b   : > { %v3334_v45 = vpop.f32.mrf.mxu3  ;;  %v2977_v43 = vpop.f32.mrf.mxu1 }
 0x41c   : > { %v2749_v48 = vpop.f32.mrf.mxu0  ;;  %v2978_v60 = vadd.f32 %v2977_v43, %v2741_v12  ;;  %v9032_v12 = vld [vmem:[#allocation127_spill] sm:$0xff]  ;;  %v9035_v43 = vld [vmem:[#allocation133_spill] sm:$0xff] }
 0x41d   : > { %v3141_v5 = vpop.f32.mrf.mxu2 }
 0x41e   : > { %v3142_v2 = vadd.f32 %v3141_v5, %v2978_v60  ;;  %3040 = vmatmul.f32.gmra.mxu1 %v6702_v53  ;;  %v9033_v60 = vld [vmem:[#allocation135_spill] sm:$0xff]  ;;  %v9036_v53 = vld [vmem:[#allocation140_spill] sm:$0xff] }
 0x41f   : > { %2876 = vmatmul.f32.gmra.mxu0 %v9028_v46 }
 0x420   : > { %3435 = vmatmul.f32.gmra.mxu3 %v8906_v4  ;;  %v7669_v10 = vadd.f32 %v3334_v45, %v3142_v2 }
 0x421   : > { %3225 = vmatmul.f32.gmra.mxu2 %v9030_v1 }
 0x422   : > { %9029 = vst [vmem:[#allocation104_spill] sm:$0xff] %v7669_v10 }
 0x423   : > { %v3340_v21 = vpop.f32.mrf.mxu3  ;;  %v2981_v39 = vpop.f32.mrf.mxu1 }
 0x424   : > { %v2757_v19 = vpop.f32.mrf.mxu0  ;;  %v2982_v27 = vadd.f32 %v2981_v39, %v2749_v48  ;;  %v9037_v48 = vld [vmem:[#allocation132_spill] sm:$0xff] }
 0x425   : > { %v3146_v18 = vpop.f32.mrf.mxu2 }
 0x426   : > { %v3147_v56 = vadd.f32 %v3146_v18, %v2982_v27  ;;  %3044 = vmatmul.f32.gmra.mxu1 %v9032_v12  ;;  %v9038_v18 = vld [vmem:[#allocation139_spill] sm:$0xff]  ;;  %v9039_v27 = vld [vmem:[#allocation137_spill] sm:$0xff]  ;;  %v9040_v12 = vld [vmem:[#allocation136_spill] sm:$0xff] }
 0x427   : > { %2884 = vmatmul.f32.gmra.mxu0 %v9031_v30 }
 0x428   : > { %3441 = vmatmul.f32.gmra.mxu3 %v9033_v60  ;;  %v7675_v5 = vadd.f32 %v3340_v21, %v3147_v56 }
 0x429   : > { %3230 = vmatmul.f32.gmra.mxu2 %v9035_v43 }
 0x42a   : > { %9034 = vst [vmem:[#allocation148_spill] sm:$0xff] %v7675_v5 }
 0x42b   : > { %v3346_v2 = vpop.f32.mrf.mxu3  ;;  %v2985_v4 = vpop.f32.mrf.mxu1 }
 0x42c   : > { %v2765_v45 = vpop.f32.mrf.mxu0  ;;  %v2986_v1 = vadd.f32 %v2985_v4, %v2757_v19 }
 0x42d   : > { %v3151_v46 = vpop.f32.mrf.mxu2 }
 0x42e   : > { %v3152_v10 = vadd.f32 %v3151_v46, %v2986_v1  ;;  %3048 = vmatmul.f32.gmra.mxu1 %v9037_v48  ;;  %v9041_v46 = vld [vmem:[#allocation13_spill] sm:$0xff] }
 0x42f   : > { %2892 = vmatmul.f32.gmra.mxu0 %v9036_v53 }
 0x430   : > { %3447 = vmatmul.f32.gmra.mxu3 %v9038_v18  ;;  %v7681_v39 = vadd.f32 %v3346_v2, %v3152_v10 }
 0x431   : > { %3235 = vmatmul.f32.gmra.mxu2 %v9039_v27 }
 0x433   : > { %v3352_v56 = vpop.f32.mrf.mxu3  ;;  %v2989_v60 = vpop.f32.mrf.mxu1 }
 0x434   : > { %v2773_v21 = vpop.f32.mrf.mxu0  ;;  %v2990_v43 = vadd.f32 %v2989_v60, %v2765_v45 }
 0x435   : > { %v3156_v30 = vpop.f32.mrf.mxu2 }
 0x436   : > { %v3157_v5 = vadd.f32 %v3156_v30, %v2990_v43  ;;  %3052 = vmatmul.f32.gmra.mxu1 %v9040_v12 }
 0x437   : > { %3477 = vmatmul.f32.vlgmr.msra.gmra.mxu0 %v8917_v50 }
 0x438   : > { %4061 = vmatmul.f32.vlgmr.msra.gmra.mxu3 %v8917_v50  ;;  %v7687_v4 = vadd.f32 %v3352_v56, %v3157_v5 }
 0x439   : > { %3777 = vmatmul.f32.vlgmr.msra.gmra.mxu2 %v9041_v46 }
 0x43b   : > { %v3358_v10 = vpop.f32.mrf.mxu3  ;;  %v2993_v19 = vpop.f32.mrf.mxu1 }
 0x43c   : > { %v2781_v1 = vpop.f32.mrf.mxu0  ;;  %v2994_v2 = vadd.f32 %v2993_v19, %v2773_v21 }
 0x43d   : > { %v3161_v18 = vpop.f32.mrf.mxu2 }
 0x43e   : > { %v3162_v27 = vadd.f32 %v3161_v18, %v2994_v2  ;;  %3625 = vmatmul.f32.vlgmr.msra.gmra.mxu1 %v8917_v50 }
 0x43f   : > { %3481 = vmatmul.f32.gmra.mxu0 %v8920_v52 }
 0x440   : > { %4065 = vmatmul.f32.gmra.mxu3 %v8920_v52  ;;  %v7693_v30 = vadd.f32 %v3358_v10, %v3162_v27 }
 0x441   : > { %3785 = vmatmul.f32.gmra.mxu2 %v8916_v29 }
 0x443   : > { %v3364_v60 = vpop.f32.mrf.mxu3  ;;  %v2997_v43 = vpop.f32.mrf.mxu1 }
 0x444   : > { %v2789_v5 = vpop.f32.mrf.mxu0  ;;  %v2998_v45 = vadd.f32 %v2997_v43, %v2781_v1 }
 0x445   : > { %v3166_v56 = vpop.f32.mrf.mxu2 }
 0x446   : > { %v3167_v46 = vadd.f32 %v3166_v56, %v2998_v45  ;;  %3629 = vmatmul.f32.gmra.mxu1 %v8920_v52 }
 0x447   : > { %3485 = vmatmul.f32.gmra.mxu0 %v8923_v47 }
 0x448   : > { %4069 = vmatmul.f32.gmra.mxu3 %v8923_v47  ;;  %v7699_v18 = vadd.f32 %v3364_v60, %v3167_v46 }
 0x449   : > { %3793 = vmatmul.f32.gmra.mxu2 %v8919_v36 }
 0x44b   : > { %v3370_v27 = vpop.f32.mrf.mxu3  ;;  %v3001_v10 = vpop.f32.mrf.mxu1 }
 0x44c   : > { %v2797_v21 = vpop.f32.mrf.mxu0  ;;  %v3002_v29 = vadd.f32 %v3001_v10, %v2789_v5 }
 0x44d   : > { %v3171_v19 = vpop.f32.mrf.mxu2 }
 0x44e   : > { %v3172_v2 = vadd.f32 %v3171_v19, %v3002_v29  ;;  %3633 = vmatmul.f32.gmra.mxu1 %v8923_v47 }
 0x44f   : > { %3489 = vmatmul.f32.gmra.mxu0 %v8928_v8 }
 0x450   : > { %4073 = vmatmul.f32.gmra.mxu3 %v8928_v8  ;;  %v7705_v1 = vadd.f32 %v3370_v27, %v3172_v2 }
 0x451   : > { %3801 = vmatmul.f32.gmra.mxu2 %v8922_v23 }
 0x453   : > { %v3376_v60 = vpop.f32.mrf.mxu3  ;;  %v3005_v45 = vpop.f32.mrf.mxu1 }
 0x454   : > { %v2805_v43 = vpop.f32.mrf.mxu0  ;;  %v3006_v36 = vadd.f32 %v3005_v45, %v2797_v21 }
 0x455   : > { %v3176_v56 = vpop.f32.mrf.mxu2 }
 0x456   : > { %v3177_v46 = vadd.f32 %v3176_v56, %v3006_v36  ;;  %3637 = vmatmul.f32.gmra.mxu1 %v8928_v8 }
 0x457   : > { %3493 = vmatmul.f32.gmra.mxu0 %v8932_v0 }
 0x458   : > { %4077 = vmatmul.f32.gmra.mxu3 %v8932_v0  ;;  %v7711_v5 = vadd.f32 %v3376_v60, %v3177_v46 }
 0x459   : > { %3809 = vmatmul.f32.gmra.mxu2 %v8927_v37 }
 0x45b   : > { %v3382_v27 = vpop.f32.mrf.mxu3  ;;  %v3009_v29 = vpop.f32.mrf.mxu1 }
 0x45c   : > { %v2813_v10 = vpop.f32.mrf.mxu0  ;;  %v3010_v23 = vadd.f32 %v3009_v29, %v2805_v43 }
 0x45d   : > { %v3181_v19 = vpop.f32.mrf.mxu2 }
 0x45e   : > { %v3182_v2 = vadd.f32 %v3181_v19, %v3010_v23  ;;  %3641 = vmatmul.f32.gmra.mxu1 %v8932_v0 }
 0x45f   : > { %3497 = vmatmul.f32.gmra.mxu0 %v8935_v38 }
 0x460   : > { %4081 = vmatmul.f32.gmra.mxu3 %v8935_v38  ;;  %v7717_v21 = vadd.f32 %v3382_v27, %v3182_v2 }
 0x461   : > { %3817 = vmatmul.f32.gmra.mxu2 %v8931_v15 }
 0x463   : > { %v3388_v60 = vpop.f32.mrf.mxu3  ;;  %v3013_v36 = vpop.f32.mrf.mxu1 }
 0x464   : > { %v2821_v45 = vpop.f32.mrf.mxu0  ;;  %v3014_v37 = vadd.f32 %v3013_v36, %v2813_v10 }
 0x465   : > { %v3186_v56 = vpop.f32.mrf.mxu2 }
 0x466   : > { %v3187_v46 = vadd.f32 %v3186_v56, %v3014_v37  ;;  %3645 = vmatmul.f32.gmra.mxu1 %v8935_v38 }
 0x467   : > { %3501 = vmatmul.f32.gmra.mxu0 %v8940_v62 }
 0x468   : > { %4085 = vmatmul.f32.gmra.mxu3 %v8940_v62  ;;  %v7723_v43 = vadd.f32 %v3388_v60, %v3187_v46 }
 0x469   : > { %3825 = vmatmul.f32.gmra.mxu2 %v8934_v3 }
 0x46b   : > { %v3394_v27 = vpop.f32.mrf.mxu3  ;;  %v3017_v23 = vpop.f32.mrf.mxu1 }
 0x46c   : > { %v2829_v29 = vpop.f32.mrf.mxu0  ;;  %v3018_v15 = vadd.f32 %v3017_v23, %v2821_v45  ;;  %v9044_v23 = vld [vmem:[#allocation43_spill] sm:$0xff] }
 0x46d   : > { %v3191_v19 = vpop.f32.mrf.mxu2 }
 0x46e   : > { %v3192_v2 = vadd.f32 %v3191_v19, %v3018_v15  ;;  %3649 = vmatmul.f32.gmra.mxu1 %v8940_v62 }
 0x46f   : > { %3505 = vmatmul.f32.gmra.mxu0 %v8946_v40 }
 0x470   : > { %4089 = vmatmul.f32.gmra.mxu3 %v8946_v40  ;;  %v7729_v10 = vadd.f32 %v3394_v27, %v3192_v2 }
 0x471   : > { %3833 = vmatmul.f32.gmra.mxu2 %v8939_v61 }
 0x472   : > { %9042 = vst [vmem:[#allocation149_spill] sm:$0xff] %v7729_v10 }
 0x473   : > { %v3400_v60 = vpop.f32.mrf.mxu3  ;;  %v3021_v37 = vpop.f32.mrf.mxu1 }
 0x474   : > { %v2837_v36 = vpop.f32.mrf.mxu0  ;;  %v3022_v3 = vadd.f32 %v3021_v37, %v2829_v29  ;;  %v9046_v37 = vld [vmem:[#allocation47_spill] sm:$0xff] }
 0x475   : > { %v3196_v56 = vpop.f32.mrf.mxu2 }
 0x476   : > { %v3197_v46 = vadd.f32 %v3196_v56, %v3022_v3  ;;  %3653 = vmatmul.f32.gmra.mxu1 %v8946_v40 }
 0x477   : > { %3509 = vmatmul.f32.gmra.mxu0 %v8950_v41 }
 0x478   : > { %4093 = vmatmul.f32.gmra.mxu3 %v8950_v41  ;;  %v7735_v45 = vadd.f32 %v3400_v60, %v3197_v46 }
 0x479   : > { %3841 = vmatmul.f32.gmra.mxu2 %v9044_v23 }
 0x47a   : > { %9043 = vst [vmem:[#allocation150_spill] sm:$0xff] %v7735_v45 }
 0x47b   : > { %v3406_v27 = vpop.f32.mrf.mxu3  ;;  %v3025_v19 = vpop.f32.mrf.mxu1 }
 0x47c   : > { %v2845_v15 = vpop.f32.mrf.mxu0  ;;  %v3026_v61 = vadd.f32 %v3025_v19, %v2837_v36  ;;  %v9048_v19 = vld [vmem:[#allocation51_spill] sm:$0xff] }
 0x47d   : > { %v3201_v2 = vpop.f32.mrf.mxu2 }
 0x47e   : > { %v3202_v10 = vadd.f32 %v3201_v2, %v3026_v61  ;;  %3657 = vmatmul.f32.gmra.mxu1 %v8950_v41 }
 0x47f   : > { %3513 = vmatmul.f32.gmra.mxu0 %v8954_v31 }
 0x480   : > { %4097 = vmatmul.f32.gmra.mxu3 %v8954_v31  ;;  %v7741_v29 = vadd.f32 %v3406_v27, %v3202_v10 }
 0x481   : > { %3849 = vmatmul.f32.gmra.mxu2 %v9046_v37 }
 0x482   : > { %9045 = vst [vmem:[#allocation107_spill] sm:$0xff] %v7741_v29 }
 0x483   : > { %v3412_v60 = vpop.f32.mrf.mxu3  ;;  %v3029_v56 = vpop.f32.mrf.mxu1 }
 0x484   : > { %v2853_v3 = vpop.f32.mrf.mxu0  ;;  %v3030_v46 = vadd.f32 %v3029_v56, %v2845_v15  ;;  %v9050_v56 = vld [vmem:[#allocation55_spill] sm:$0xff] }
 0x485   : > { %v3206_v23 = vpop.f32.mrf.mxu2 }
 0x486   : > { %v3207_v45 = vadd.f32 %v3206_v23, %v3030_v46  ;;  %3661 = vmatmul.f32.gmra.mxu1 %v8954_v31  ;;  %v9051_v31 = vld [vmem:[#allocation53_spill] sm:$0xff] }
 0x487   : > { %3517 = vmatmul.f32.gmra.mxu0 %v8958_v14 }
 0x488   : > { %4101 = vmatmul.f32.gmra.mxu3 %v8958_v14  ;;  %v7747_v36 = vadd.f32 %v3412_v60, %v3207_v45 }
 0x489   : > { %3857 = vmatmul.f32.gmra.mxu2 %v9048_v19 }
 0x48a   : > { %9047 = vst [vmem:[#allocation151_spill] sm:$0xff] %v7747_v36 }
 0x48b   : > { %v3418_v10 = vpop.f32.mrf.mxu3  ;;  %v3033_v61 = vpop.f32.mrf.mxu1 }
 0x48c   : > { %v2861_v27 = vpop.f32.mrf.mxu0  ;;  %v3034_v2 = vadd.f32 %v3033_v61, %v2853_v3  ;;  %v9053_v61 = vld [vmem:[#allocation59_spill] sm:$0xff] }
 0x48d   : > { %v3211_v37 = vpop.f32.mrf.mxu2 }
 0x48e   : > { %v3212_v29 = vadd.f32 %v3211_v37, %v3034_v2  ;;  %3665 = vmatmul.f32.gmra.mxu1 %v8958_v14  ;;  %v9054_v14 = vld [vmem:[#allocation57_spill] sm:$0xff] }
 0x48f   : > { %3521 = vmatmul.f32.gmra.mxu0 %v8962_v16 }
 0x490   : > { %4105 = vmatmul.f32.gmra.mxu3 %v8962_v16  ;;  %v7753_v15 = vadd.f32 %v3418_v10, %v3212_v29 }
 0x491   : > { %3865 = vmatmul.f32.gmra.mxu2 %v9050_v56 }
 0x492   : > { %9049 = vst [vmem:[#allocation153_spill] sm:$0xff] %v7753_v15 }
 0x493   : > { %v3424_v45 = vpop.f32.mrf.mxu3  ;;  %v3037_v46 = vpop.f32.mrf.mxu1 }
 0x494   : > { %v2869_v60 = vpop.f32.mrf.mxu0  ;;  %v3038_v23 = vadd.f32 %v3037_v46, %v2861_v27  ;;  %v9056_v46 = vld [vmem:[#allocation63_spill] sm:$0xff] }
 0x495   : > { %v3216_v19 = vpop.f32.mrf.mxu2 }
 0x496   : > { %v3217_v36 = vadd.f32 %v3216_v19, %v3038_v23  ;;  %3669 = vmatmul.f32.gmra.mxu1 %v8962_v16  ;;  %v9057_v16 = vld [vmem:[#allocation61_spill] sm:$0xff] }
 0x497   : > { %3525 = vmatmul.f32.gmra.mxu0 %v9051_v31 }
 0x498   : > { %4109 = vmatmul.f32.gmra.mxu3 %v9051_v31  ;;  %v7759_v3 = vadd.f32 %v3424_v45, %v3217_v36 }
 0x499   : > { %3873 = vmatmul.f32.gmra.mxu2 %v9053_v61 }
 0x49a   : > { %9052 = vst [vmem:[#allocation155_spill] sm:$0xff] %v7759_v3 }
 0x49b   : > { %v3430_v29 = vpop.f32.mrf.mxu3  ;;  %v3041_v2 = vpop.f32.mrf.mxu1 }
 0x49c   : > { %v2877_v10 = vpop.f32.mrf.mxu0  ;;  %v3042_v37 = vadd.f32 %v3041_v2, %v2869_v60  ;;  %v9059_v2 = vld [vmem:[#allocation67_spill] sm:$0xff] }
 0x49d   : > { %v3221_v56 = vpop.f32.mrf.mxu2 }
 0x49e   : > { %v3222_v15 = vadd.f32 %v3221_v56, %v3042_v37  ;;  %3673 = vmatmul.f32.gmra.mxu1 %v9051_v31 }
 0x49f   : > { %3529 = vmatmul.f32.gmra.mxu0 %v9054_v14 }
 0x4a0   : > { %4113 = vmatmul.f32.gmra.mxu3 %v9054_v14  ;;  %v7765_v27 = vadd.f32 %v3430_v29, %v3222_v15 }
 0x4a1   : > { %3881 = vmatmul.f32.gmra.mxu2 %v9056_v46 }
 0x4a2   : > { %9055 = vst [vmem:[#allocation159_spill] sm:$0xff] %v7765_v27 }
 0x4a3   : > { %v3436_v36 = vpop.f32.mrf.mxu3  ;;  %v3045_v23 = vpop.f32.mrf.mxu1 }
 0x4a4   : > { %v2885_v45 = vpop.f32.mrf.mxu0  ;;  %v3046_v19 = vadd.f32 %v3045_v23, %v2877_v10  ;;  %v9060_v23 = vld [vmem:[#allocation71_spill] sm:$0xff] }
 0x4a5   : > { %v3226_v61 = vpop.f32.mrf.mxu2 }
 0x4a6   : > { %v3227_v3 = vadd.f32 %v3226_v61, %v3046_v19  ;;  %3677 = vmatmul.f32.gmra.mxu1 %v9054_v14 }
 0x4a7   : > { %3533 = vmatmul.f32.gmra.mxu0 %v9057_v16 }
 0x4a8   : > { %4117 = vmatmul.f32.gmra.mxu3 %v9057_v16  ;;  %v7771_v60 = vadd.f32 %v3436_v36, %v3227_v3 }
 0x4a9   : > { %3889 = vmatmul.f32.gmra.mxu2 %v9059_v2 }
 0x4aa   : > { %9058 = vst [vmem:[#allocation15_spill] sm:$0xff] %v7771_v60 }
 0x4ab   : > { %v3442_v15 = vpop.f32.mrf.mxu3  ;;  %v3049_v37 = vpop.f32.mrf.mxu1 }
 0x4ac   : > { %v2893_v29 = vpop.f32.mrf.mxu0  ;;  %v3050_v56 = vadd.f32 %v3049_v37, %v2885_v45  ;;  %v9062_v37 = vld [vmem:[#allocation75_spill] sm:$0xff] }
 0x4ad   : > { %v3231_v46 = vpop.f32.mrf.mxu2 }
 0x4ae   : > { %v3232_v27 = vadd.f32 %v3231_v46, %v3050_v56  ;;  %3681 = vmatmul.f32.gmra.mxu1 %v9057_v16 }
 0x4af   : > { %3537 = vmatmul.f32.gmra.mxu0 %v8986_v57 }
 0x4b0   : > { %4121 = vmatmul.f32.gmra.mxu3 %v8986_v57  ;;  %v7777_v10 = vadd.f32 %v3442_v15, %v3232_v27 }
 0x4b1   : > { %3897 = vmatmul.f32.gmra.mxu2 %v9060_v23 }
 0x4b3   : > { %v3448_v3 = vpop.f32.mrf.mxu3  ;;  %v3053_v36 = vpop.f32.mrf.mxu1 }
 0x4b4   : > { %v3478_v19 = vpop.f32.mrf.mxu0  ;;  %v3054_v61 = vadd.f32 %v3053_v36, %v2893_v29 }
 0x4b5   : > { %v3236_v2 = vpop.f32.mrf.mxu2  ;;  %v3479_v29 = vadd.f32 %v3478_v19, %v7584_v20  ;;  %v9066_v20 = vld [vmem:[#allocation77_spill] sm:$0xff]  ;;  %v9067_v19 = vld [vmem:[#allocation82_spill] sm:$0xff] }
 0x4b6   : > { %v3237_v60 = vadd.f32 %v3236_v2, %v3054_v61  ;;  %3685 = vmatmul.f32.gmra.mxu1 %v8986_v57  ;;  %v9064_v61 = vld [vmem:[#allocation79_spill] sm:$0xff] }
 0x4b7   : > { %3541 = vmatmul.f32.gmra.mxu0 %v8990_v63 }
 0x4b8   : > { %4125 = vmatmul.f32.gmra.mxu3 %v8990_v63  ;;  %v7783_v45 = vadd.f32 %v3448_v3, %v3237_v60 }
 0x4b9   : > { %3905 = vmatmul.f32.gmra.mxu2 %v9062_v37 }
 0x4ba   : > { %9061 = vst [vmem:[#allocation6_spill] sm:$0xff] %v7783_v45 }
 0x4bb   : > { %v4062_v27 = vpop.f32.mrf.mxu3  ;;  %v3626_v56 = vpop.f32.mrf.mxu1 }
 0x4bc   : > { %v3482_v15 = vpop.f32.mrf.mxu0  ;;  %v3627_v36 = vadd.f32 %v3626_v56, %v3479_v29 }
 0x4bd   : > { %v3778_v46 = vpop.f32.mrf.mxu2  ;;  %v3483_v60 = vadd.f32 %v3482_v15, %v7591_v42 }
 0x4be   : > { %v7786_v23 = vadd.f32 %v4062_v27, %v3778_v46  ;;  %3689 = vmatmul.f32.gmra.mxu1 %v8990_v63  ;;  %5811 = vtanh.f32 %v3627_v36 }
 0x4bf   : > { %3545 = vmatmul.f32.gmra.mxu0 %v8850_v59 }
 0x4c0   : > { %9063 = vst [vmem:[#allocation161_spill] sm:$0xff] %v7786_v23  ;;  %4129 = vmatmul.f32.gmra.mxu3 %v8850_v59 }
 0x4c1   : > { %3913 = vmatmul.f32.gmra.mxu2 %v9064_v61 }
 0x4c3   : > { %v4066_v3 = vpop.f32.mrf.mxu3  ;;  %v3630_v37 = vpop.f32.mrf.mxu1 }
 0x4c4   : > { %v3486_v2 = vpop.f32.mrf.mxu0  ;;  %v3631_v45 = vadd.f32 %v3630_v37, %v3483_v60  ;;  %v5812_v56 = vpop.eup %5811 }
 0x4c5   : > { %v3786_v27 = vpop.f32.mrf.mxu2  ;;  %v3487_v42 = vadd.f32 %v3486_v2, %v7603_v58  ;;  %v9070_v58 = vld [vmem:[#allocation87_spill] sm:$0xff] }
 0x4c6   : > { %v7794_v46 = vadd.f32 %v4066_v3, %v3786_v27  ;;  %5813 = vtanh.f32 %v3631_v45  ;;  %3693 = vmatmul.f32.gmra.mxu1 %v8850_v59  ;;  %v9068_v3 = vld [vmem:[#allocation142_spill] sm:$0xff]  ;;  %v9069_v45 = vld [vmem:[#allocation143_spill] sm:$0xff] }
 0x4c7   : > { %3549 = vmatmul.f32.gmra.mxu0 %v9066_v20  ;;  %v5208_v27 = vmul.f32 %v5812_v56, %v9068_v3 }
 0x4c8   : > { %9065 = vst [vmem:[#allocation19_spill] sm:$0xff] %v7794_v46  ;;  %4133 = vmatmul.f32.gmra.mxu3 %v9066_v20 }
 0x4c9   : > { %3921 = vmatmul.f32.gmra.mxu2 %v9067_v19 }
 0x4cb   : > { %v4070_v15 = vpop.f32.mrf.mxu3  ;;  %v3634_v61 = vpop.f32.mrf.mxu1 }
 0x4cc   : > { %v3490_v29 = vpop.f32.mrf.mxu0  ;;  %v5814_v36 = vpop.eup %5813  ;;  %v3635_v60 = vadd.f32 %v3634_v61, %v3487_v42 }
 0x4cd   : > { %v3794_v37 = vpop.f32.mrf.mxu2  ;;  %v5212_v46 = vmul.f32 %v5814_v36, %v9069_v45  ;;  %v3491_v2 = vadd.f32 %v3490_v29, %v7614_v55 }
 0x4ce   : > { %v7803_v23 = vadd.f32 %v4070_v15, %v3794_v37  ;;  %5815 = vtanh.f32 %v3635_v60  ;;  %3697 = vmatmul.f32.gmra.mxu1 %v9066_v20  ;;  %v9071_v15 = vld [vmem:[#allocation144_spill] sm:$0xff] }
 0x4cf   : > { %3553 = vmatmul.f32.gmra.mxu0 %v6497_v6  ;;  %v5376_v19 = vadd.f32 %v5212_v46, %v5208_v27 }
 0x4d0   : > { %4137 = vmatmul.f32.gmra.mxu3 %v6497_v6 }
 0x4d1   : > { %3929 = vmatmul.f32.gmra.mxu2 %v9070_v58 }
 0x4d3   : > { %v4074_v42 = vpop.f32.mrf.mxu3  ;;  %v3638_v59 = vpop.f32.mrf.mxu1 }
 0x4d4   : > { %v3494_v61 = vpop.f32.mrf.mxu0  ;;  %v5816_v56 = vpop.eup %5815  ;;  %v3639_v3 = vadd.f32 %v3638_v59, %v3491_v2 }
 0x4d5   : > { %v3802_v36 = vpop.f32.mrf.mxu2  ;;  %v5216_v37 = vmul.f32 %v5816_v56, %v9071_v15  ;;  %v3495_v55 = vadd.f32 %v3494_v61, %v7621_v13 }
 0x4d6   : > { %v7811_v60 = vadd.f32 %v4074_v42, %v3802_v36  ;;  %5817 = vtanh.f32 %v3639_v3  ;;  %3701 = vmatmul.f32.gmra.mxu1 %v6497_v6  ;;  %v9072_v42 = vld [vmem:[#allocation99_spill] sm:$0xff] }
 0x4d7   : > { %3557 = vmatmul.f32.gmra.mxu0 %v9004_v33  ;;  %v5377_v46 = vadd.f32 %v5376_v19, %v5216_v37 }
 0x4d8   : > { %4141 = vmatmul.f32.gmra.mxu3 %v9004_v33 }
 0x4d9   : > { %3937 = vmatmul.f32.gmra.mxu2 %v9000_v49 }
 0x4db   : > { %v4078_v29 = vpop.f32.mrf.mxu3  ;;  %v3642_v59 = vpop.f32.mrf.mxu1 }
 0x4dc   : > { %v3498_v27 = vpop.f32.mrf.mxu0  ;;  %v5818_v58 = vpop.eup %5817  ;;  %v3643_v2 = vadd.f32 %v3642_v59, %v3495_v55 }
 0x4dd   : > { %v3810_v56 = vpop.f32.mrf.mxu2  ;;  %v5220_v36 = vmul.f32 %v5818_v58, %v9072_v42  ;;  %v3499_v49 = vadd.f32 %v3498_v27, %v7627_v9 }
 0x4de   : > { %v7819_v3 = vadd.f32 %v4078_v29, %v3810_v56  ;;  %5819 = vtanh.f32 %v3643_v2  ;;  %3705 = vmatmul.f32.gmra.mxu1 %v9004_v33  ;;  %v9073_v29 = vld [vmem:[#allocation147_spill] sm:$0xff] }
 0x4df   : > { %3561 = vmatmul.f32.gmra.mxu0 %v8868_v35  ;;  %v5378_v19 = vadd.f32 %v5377_v46, %v5220_v36 }
 0x4e0   : > { %4145 = vmatmul.f32.gmra.mxu3 %v8868_v35 }
 0x4e1   : > { %3945 = vmatmul.f32.gmra.mxu2 %v9003_v44 }
 0x4e3   : > { %v4082_v13 = vpop.f32.mrf.mxu3  ;;  %v3646_v37 = vpop.f32.mrf.mxu1 }
 0x4e4   : > { %v3502_v61 = vpop.f32.mrf.mxu0  ;;  %v5820_v55 = vpop.eup %5819  ;;  %v3647_v59 = vadd.f32 %v3646_v37, %v3499_v49 }
 0x4e5   : > { %v3818_v58 = vpop.f32.mrf.mxu2  ;;  %v5224_v56 = vmul.f32 %v5820_v55, %v9073_v29  ;;  %v3503_v44 = vadd.f32 %v3502_v61, %v7633_v11 }
 0x4e6   : > { %v7827_v2 = vadd.f32 %v4082_v13, %v3818_v58  ;;  %5821 = vtanh.f32 %v3647_v59  ;;  %3709 = vmatmul.f32.gmra.mxu1 %v8868_v35  ;;  %v9074_v13 = vld [vmem:[#allocation109_spill] sm:$0xff] }
 0x4e7   : > { %3565 = vmatmul.f32.gmra.mxu0 %v9009_v51  ;;  %v5379_v46 = vadd.f32 %v5378_v19, %v5224_v56 }
 0x4e8   : > { %4149 = vmatmul.f32.gmra.mxu3 %v9009_v51 }
 0x4e9   : > { %3953 = vmatmul.f32.gmra.mxu2 %v9005_v22 }
 0x4eb   : > { %v4086_v9 = vpop.f32.mrf.mxu3  ;;  %v3650_v36 = vpop.f32.mrf.mxu1 }
 0x4ec   : > { %v3506_v27 = vpop.f32.mrf.mxu0  ;;  %v5822_v49 = vpop.eup %5821  ;;  %v3651_v37 = vadd.f32 %v3650_v36, %v3503_v44 }
 0x4ed   : > { %v3826_v55 = vpop.f32.mrf.mxu2  ;;  %v5228_v58 = vmul.f32 %v5822_v49, %v9074_v13  ;;  %v3507_v22 = vadd.f32 %v3506_v27, %v7639_v7 }
 0x4ee   : > { %v7835_v59 = vadd.f32 %v4086_v9, %v3826_v55  ;;  %5823 = vtanh.f32 %v3651_v37  ;;  %3713 = vmatmul.f32.gmra.mxu1 %v9009_v51  ;;  %v9075_v9 = vld [vmem:[#allocation114_spill] sm:$0xff] }
 0x4ef   : > { %3569 = vmatmul.f32.gmra.mxu0 %v9013_v25  ;;  %v5380_v19 = vadd.f32 %v5379_v46, %v5228_v58 }
 0x4f0   : > { %4153 = vmatmul.f32.gmra.mxu3 %v9013_v25 }
 0x4f1   : > { %3961 = vmatmul.f32.gmra.mxu2 %v9008_v26  ;;  %v9077_v26 = vld [vmem:[#allocation110_spill] sm:$0xff] }
 0x4f3   : > { %v4090_v11 = vpop.f32.mrf.mxu3  ;;  %v3654_v56 = vpop.f32.mrf.mxu1 }
 0x4f4   : > { %v3510_v61 = vpop.f32.mrf.mxu0  ;;  %v5824_v44 = vpop.eup %5823  ;;  %v3655_v36 = vadd.f32 %v3654_v56, %v3507_v22 }
 0x4f5   : > { %v3834_v49 = vpop.f32.mrf.mxu2  ;;  %v5232_v55 = vmul.f32 %v5824_v44, %v9075_v9  ;;  %v3511_v7 = vadd.f32 %v3510_v61, %v7645_v34  ;;  %v9080_v34 = vld [vmem:[#allocation146_spill] sm:$0xff] }
 0x4f6   : > { %v7843_v37 = vadd.f32 %v4090_v11, %v3834_v49  ;;  %5825 = vtanh.f32 %v3655_v36  ;;  %3717 = vmatmul.f32.gmra.mxu1 %v9013_v25  ;;  %v9078_v11 = vld [vmem:[#allocation119_spill] sm:$0xff] }
 0x4f7   : > { %3573 = vmatmul.f32.gmra.mxu0 %v9016_v54  ;;  %v5381_v46 = vadd.f32 %v5380_v19, %v5232_v55  ;;  %v9079_v55 = vld [vmem:[#allocation115_spill] sm:$0xff] }
 0x4f8   : > { %9076 = vst [vmem:[#allocation7_spill] sm:$0xff] %v7843_v37  ;;  %4157 = vmatmul.f32.gmra.mxu3 %v9016_v54 }
 0x4f9   : > { %3969 = vmatmul.f32.gmra.mxu2 %v9077_v26 }
 0x4fb   : > { %v4094_v27 = vpop.f32.mrf.mxu3  ;;  %v3658_v22 = vpop.f32.mrf.mxu1 }
 0x4fc   : > { %v3514_v58 = vpop.f32.mrf.mxu0  ;;  %v5826_v56 = vpop.eup %5825  ;;  %v3659_v13 = vadd.f32 %v3658_v22, %v3511_v7 }
 0x4fd   : > { %v3842_v44 = vpop.f32.mrf.mxu2  ;;  %v5236_v49 = vmul.f32 %v5826_v56, %v9078_v11  ;;  %v3515_v61 = vadd.f32 %v3514_v58, %v9080_v34  ;;  %v9083_v58 = vld [vmem:[#allocation89_spill] sm:$0xff] }
 0x4fe   : > { %v7851_v36 = vadd.f32 %v4094_v27, %v3842_v44  ;;  %5827 = vtanh.f32 %v3659_v13  ;;  %3721 = vmatmul.f32.gmra.mxu1 %v9016_v54  ;;  %v9081_v27 = vld [vmem:[#allocation124_spill] sm:$0xff] }
 0x4ff   : > { %3577 = vmatmul.f32.gmra.mxu0 %v8888_v28  ;;  %v5382_v19 = vadd.f32 %v5381_v46, %v5236_v49  ;;  %v9082_v49 = vld [vmem:[#allocation120_spill] sm:$0xff] }
 0x500   : > { %4161 = vmatmul.f32.gmra.mxu3 %v8888_v28 }
 0x501   : > { %3977 = vmatmul.f32.gmra.mxu2 %v9079_v55 }
 0x503   : > { %v4098_v26 = vpop.f32.mrf.mxu3  ;;  %v3662_v7 = vpop.f32.mrf.mxu1 }
 0x504   : > { %v3518_v9 = vpop.f32.mrf.mxu0  ;;  %v5828_v22 = vpop.eup %5827  ;;  %v3663_v37 = vadd.f32 %v3662_v7, %v3515_v61 }
 0x505   : > { %v3850_v56 = vpop.f32.mrf.mxu2  ;;  %v5240_v44 = vmul.f32 %v5828_v22, %v9081_v27  ;;  %v3519_v55 = vadd.f32 %v3518_v9, %v9083_v58 }
 0x506   : > { %v7859_v13 = vadd.f32 %v4098_v26, %v3850_v56  ;;  %5829 = vtanh.f32 %v3663_v37  ;;  %3725 = vmatmul.f32.gmra.mxu1 %v8888_v28  ;;  %v9084_v26 = vld [vmem:[#allocation129_spill] sm:$0xff] }
 0x507   : > { %3581 = vmatmul.f32.gmra.mxu0 %v9022_v24  ;;  %v5383_v46 = vadd.f32 %v5382_v19, %v5240_v44  ;;  %v9086_v44 = vld [vmem:[#allocation125_spill] sm:$0xff] }
 0x508   : > { %4165 = vmatmul.f32.gmra.mxu3 %v9022_v24 }
 0x509   : > { %3985 = vmatmul.f32.gmra.mxu2 %v9082_v49 }
 0x50b   : > { %v4102_v34 = vpop.f32.mrf.mxu3  ;;  %v3666_v61 = vpop.f32.mrf.mxu1 }
 0x50c   : > { %v3522_v11 = vpop.f32.mrf.mxu0  ;;  %v5830_v7 = vpop.eup %5829  ;;  %v3667_v54 = vadd.f32 %v3666_v61, %v3519_v55 }
 0x50d   : > { %v3858_v22 = vpop.f32.mrf.mxu2  ;;  %v5244_v56 = vmul.f32 %v5830_v7, %v9084_v26  ;;  %v3523_v9 = vadd.f32 %v3522_v11, %v7663_v32  ;;  %v9089_v26 = vld [vmem:[#allocation122_spill] sm:$0xff]  ;;  %v9091_v32 = vld [vmem:[#allocation104_spill] sm:$0xff] }
 0x50e   : > { %v7867_v37 = vadd.f32 %v4102_v34, %v3858_v22  ;;  %5831 = vtanh.f32 %v3667_v54  ;;  %3729 = vmatmul.f32.gmra.mxu1 %v9022_v24  ;;  %v9087_v34 = vld [vmem:[#allocation152_spill] sm:$0xff] }
 0x50f   : > { %3585 = vmatmul.f32.gmra.mxu0 %v9026_v17  ;;  %v5384_v19 = vadd.f32 %v5383_v46, %v5244_v56  ;;  %v9090_v56 = vld [vmem:[#allocation130_spill] sm:$0xff] }
 0x510   : > { %9085 = vst [vmem:[#allocation23_spill] sm:$0xff] %v7867_v37  ;;  %4169 = vmatmul.f32.gmra.mxu3 %v9026_v17 }
 0x511   : > { %3993 = vmatmul.f32.gmra.mxu2 %v9086_v44 }
 0x513   : > { %v4106_v49 = vpop.f32.mrf.mxu3  ;;  %v3670_v55 = vpop.f32.mrf.mxu1 }
 0x514   : > { %v3526_v58 = vpop.f32.mrf.mxu0  ;;  %v5832_v61 = vpop.eup %5831  ;;  %v3671_v27 = vadd.f32 %v3670_v55, %v3523_v9 }
 0x515   : > { %v3866_v7 = vpop.f32.mrf.mxu2  ;;  %v5248_v22 = vmul.f32 %v5832_v61, %v9087_v34  ;;  %v3527_v11 = vadd.f32 %v3526_v58, %v9091_v32  ;;  %v9093_v34 = vld [vmem:[#allocation127_spill] sm:$0xff]  ;;  %v9095_v58 = vld [vmem:[#allocation148_spill] sm:$0xff] }
 0x516   : > { %v7875_v54 = vadd.f32 %v4106_v49, %v3866_v7  ;;  %5833 = vtanh.f32 %v3671_v27  ;;  %3733 = vmatmul.f32.gmra.mxu1 %v9026_v17  ;;  %v9092_v49 = vld [vmem:[#allocation154_spill] sm:$0xff] }
 0x517   : > { %3589 = vmatmul.f32.gmra.mxu0 %v9089_v26  ;;  %v5385_v46 = vadd.f32 %v5384_v19, %v5248_v22  ;;  %v9094_v22 = vld [vmem:[#allocation134_spill] sm:$0xff] }
 0x518   : > { %9088 = vst [vmem:[#allocation12_spill] sm:$0xff] %v7875_v54  ;;  %4173 = vmatmul.f32.gmra.mxu3 %v9089_v26 }
 0x519   : > { %4001 = vmatmul.f32.gmra.mxu2 %v9090_v56 }
 0x51b   : > { %v4110_v44 = vpop.f32.mrf.mxu3  ;;  %v3674_v9 = vpop.f32.mrf.mxu1 }
 0x51c   : > { %v3530_v24 = vpop.f32.mrf.mxu0  ;;  %v5834_v55 = vpop.eup %5833  ;;  %v3675_v37 = vadd.f32 %v3674_v9, %v3527_v11 }
 0x51d   : > { %v3874_v61 = vpop.f32.mrf.mxu2  ;;  %v5252_v7 = vmul.f32 %v5834_v55, %v9092_v49  ;;  %v3531_v56 = vadd.f32 %v3530_v24, %v9095_v58 }
 0x51e   : > { %v7883_v27 = vadd.f32 %v4110_v44, %v3874_v61  ;;  %5835 = vtanh.f32 %v3675_v37  ;;  %3737 = vmatmul.f32.gmra.mxu1 %v9089_v26  ;;  %v9096_v44 = vld [vmem:[#allocation156_spill] sm:$0xff] }
 0x51f   : > { %3593 = vmatmul.f32.gmra.mxu0 %v9093_v34  ;;  %v5386_v19 = vadd.f32 %v5385_v46, %v5252_v7  ;;  %v9097_v7 = vld [vmem:[#allocation138_spill] sm:$0xff] }
 0x520   : > { %4177 = vmatmul.f32.gmra.mxu3 %v9093_v34 }
 0x521   : > { %4009 = vmatmul.f32.gmra.mxu2 %v9094_v22 }
 0x523   : > { %v4114_v32 = vpop.f32.mrf.mxu3  ;;  %v3678_v11 = vpop.f32.mrf.mxu1 }
 0x524   : > { %v3534_v17 = vpop.f32.mrf.mxu0  ;;  %v5836_v9 = vpop.eup %5835  ;;  %v3679_v54 = vadd.f32 %v3678_v11, %v3531_v56 }
 0x525   : > { %v3882_v55 = vpop.f32.mrf.mxu2  ;;  %v5256_v61 = vmul.f32 %v5836_v9, %v9096_v44  ;;  %v3535_v24 = vadd.f32 %v3534_v17, %v7681_v39 }
 0x526   : > { %v7891_v37 = vadd.f32 %v4114_v32, %v3882_v55  ;;  %5837 = vtanh.f32 %v3679_v54  ;;  %3741 = vmatmul.f32.gmra.mxu1 %v9093_v34  ;;  %v9098_v32 = vld [vmem:[#allocation157_spill] sm:$0xff] }
 0x527   : > { %3597 = vmatmul.f32.gmra.mxu0 %v9037_v48  ;;  %v5387_v46 = vadd.f32 %v5386_v19, %v5256_v61 }
 0x528   : > { %4181 = vmatmul.f32.gmra.mxu3 %v9037_v48 }
 0x529   : > { %4017 = vmatmul.f32.gmra.mxu2 %v9097_v7 }
 0x52b   : > { %v4118_v22 = vpop.f32.mrf.mxu3  ;;  %v3682_v56 = vpop.f32.mrf.mxu1 }
 0x52c   : > { %v3538_v58 = vpop.f32.mrf.mxu0  ;;  %v5838_v11 = vpop.eup %5837  ;;  %v3683_v49 = vadd.f32 %v3682_v56, %v3535_v24 }
 0x52d   : > { %v3890_v9 = vpop.f32.mrf.mxu2  ;;  %v5260_v55 = vmul.f32 %v5838_v11, %v9098_v32  ;;  %v3539_v17 = vadd.f32 %v3538_v58, %v7687_v4 }
 0x52e   : > { %v7899_v54 = vadd.f32 %v4118_v22, %v3890_v9  ;;  %5839 = vtanh.f32 %v3683_v49  ;;  %3745 = vmatmul.f32.gmra.mxu1 %v9037_v48  ;;  %v9099_v22 = vld [vmem:[#allocation158_spill] sm:$0xff] }
 0x52f   : > { %3601 = vmatmul.f32.gmra.mxu0 %v9040_v12  ;;  %v5388_v19 = vadd.f32 %v5387_v46, %v5260_v55  ;;  %v9100_v46 = vld [vmem:[#allocation8_spill] sm:$0xff] }
 0x530   : > { %4185 = vmatmul.f32.gmra.mxu3 %v9040_v12 }
 0x531   : > { %4025 = vmatmul.f32.gmra.mxu2 %v9036_v53 }
 0x533   : > { %v4122_v39 = vpop.f32.mrf.mxu3  ;;  %v3686_v7 = vpop.f32.mrf.mxu1 }
 0x534   : > { %v3542_v61 = vpop.f32.mrf.mxu0  ;;  %v5840_v24 = vpop.eup %5839  ;;  %v3687_v56 = vadd.f32 %v3686_v7, %v3539_v17  ;;  %v9101_v7 = vld [vmem:[#allocation160_spill] sm:$0xff] }
 0x535   : > { %v3898_v11 = vpop.f32.mrf.mxu2  ;;  %v5264_v9 = vmul.f32 %v5840_v24, %v9099_v22 }
 0x536   : > { %v7907_v49 = vadd.f32 %v4122_v39, %v3898_v11  ;;  %5841 = vtanh.f32 %v3687_v56  ;;  %3749 = vmatmul.f32.gmra.mxu1 %v9040_v12  ;;  %v3543_v39 = vadd.f32 %v3542_v61, %v7693_v30  ;;  %v9102_v56 = vld [vmem:[#allocation9_spill] sm:$0xff]  ;;  %v9103_v11 = vld [vmem:[#allocation10_spill] sm:$0xff] }
 0x537   : > { %4213 = vmatmul.f32.vlgmr.msrb.gmra.mxu0 %v9100_v46  ;;  %v5389_v55 = vadd.f32 %v5388_v19, %v5264_v9  ;;  %v9104_v61 = vld [vmem:[#allocation14_spill] sm:$0xff] }
 0x538   : > { %4758 = vmatmul.f32.vlgmr.msrb.gmra.mxu3 %v8917_v50 }
 0x539   : > { %4610 = vmatmul.f32.vlgmr.msrb.gmra.mxu2 %v8917_v50 }
 0x53b   : > { %v4126_v53 = vpop.f32.mrf.mxu3  ;;  %v3690_v58 = vpop.f32.mrf.mxu1 }
 0x53c   : > { %v3546_v4 = vpop.f32.mrf.mxu0  ;;  %v5842_v32 = vpop.eup %5841  ;;  %v3691_v50 = vadd.f32 %v3690_v58, %v3543_v39 }
 0x53d   : > { %v3906_v17 = vpop.f32.mrf.mxu2  ;;  %v5268_v44 = vmul.f32 %v5842_v32, %v9101_v7  ;;  %v3547_v9 = vadd.f32 %v3546_v4, %v7699_v18 }
 0x53e   : > { %v7914_v24 = vadd.f32 %v4126_v53, %v3906_v17  ;;  %4394 = vmatmul.f32.vlgmr.msrb.gmra.mxu1 %v9103_v11  ;;  %5843 = vtanh.f32 %v3691_v50  ;;  %v9106_v50 = vld [vmem:[#allocation162_spill] sm:$0xff] }
 0x53f   : > { %4218 = vmatmul.f32.gmra.mxu0 %v9102_v56  ;;  %v7919_v19 = vadd.f32 %v5389_v55, %v5268_v44  ;;  %v9105_v44 = vld [vmem:[#allocation11_spill] sm:$0xff] }
 0x540   : > { %4762 = vmatmul.f32.gmra.mxu3 %v8920_v52 }
 0x541   : > { %4614 = vmatmul.f32.gmra.mxu2 %v8920_v52 }
 0x543   : > { %v4130_v46 = vpop.f32.mrf.mxu3  ;;  %v3694_v32 = vpop.f32.mrf.mxu1 }
 0x544   : > { %v3550_v22 = vpop.f32.mrf.mxu0  ;;  %v3695_v53 = vadd.f32 %v3694_v32, %v3547_v9  ;;  %v5844_v52 = vpop.eup %5843 }
 0x545   : > { %v3914_v17 = vpop.f32.mrf.mxu2  ;;  %v3551_v18 = vadd.f32 %v3550_v22, %v7705_v1  ;;  %v5272_v9 = vmul.f32 %v5844_v52, %v9106_v50 }
 0x546   : > { %v7924_v30 = vadd.f32 %v4130_v46, %v3914_v17  ;;  %5845 = vtanh.f32 %v3695_v53  ;;  %4400 = vmatmul.f32.gmra.mxu1 %v9105_v44  ;;  %v9107_v46 = vld [vmem:[#allocation163_spill] sm:$0xff]  ;;  %v9108_v17 = vld [vmem:[#allocation18_spill] sm:$0xff] }
 0x547   : > { %4223 = vmatmul.f32.gmra.mxu0 %v9104_v61  ;;  %v9109_v61 = vld [vmem:[#allocation16_spill] sm:$0xff] }
 0x548   : > { %4766 = vmatmul.f32.gmra.mxu3 %v8923_v47 }
 0x549   : > { %4618 = vmatmul.f32.gmra.mxu2 %v8923_v47 }
 0x54b   : > { %v4134_v55 = vpop.f32.mrf.mxu3  ;;  %v3698_v58 = vpop.f32.mrf.mxu1 }
 0x54c   : > { %v3554_v4 = vpop.f32.mrf.mxu0  ;;  %v5846_v39 = vpop.eup %5845  ;;  %v3699_v56 = vadd.f32 %v3698_v58, %v3551_v18 }
 0x54d   : > { %v3922_v11 = vpop.f32.mrf.mxu2  ;;  %v5276_v32 = vmul.f32 %v5846_v39, %v9107_v46  ;;  %v3555_v1 = vadd.f32 %v3554_v4, %v7711_v5 }
 0x54e   : > { %v7933_v53 = vadd.f32 %v4134_v55, %v3922_v11  ;;  %5847 = vtanh.f32 %v3699_v56  ;;  %4406 = vmatmul.f32.gmra.mxu1 %v9109_v61  ;;  %v9110_v55 = vld [vmem:[#allocation164_spill] sm:$0xff] }
 0x54f   : > { %4228 = vmatmul.f32.gmra.mxu0 %v9108_v17  ;;  %v5460_v47 = vadd.f32 %v5276_v32, %v5272_v9  ;;  %v9111_v17 = vld [vmem:[#allocation22_spill] sm:$0xff]  ;;  %v9112_v9 = vld [vmem:[#allocation20_spill] sm:$0xff] }
 0x550   : > { %4770 = vmatmul.f32.gmra.mxu3 %v8928_v8 }
 0x551   : > { %4622 = vmatmul.f32.gmra.mxu2 %v8928_v8 }
 0x553   : > { %v4138_v22 = vpop.f32.mrf.mxu3  ;;  %v3702_v18 = vpop.f32.mrf.mxu1 }
 0x554   : > { %v3558_v44 = vpop.f32.mrf.mxu0  ;;  %v5848_v52 = vpop.eup %5847  ;;  %v3703_v58 = vadd.f32 %v3702_v18, %v3555_v1 }
 0x555   : > { %v3930_v39 = vpop.f32.mrf.mxu2  ;;  %v5280_v11 = vmul.f32 %v5848_v52, %v9110_v55  ;;  %v3559_v8 = vadd.f32 %v3558_v44, %v7717_v21 }
 0x556   : > { %v7941_v56 = vadd.f32 %v4138_v22, %v3930_v39  ;;  %5849 = vtanh.f32 %v3703_v58  ;;  %4412 = vmatmul.f32.gmra.mxu1 %v9112_v9  ;;  %v9113_v22 = vld [vmem:[#allocation165_spill] sm:$0xff] }
 0x557   : > { %4233 = vmatmul.f32.gmra.mxu0 %v9111_v17  ;;  %v5461_v32 = vadd.f32 %v5460_v47, %v5280_v11  ;;  %v9114_v17 = vld [vmem:[#allocation26_spill] sm:$0xff]  ;;  %v9115_v47 = vld [vmem:[#allocation24_spill] sm:$0xff] }
 0x558   : > { %4774 = vmatmul.f32.gmra.mxu3 %v8932_v0 }
 0x559   : > { %4626 = vmatmul.f32.gmra.mxu2 %v8932_v0 }
 0x55b   : > { %v4142_v5 = vpop.f32.mrf.mxu3  ;;  %v3706_v61 = vpop.f32.mrf.mxu1 }
 0x55c   : > { %v3562_v4 = vpop.f32.mrf.mxu0  ;;  %v5850_v1 = vpop.eup %5849  ;;  %v3707_v18 = vadd.f32 %v3706_v61, %v3559_v8 }
 0x55d   : > { %v3938_v52 = vpop.f32.mrf.mxu2  ;;  %v5284_v39 = vmul.f32 %v5850_v1, %v9113_v22  ;;  %v3563_v0 = vadd.f32 %v3562_v4, %v7723_v43 }
 0x55e   : > { %v7949_v58 = vadd.f32 %v4142_v5, %v3938_v52  ;;  %5851 = vtanh.f32 %v3707_v18  ;;  %4418 = vmatmul.f32.gmra.mxu1 %v9115_v47  ;;  %v9116_v5 = vld [vmem:[#allocation166_spill] sm:$0xff] }
 0x55f   : > { %4238 = vmatmul.f32.gmra.mxu0 %v9114_v17  ;;  %v5462_v11 = vadd.f32 %v5461_v32, %v5284_v39  ;;  %v9117_v17 = vld [vmem:[#allocation30_spill] sm:$0xff]  ;;  %v9118_v32 = vld [vmem:[#allocation28_spill] sm:$0xff] }
 0x560   : > { %4778 = vmatmul.f32.gmra.mxu3 %v8935_v38 }
 0x561   : > { %4630 = vmatmul.f32.gmra.mxu2 %v8935_v38  ;;  %v9119_v38 = vld [vmem:[#allocation149_spill] sm:$0xff] }
 0x563   : > { %v4146_v21 = vpop.f32.mrf.mxu3  ;;  %v3710_v9 = vpop.f32.mrf.mxu1 }
 0x564   : > { %v3566_v44 = vpop.f32.mrf.mxu0  ;;  %v5852_v8 = vpop.eup %5851  ;;  %v3711_v61 = vadd.f32 %v3710_v9, %v3563_v0 }
 0x565   : > { %v3946_v1 = vpop.f32.mrf.mxu2  ;;  %v5288_v52 = vmul.f32 %v5852_v8, %v9116_v5  ;;  %v3567_v43 = vadd.f32 %v3566_v44, %v9119_v38 }
 0x566   : > { %v7957_v18 = vadd.f32 %v4146_v21, %v3946_v1  ;;  %5853 = vtanh.f32 %v3711_v61  ;;  %4424 = vmatmul.f32.gmra.mxu1 %v9118_v32  ;;  %v9120_v21 = vld [vmem:[#allocation167_spill] sm:$0xff] }
 0x567   : > { %4243 = vmatmul.f32.gmra.mxu0 %v9117_v17  ;;  %v5463_v39 = vadd.f32 %v5462_v11, %v5288_v52  ;;  %v9121_v17 = vld [vmem:[#allocation34_spill] sm:$0xff]  ;;  %v9122_v11 = vld [vmem:[#allocation32_spill] sm:$0xff] }
 0x568   : > { %4782 = vmatmul.f32.gmra.mxu3 %v8940_v62 }
 0x569   : > { %4634 = vmatmul.f32.gmra.mxu2 %v8940_v62  ;;  %v9123_v62 = vld [vmem:[#allocation150_spill] sm:$0xff] }
 0x56b   : > { %v4150_v4 = vpop.f32.mrf.mxu3  ;;  %v3714_v0 = vpop.f32.mrf.mxu1 }
 0x56c   : > { %v3570_v47 = vpop.f32.mrf.mxu0  ;;  %v5854_v9 = vpop.eup %5853  ;;  %v3715_v22 = vadd.f32 %v3714_v0, %v3567_v43 }
 0x56d   : > { %v3954_v8 = vpop.f32.mrf.mxu2  ;;  %v5292_v1 = vmul.f32 %v5854_v9, %v9120_v21  ;;  %v3571_v44 = vadd.f32 %v3570_v47, %v9123_v62 }
 0x56e   : > { %v7965_v61 = vadd.f32 %v4150_v4, %v3954_v8  ;;  %5855 = vtanh.f32 %v3715_v22  ;;  %4430 = vmatmul.f32.gmra.mxu1 %v9122_v11  ;;  %v9124_v4 = vld [vmem:[#allocation169_spill] sm:$0xff] }
 0x56f   : > { %4248 = vmatmul.f32.gmra.mxu0 %v9121_v17  ;;  %v5464_v52 = vadd.f32 %v5463_v39, %v5292_v1  ;;  %v9126_v17 = vld [vmem:[#allocation38_spill] sm:$0xff]  ;;  %v9127_v39 = vld [vmem:[#allocation36_spill] sm:$0xff] }
 0x570   : > { %4786 = vmatmul.f32.gmra.mxu3 %v8946_v40 }
 0x571   : > { %4638 = vmatmul.f32.gmra.mxu2 %v8946_v40  ;;  %v9128_v40 = vld [vmem:[#allocation107_spill] sm:$0xff] }
 0x573   : > { %v4154_v32 = vpop.f32.mrf.mxu3  ;;  %v3718_v43 = vpop.f32.mrf.mxu1 }
 0x574   : > { %v3574_v38 = vpop.f32.mrf.mxu0  ;;  %v5856_v0 = vpop.eup %5855  ;;  %v3719_v5 = vadd.f32 %v3718_v43, %v3571_v44 }
 0x575   : > { %v3962_v9 = vpop.f32.mrf.mxu2  ;;  %v5296_v8 = vmul.f32 %v5856_v0, %v9124_v4  ;;  %v3575_v47 = vadd.f32 %v3574_v38, %v9128_v40 }
 0x576   : > { %v7973_v22 = vadd.f32 %v4154_v32, %v3962_v9  ;;  %5857 = vtanh.f32 %v3719_v5  ;;  %4436 = vmatmul.f32.gmra.mxu1 %v9127_v39  ;;  %v9129_v32 = vld [vmem:[#allocation171_spill] sm:$0xff]  ;;  %v9133_v39 = vld [vmem:[#allocation41_spill] sm:$0xff] }
 0x577   : > { %4253 = vmatmul.f32.gmra.mxu0 %v9126_v17  ;;  %v5465_v1 = vadd.f32 %v5464_v52, %v5296_v8  ;;  %v9131_v17 = vld [vmem:[#allocation42_spill] sm:$0xff]  ;;  %v9132_v52 = vld [vmem:[#allocation40_spill] sm:$0xff] }
 0x578   : > { %9125 = vst [vmem:[#allocation27_spill] sm:$0xff] %v7973_v22  ;;  %4790 = vmatmul.f32.gmra.mxu3 %v8950_v41 }
 0x579   : > { %4642 = vmatmul.f32.gmra.mxu2 %v8950_v41  ;;  %v9134_v41 = vld [vmem:[#allocation151_spill] sm:$0xff] }
 0x57b   : > { %v4158_v11 = vpop.f32.mrf.mxu3  ;;  %v3722_v44 = vpop.f32.mrf.mxu1 }
 0x57c   : > { %v3578_v62 = vpop.f32.mrf.mxu0  ;;  %v5858_v43 = vpop.eup %5857  ;;  %v3723_v21 = vadd.f32 %v3722_v44, %v3575_v47 }
 0x57d   : > { %v3970_v0 = vpop.f32.mrf.mxu2  ;;  %v5300_v9 = vmul.f32 %v5858_v43, %v9129_v32  ;;  %v3579_v38 = vadd.f32 %v3578_v62, %v9134_v41  ;;  %v9140_v62 = vld [vmem:[#allocation153_spill] sm:$0xff] }
 0x57e   : > { %v7981_v5 = vadd.f32 %v4158_v11, %v3970_v0  ;;  %5859 = vtanh.f32 %v3723_v21  ;;  %4442 = vmatmul.f32.gmra.mxu1 %v9132_v52  ;;  %v9135_v11 = vld [vmem:[#allocation172_spill] sm:$0xff]  ;;  %v9139_v52 = vld [vmem:[#allocation45_spill] sm:$0xff] }
 0x57f   : > { %4258 = vmatmul.f32.gmra.mxu0 %v9131_v17  ;;  %v5466_v8 = vadd.f32 %v5465_v1, %v5300_v9  ;;  %v9137_v17 = vld [vmem:[#allocation46_spill] sm:$0xff]  ;;  %v9138_v1 = vld [vmem:[#allocation44_spill] sm:$0xff] }
 0x580   : > { %9130 = vst [vmem:[#allocation17_spill] sm:$0xff] %v7981_v5  ;;  %4794 = vmatmul.f32.gmra.mxu3 %v9133_v39 }
 0x581   : > { %4646 = vmatmul.f32.gmra.mxu2 %v9133_v39 }
 0x583   : > { %v4162_v40 = vpop.f32.mrf.mxu3  ;;  %v3726_v47 = vpop.f32.mrf.mxu1 }
 0x584   : > { %v3582_v4 = vpop.f32.mrf.mxu0  ;;  %v5860_v44 = vpop.eup %5859  ;;  %v3727_v22 = vadd.f32 %v3726_v47, %v3579_v38 }
 0x585   : > { %v3978_v43 = vpop.f32.mrf.mxu2  ;;  %v5304_v0 = vmul.f32 %v5860_v44, %v9135_v11  ;;  %v3583_v39 = vadd.f32 %v3582_v4, %v9140_v62  ;;  %v9145_v4 = vld [vmem:[#allocation155_spill] sm:$0xff] }
 0x586   : > { %v7989_v21 = vadd.f32 %v4162_v40, %v3978_v43  ;;  %5861 = vtanh.f32 %v3727_v22  ;;  %4448 = vmatmul.f32.gmra.mxu1 %v9138_v1  ;;  %v9141_v40 = vld [vmem:[#allocation173_spill] sm:$0xff] }
 0x587   : > { %4263 = vmatmul.f32.gmra.mxu0 %v9137_v17  ;;  %v5467_v9 = vadd.f32 %v5466_v8, %v5304_v0  ;;  %v9142_v17 = vld [vmem:[#allocation50_spill] sm:$0xff]  ;;  %v9143_v8 = vld [vmem:[#allocation48_spill] sm:$0xff]  ;;  %v9144_v1 = vld [vmem:[#allocation49_spill] sm:$0xff] }
 0x588   : > { %9136 = vst [vmem:[#allocation31_spill] sm:$0xff] %v7989_v21  ;;  %4798 = vmatmul.f32.gmra.mxu3 %v9139_v52 }
 0x589   : > { %4650 = vmatmul.f32.gmra.mxu2 %v9139_v52 }
 0x58b   : > { %v4166_v41 = vpop.f32.mrf.mxu3  ;;  %v3730_v38 = vpop.f32.mrf.mxu1 }
 0x58c   : > { %v3586_v32 = vpop.f32.mrf.mxu0  ;;  %v5862_v47 = vpop.eup %5861  ;;  %v3731_v5 = vadd.f32 %v3730_v38, %v3583_v39 }
 0x58d   : > { %v3986_v44 = vpop.f32.mrf.mxu2  ;;  %v5308_v43 = vmul.f32 %v5862_v47, %v9141_v40  ;;  %v3587_v52 = vadd.f32 %v3586_v32, %v9145_v4  ;;  %v9149_v32 = vld [vmem:[#allocation159_spill] sm:$0xff] }
 0x58e   : > { %v7997_v22 = vadd.f32 %v4166_v41, %v3986_v44  ;;  %5863 = vtanh.f32 %v3731_v5  ;;  %4454 = vmatmul.f32.gmra.mxu1 %v9143_v8  ;;  %v9146_v41 = vld [vmem:[#allocation174_spill] sm:$0xff] }
 0x58f   : > { %4268 = vmatmul.f32.gmra.mxu0 %v9142_v17  ;;  %v5468_v0 = vadd.f32 %v5467_v9, %v5308_v43  ;;  %v9147_v17 = vld [vmem:[#allocation54_spill] sm:$0xff]  ;;  %v9148_v9 = vld [vmem:[#allocation52_spill] sm:$0xff] }
 0x590   : > { %4802 = vmatmul.f32.gmra.mxu3 %v9144_v1 }
 0x591   : > { %4654 = vmatmul.f32.gmra.mxu2 %v9144_v1 }
 0x593   : > { %v4170_v62 = vpop.f32.mrf.mxu3  ;;  %v3734_v39 = vpop.f32.mrf.mxu1 }
 0x594   : > { %v3590_v11 = vpop.f32.mrf.mxu0  ;;  %v5864_v38 = vpop.eup %5863  ;;  %v3735_v21 = vadd.f32 %v3734_v39, %v3587_v52 }
 0x595   : > { %v3994_v47 = vpop.f32.mrf.mxu2  ;;  %v5312_v44 = vmul.f32 %v5864_v38, %v9146_v41  ;;  %v3591_v8 = vadd.f32 %v3590_v11, %v9149_v32 }
 0x596   : > { %v8005_v5 = vadd.f32 %v4170_v62, %v3994_v47  ;;  %5865 = vtanh.f32 %v3735_v21  ;;  %4460 = vmatmul.f32.gmra.mxu1 %v9148_v9  ;;  %v9150_v62 = vld [vmem:[#allocation175_spill] sm:$0xff] }
 0x597   : > { %4273 = vmatmul.f32.gmra.mxu0 %v9147_v17  ;;  %v5469_v43 = vadd.f32 %v5468_v0, %v5312_v44  ;;  %v9151_v17 = vld [vmem:[#allocation58_spill] sm:$0xff]  ;;  %v9152_v0 = vld [vmem:[#allocation56_spill] sm:$0xff] }
 0x598   : > { %4806 = vmatmul.f32.gmra.mxu3 %v9051_v31 }
 0x599   : > { %4658 = vmatmul.f32.gmra.mxu2 %v9051_v31  ;;  %v9153_v31 = vld [vmem:[#allocation15_spill] sm:$0xff] }
 0x59b   : > { %v4174_v1 = vpop.f32.mrf.mxu3  ;;  %v3738_v52 = vpop.f32.mrf.mxu1 }
 0x59c   : > { %v3594_v4 = vpop.f32.mrf.mxu0  ;;  %v5866_v39 = vpop.eup %5865  ;;  %v3739_v40 = vadd.f32 %v3738_v52, %v3591_v8 }
 0x59d   : > { %v4002_v38 = vpop.f32.mrf.mxu2  ;;  %v5316_v47 = vmul.f32 %v5866_v39, %v9150_v62  ;;  %v3595_v11 = vadd.f32 %v3594_v4, %v9153_v31 }
 0x59e   : > { %v8013_v21 = vadd.f32 %v4174_v1, %v4002_v38  ;;  %5867 = vtanh.f32 %v3739_v40  ;;  %4466 = vmatmul.f32.gmra.mxu1 %v9152_v0  ;;  %v9154_v1 = vld [vmem:[#allocation177_spill] sm:$0xff] }
 0x59f   : > { %4278 = vmatmul.f32.gmra.mxu0 %v9151_v17  ;;  %v5470_v44 = vadd.f32 %v5469_v43, %v5316_v47  ;;  %v9156_v17 = vld [vmem:[#allocation62_spill] sm:$0xff]  ;;  %v9157_v43 = vld [vmem:[#allocation60_spill] sm:$0xff] }
 0x5a0   : > { %4810 = vmatmul.f32.gmra.mxu3 %v9054_v14 }
 0x5a1   : > { %4662 = vmatmul.f32.gmra.mxu2 %v9054_v14 }
 0x5a3   : > { %v4178_v9 = vpop.f32.mrf.mxu3  ;;  %v3742_v8 = vpop.f32.mrf.mxu1 }
 0x5a4   : > { %v3598_v32 = vpop.f32.mrf.mxu0  ;;  %v5868_v52 = vpop.eup %5867  ;;  %v3743_v41 = vadd.f32 %v3742_v8, %v3595_v11 }
 0x5a5   : > { %v4010_v39 = vpop.f32.mrf.mxu2  ;;  %v5320_v38 = vmul.f32 %v5868_v52, %v9154_v1  ;;  %v3599_v14 = vadd.f32 %v3598_v32, %v7777_v10 }
 0x5a6   : > { %v8021_v40 = vadd.f32 %v4178_v9, %v4010_v39  ;;  %5869 = vtanh.f32 %v3743_v41  ;;  %4472 = vmatmul.f32.gmra.mxu1 %v9157_v43  ;;  %v9158_v9 = vld [vmem:[#allocation179_spill] sm:$0xff]  ;;  %v5391_v43 = vrot.slane %v7919_v19, 4 }
 0x5a7   : > { %4283 = vmatmul.f32.gmra.mxu0 %v9156_v17  ;;  %v5471_v47 = vadd.f32 %v5470_v44, %v5320_v38  ;;  %v9160_v17 = vld [vmem:[#allocation66_spill] sm:$0xff]  ;;  %v9161_v44 = vld [vmem:[#allocation64_spill] sm:$0xff] }
 0x5a8   : > { %9155 = vst [vmem:[#allocation21_spill] sm:$0xff] %v8021_v40  ;;  %4814 = vmatmul.f32.gmra.mxu3 %v9057_v16 }
 0x5a9   : > { %4666 = vmatmul.f32.gmra.mxu2 %v9057_v16  ;;  %v9162_v16 = vld [vmem:[#allocation6_spill] sm:$0xff] }
 0x5ab   : > { %v4182_v4 = vpop.f32.mrf.mxu3  ;;  %v3746_v31 = vpop.f32.mrf.mxu1 }
 0x5ac   : > { %v3602_v0 = vpop.f32.mrf.mxu0  ;;  %v5870_v11 = vpop.eup %5869  ;;  %v3747_v8 = vadd.f32 %v3746_v31, %v3599_v14 }
 0x5ad   : > { %v4018_v52 = vpop.f32.mrf.mxu2  ;;  %v5324_v39 = vmul.f32 %v5870_v11, %v9158_v9  ;;  %v3603_v10 = vadd.f32 %v3602_v0, %v9162_v16 }
 0x5ae   : > { %v8029_v41 = vadd.f32 %v4182_v4, %v4018_v52  ;;  %5871 = vtanh.f32 %v3747_v8  ;;  %4478 = vmatmul.f32.gmra.mxu1 %v9161_v44  ;;  %v9163_v8 = vld [vmem:[#allocation181_spill] sm:$0xff] }
 0x5af   : > { %4288 = vmatmul.f32.gmra.mxu0 %v9160_v17  ;;  %v5472_v38 = vadd.f32 %v5471_v47, %v5324_v39  ;;  %v9165_v47 = vld [vmem:[#allocation70_spill] sm:$0xff]  ;;  %v9166_v39 = vld [vmem:[#allocation68_spill] sm:$0xff]  ;;  %v9167_v44 = vld [vmem:[#allocation161_spill] sm:$0xff] }
 0x5b0   : > { %9159 = vst [vmem:[#allocation35_spill] sm:$0xff] %v8029_v41  ;;  %4818 = vmatmul.f32.gmra.mxu3 %v8986_v57 }
 0x5b1   : > { %4670 = vmatmul.f32.gmra.mxu2 %v8986_v57  ;;  %v5392_v57 = vadd.f32 %v5391_v43, %v7919_v19  ;;  %v9170_v19 = vld [vmem:[#allocation72_spill] sm:$0xff]  ;;  %v9171_v43 = vld [vmem:[#allocation73_spill] sm:$0xff] }
 0x5b3   : > { %v4186_v32 = vpop.f32.mrf.mxu3  ;;  %v3750_v14 = vpop.f32.mrf.mxu1 }
 0x5b4   : > { %v4214_v31 = vpop.f32.mrf.mxu0  ;;  %v5872_v11 = vpop.eup %5871  ;;  %v3751_v4 = vadd.f32 %v3750_v14, %v3603_v10  ;;  %v5393_v14 = vrot.slane %v5392_v57, 2 }
 0x5b5   : > { %v4026_v52 = vpop.f32.mrf.mxu2  ;;  %v5328_v9 = vmul.f32 %v5872_v11, %v9163_v8  ;;  %v4215_v16 = vadd.f32 %v4214_v31, %v9167_v44  ;;  %v9168_v8 = vld [vmem:[#allocation141_spill] sm:$0xff]  ;;  %v9172_v44 = vld [vmem:[#allocation19_spill] sm:$0xff] }
 0x5b6   : > { %v8038_v17 = vadd.f32 %v4186_v32, %v4026_v52  ;;  %5873 = vtanh.f32 %v3751_v4  ;;  %4484 = vmatmul.f32.gmra.mxu1 %v9166_v39  ;;  %v9169_v39 = vld [vmem:[#allocation74_spill] sm:$0xff] }
 0x5b7   : > { %4293 = vmatmul.f32.gmra.mxu0 %v9165_v47  ;;  %v5473_v0 = vadd.f32 %v5472_v38, %v5328_v9  ;;  %v5394_v9 = vadd.f32 %v5393_v14, %v5392_v57  ;;  %v9174_v57 = vld [vmem:[#allocation76_spill] sm:$0xff] }
 0x5b8   : > { %9164 = vst [vmem:[#allocation25_spill] sm:$0xff] %v8038_v17  ;;  %4822 = vmatmul.f32.gmra.mxu3 %v8990_v63 }
 0x5b9   : > { %4674 = vmatmul.f32.gmra.mxu2 %v8990_v63 }
 0x5bb   : > { %v4759_v10 = vpop.f32.mrf.mxu3  ;;  %v4395_v11 = vpop.f32.mrf.mxu1 }
 0x5bc   : > { %v4219_v41 = vpop.f32.mrf.mxu0  ;;  %v5874_v32 = vpop.eup %5873  ;;  %v4396_v52 = vadd.f32 %v4395_v11, %v4215_v16  ;;  %v5395_v16 = vrot.slane %v5394_v9, 1 }
 0x5bd   : > { %v4611_v4 = vpop.f32.mrf.mxu2  ;;  %v5332_v47 = vmul.f32 %v5874_v32, %v9168_v8  ;;  %v4220_v1 = vadd.f32 %v4219_v41, %v9172_v44 }
 0x5be   : > { %v4612_v17 = vadd.f32 %v4611_v4, %v4396_v52  ;;  %4490 = vmatmul.f32.gmra.mxu1 %v9170_v19  ;;  %v9173_v19 = vld [vmem:[#allocation78_spill] sm:$0xff] }
 0x5bf   : > { %4298 = vmatmul.f32.gmra.mxu0 %v9169_v39  ;;  %v5474_v38 = vadd.f32 %v5473_v0, %v5332_v47 }
 0x5c0   : > { %4826 = vmatmul.f32.gmra.mxu3 %v9171_v43  ;;  %v4760_v63 = vadd.f32 %v4759_v10, %v4612_v17  ;;  %v5396_v17 = vadd.f32 %v5395_v16, %v5394_v9 }
 0x5c1   : > { %4678 = vmatmul.f32.gmra.mxu2 %v9171_v43  ;;  %v5475_v31 = vrot.slane %v5474_v38, 4 }
 0x5c2   : > { %5875 = vtanh.f32 %v4760_v63 }
 0x5c3   : > { %v4763_v40 = vpop.f32.mrf.mxu3  ;;  %v5476_v11 = vadd.f32 %v5475_v31, %v5474_v38  ;;  %v4401_v32 = vpop.f32.mrf.mxu1  ;;  %v8058_v31 = vld [vmem:[%s6104_s17 + $0x50] sm:$0xff] }
 0x5c4   : > { %v4224_v62 = vpop.f32.mrf.mxu0  ;;  %v4402_v52 = vadd.f32 %v4401_v32, %v4220_v1  ;;  %v5504_v44 = vmul.f32 %v8058_v31, %v5396_v17  ;;  %v9177_v32 = vld [vmem:[#allocation142_spill] sm:$0xff] }
 0x5c5   : > { %v4615_v4 = vpop.f32.mrf.mxu2  ;;  %v5477_v39 = vrot.slane %v5476_v11, 2  ;;  %v4225_v14 = vadd.f32 %v4224_v62, %v7803_v23 }
 0x5c6   : > { %v4616_v8 = vadd.f32 %v4615_v4, %v4402_v52  ;;  %4496 = vmatmul.f32.gmra.mxu1 %v9174_v57 }
 0x5c7   : > { %4303 = vmatmul.f32.gmra.mxu0 %v9173_v19  ;;  %v5478_v0 = vadd.f32 %v5477_v39, %v5476_v11 }
 0x5c8   : > { %4830 = vmatmul.f32.gmra.mxu3 %v9066_v20  ;;  %v4764_v41 = vadd.f32 %v4763_v40, %v4616_v8  ;;  %v5876_v63 = vpop.eup %5875  ;;  %v9175_v8 = vld [vmem:[#allocation81_spill] sm:$0xff] }
 0x5c9   : > { %4682 = vmatmul.f32.gmra.mxu2 %v9066_v20  ;;  %v5479_v10 = vrot.slane %v5478_v0, 1  ;;  %v9176_v20 = vld [vmem:[#allocation80_spill] sm:$0xff]  ;;  %v5209_v52 = vmul.f32 %v5876_v63, %v9177_v32 }
 0x5ca   : > { %5877 = vtanh.f32 %v4764_v41 }
 0x5cb   : > { %v4767_v1 = vpop.f32.mrf.mxu3  ;;  %v4407_v38 = vpop.f32.mrf.mxu1  ;;  %v5480_v43 = vadd.f32 %v5479_v10, %v5478_v0 }
 0x5cc   : > { %v4229_v47 = vpop.f32.mrf.mxu0  ;;  %v4408_v9 = vadd.f32 %v4407_v38, %v4225_v14  ;;  %v9178_v38 = vld [vmem:[#allocation85_spill] sm:$0xff] }
 0x5cd   : > { %v4619_v16 = vpop.f32.mrf.mxu2  ;;  %v8061_v11 = vadd.f32 %v5504_v44, %v5480_v43  ;;  %v4230_v39 = vadd.f32 %v4229_v47, %v7811_v60  ;;  %v9179_v43 = vld [vmem:[#allocation83_spill] sm:$0xff] }
 0x5ce   : > { %v4620_v40 = vadd.f32 %v4619_v16, %v4408_v9  ;;  %4502 = vmatmul.f32.gmra.mxu1 %v9176_v20  ;;  %v9180_v20 = vld [vmem:[#allocation90_spill] sm:$0xff] }
 0x5cf   : > { %4308 = vmatmul.f32.gmra.mxu0 %v9175_v8 }
 0x5d0   : > { %4834 = vmatmul.f32.gmra.mxu3 %v6497_v6  ;;  %v5878_v23 = vpop.eup %5877  ;;  %v4768_v62 = vadd.f32 %v4767_v1, %v4620_v40 }
 0x5d1   : > { %4686 = vmatmul.f32.gmra.mxu2 %v6497_v6  ;;  %v5213_v4 = vmul.f32 %v5878_v23, %v9069_v45  ;;  %v9181_v23 = vld [vmem:[#allocation88_spill] sm:$0xff] }
 0x5d2   : > { %5879 = vtanh.f32 %v4768_v62 }
 0x5d3   : > { %v4771_v19 = vpop.f32.mrf.mxu3  ;;  %v5397_v57 = vadd.f32 %v5213_v4, %v5209_v52  ;;  %v4413_v0 = vpop.f32.mrf.mxu1 }
 0x5d4   : > { %v4234_v17 = vpop.f32.mrf.mxu0  ;;  %v4414_v41 = vadd.f32 %v4413_v0, %v4230_v39  ;;  %v9182_v0 = vld [vmem:[#allocation94_spill] sm:$0xff] }
 0x5d5   : > { %v4623_v10 = vpop.f32.mrf.mxu2  ;;  %v4235_v60 = vadd.f32 %v4234_v17, %v7819_v3 }
 0x5d6   : > { %v4624_v14 = vadd.f32 %v4623_v10, %v4414_v41  ;;  %4508 = vmatmul.f32.gmra.mxu1 %v9179_v43  ;;  %v9183_v41 = vld [vmem:[#allocation92_spill] sm:$0xff] }
 0x5d7   : > { %4313 = vmatmul.f32.gmra.mxu0 %v9178_v38 }
 0x5d8   : > { %4838 = vmatmul.f32.gmra.mxu3 %v9004_v33  ;;  %v5880_v6 = vpop.eup %5879  ;;  %v4772_v1 = vadd.f32 %v4771_v19, %v4624_v14 }
 0x5d9   : > { %4690 = vmatmul.f32.gmra.mxu2 %v9004_v33  ;;  %v5217_v45 = vmul.f32 %v5880_v6, %v9071_v15 }
 0x5da   : > { %5881 = vtanh.f32 %v4772_v1 }
 0x5db   : > { %v4775_v47 = vpop.f32.mrf.mxu3  ;;  %v5398_v44 = vadd.f32 %v5397_v57, %v5217_v45  ;;  %v4419_v16 = vpop.f32.mrf.mxu1 }
 0x5dc   : > { %v4239_v9 = vpop.f32.mrf.mxu0  ;;  %v4420_v63 = vadd.f32 %v4419_v16, %v4235_v60  ;;  %v9187_v16 = vld [vmem:[#allocation7_spill] sm:$0xff] }
 0x5dd   : > { %v4627_v40 = vpop.f32.mrf.mxu2  ;;  %v4240_v3 = vadd.f32 %v4239_v9, %v7827_v2 }
 0x5de   : > { %v4628_v8 = vadd.f32 %v4627_v40, %v4420_v63  ;;  %4514 = vmatmul.f32.gmra.mxu1 %v9181_v23 }
 0x5df   : > { %4318 = vmatmul.f32.gmra.mxu0 %v9180_v20 }
 0x5e0   : > { %4842 = vmatmul.f32.gmra.mxu3 %v8868_v35  ;;  %v5882_v62 = vpop.eup %5881  ;;  %v4776_v33 = vadd.f32 %v4775_v47, %v4628_v8  ;;  %v9184_v47 = vld [vmem:[#allocation98_spill] sm:$0xff] }
 0x5e1   : > { %4694 = vmatmul.f32.gmra.mxu2 %v8868_v35  ;;  %v5221_v15 = vmul.f32 %v5882_v62, %v9072_v42 }
 0x5e2   : > { %5883 = vtanh.f32 %v4776_v33 }
 0x5e3   : > { %v4779_v32 = vpop.f32.mrf.mxu3  ;;  %v5399_v52 = vadd.f32 %v5398_v44, %v5221_v15  ;;  %v4425_v39 = vpop.f32.mrf.mxu1  ;;  %v9185_v44 = vld [vmem:[#allocation96_spill] sm:$0xff] }
 0x5e4   : > { %v4244_v4 = vpop.f32.mrf.mxu0  ;;  %v4426_v19 = vadd.f32 %v4425_v39, %v4240_v3 }
 0x5e5   : > { %v4631_v57 = vpop.f32.mrf.mxu2  ;;  %v4245_v2 = vadd.f32 %v4244_v4, %v7835_v59  ;;  %v9190_v4 = vld [vmem:[#allocation102_spill] sm:$0xff] }
 0x5e6   : > { %v4632_v17 = vadd.f32 %v4631_v57, %v4426_v19  ;;  %4520 = vmatmul.f32.gmra.mxu1 %v9183_v41  ;;  %v9191_v19 = vld [vmem:[#allocation114_spill] sm:$0xff] }
 0x5e7   : > { %4323 = vmatmul.f32.gmra.mxu0 %v9182_v0 }
 0x5e8   : > { %4846 = vmatmul.f32.gmra.mxu3 %v9009_v51  ;;  %v5884_v10 = vpop.eup %5883  ;;  %v4780_v35 = vadd.f32 %v4779_v32, %v4632_v17  ;;  %v9188_v32 = vld [vmem:[#allocation103_spill] sm:$0xff] }
 0x5e9   : > { %4698 = vmatmul.f32.gmra.mxu2 %v9009_v51  ;;  %v5225_v42 = vmul.f32 %v5884_v10, %v9073_v29  ;;  %v9186_v29 = vld [vmem:[#allocation109_spill] sm:$0xff] }
 0x5ea   : > { %5885 = vtanh.f32 %v4780_v35 }
 0x5eb   : > { %v4783_v14 = vpop.f32.mrf.mxu3  ;;  %v5400_v38 = vadd.f32 %v5399_v52, %v5225_v42  ;;  %v4431_v6 = vpop.f32.mrf.mxu1  ;;  %v9189_v52 = vld [vmem:[#allocation101_spill] sm:$0xff] }
 0x5ec   : > { %v4249_v43 = vpop.f32.mrf.mxu0  ;;  %v4432_v1 = vadd.f32 %v4431_v6, %v4245_v2 }
 0x5ed   : > { %v4635_v45 = vpop.f32.mrf.mxu2  ;;  %v4250_v63 = vadd.f32 %v4249_v43, %v9187_v16 }
 0x5ee   : > { %v4636_v60 = vadd.f32 %v4635_v45, %v4432_v1  ;;  %4526 = vmatmul.f32.gmra.mxu1 %v9185_v44  ;;  %v9194_v1 = vld [vmem:[#allocation119_spill] sm:$0xff] }
 0x5ef   : > { %4328 = vmatmul.f32.gmra.mxu0 %v9184_v47 }
 0x5f0   : > { %4850 = vmatmul.f32.gmra.mxu3 %v9013_v25  ;;  %v5886_v9 = vpop.eup %5885  ;;  %v4784_v51 = vadd.f32 %v4783_v14, %v4636_v60  ;;  %v9192_v14 = vld [vmem:[#allocation108_spill] sm:$0xff] }
 0x5f1   : > { %4702 = vmatmul.f32.gmra.mxu2 %v9013_v25  ;;  %v5229_v59 = vmul.f32 %v5886_v9, %v9186_v29  ;;  %v9195_v9 = vld [vmem:[#allocation23_spill] sm:$0xff] }
 0x5f2   : > { %5887 = vtanh.f32 %v4784_v51 }
 0x5f3   : > { %v4787_v40 = vpop.f32.mrf.mxu3  ;;  %v5401_v8 = vadd.f32 %v5400_v38, %v5229_v59  ;;  %v4437_v23 = vpop.f32.mrf.mxu1  ;;  %v9193_v38 = vld [vmem:[#allocation106_spill] sm:$0xff] }
 0x5f4   : > { %v4254_v20 = vpop.f32.mrf.mxu0  ;;  %v4438_v33 = vadd.f32 %v4437_v23, %v4250_v63  ;;  %v9196_v63 = vld [vmem:[#allocation113_spill] sm:$0xff]  ;;  %v9199_v23 = vld [vmem:[#allocation124_spill] sm:$0xff] }
 0x5f5   : > { %v4255_v62 = vadd.f32 %v4254_v20, %v7851_v36  ;;  %v4639_v15 = vpop.f32.mrf.mxu2 }
 0x5f6   : > { %v4640_v3 = vadd.f32 %v4639_v15, %v4438_v33  ;;  %4532 = vmatmul.f32.gmra.mxu1 %v9189_v52  ;;  %v9200_v52 = vld [vmem:[#allocation12_spill] sm:$0xff] }
 0x5f7   : > { %4333 = vmatmul.f32.gmra.mxu0 %v9188_v32 }
 0x5f8   : > { %4854 = vmatmul.f32.gmra.mxu3 %v9190_v4  ;;  %v5888_v25 = vpop.eup %5887  ;;  %v4788_v39 = vadd.f32 %v4787_v40, %v4640_v3  ;;  %v9197_v40 = vld [vmem:[#allocation111_spill] sm:$0xff] }
 0x5f9   : > { %4706 = vmatmul.f32.gmra.mxu2 %v9190_v4  ;;  %v5233_v57 = vmul.f32 %v5888_v25, %v9191_v19 }
 0x5fa   : > { %5889 = vtanh.f32 %v4788_v39 }
 0x5fb   : > { %v4791_v17 = vpop.f32.mrf.mxu3  ;;  %v5402_v0 = vadd.f32 %v5401_v8, %v5233_v57  ;;  %v4443_v36 = vpop.f32.mrf.mxu1  ;;  %v9198_v8 = vld [vmem:[#allocation112_spill] sm:$0xff]  ;;  %v9201_v57 = vld [vmem:[#allocation118_spill] sm:$0xff] }
 0x5fc   : > { %v4259_v41 = vpop.f32.mrf.mxu0  ;;  %v4444_v35 = vadd.f32 %v4443_v36, %v4255_v62 }
 0x5fd   : > { %v4260_v10 = vadd.f32 %v4259_v41, %v7859_v13  ;;  %v4643_v42 = vpop.f32.mrf.mxu2 }
 0x5fe   : > { %v4644_v2 = vadd.f32 %v4643_v42, %v4444_v35  ;;  %4538 = vmatmul.f32.gmra.mxu1 %v9193_v38 }
 0x5ff   : > { %4338 = vmatmul.f32.gmra.mxu0 %v9192_v14 }
 0x600   : > { %4858 = vmatmul.f32.gmra.mxu3 %v8888_v28  ;;  %v5890_v43 = vpop.eup %5889  ;;  %v4792_v6 = vadd.f32 %v4791_v17, %v4644_v2  ;;  %v9202_v17 = vld [vmem:[#allocation116_spill] sm:$0xff] }
 0x601   : > { %4710 = vmatmul.f32.gmra.mxu2 %v8888_v28  ;;  %v5237_v45 = vmul.f32 %v5890_v43, %v9194_v1 }
 0x602   : > { %5891 = vtanh.f32 %v4792_v6 }
 0x603   : > { %v4795_v60 = vpop.f32.mrf.mxu3  ;;  %v5403_v47 = vadd.f32 %v5402_v0, %v5237_v45  ;;  %v4449_v13 = vpop.f32.mrf.mxu1  ;;  %v9203_v0 = vld [vmem:[#allocation117_spill] sm:$0xff] }
 0x604   : > { %v4264_v44 = vpop.f32.mrf.mxu0  ;;  %v4450_v29 = vadd.f32 %v4449_v13, %v4260_v10  ;;  %v9204_v10 = vld [vmem:[#allocation129_spill] sm:$0xff] }
 0x605   : > { %v4265_v51 = vadd.f32 %v4264_v44, %v9195_v9  ;;  %v4647_v59 = vpop.f32.mrf.mxu2  ;;  %v9207_v9 = vld [vmem:[#allocation152_spill] sm:$0xff] }
 0x606   : > { %v4648_v16 = vadd.f32 %v4647_v59, %v4450_v29  ;;  %4544 = vmatmul.f32.gmra.mxu1 %v9197_v40 }
 0x607   : > { %4343 = vmatmul.f32.gmra.mxu0 %v9196_v63 }
 0x608   : > { %4862 = vmatmul.f32.gmra.mxu3 %v9198_v8  ;;  %v5892_v20 = vpop.eup %5891  ;;  %v4796_v28 = vadd.f32 %v4795_v60, %v4648_v16  ;;  %v9205_v60 = vld [vmem:[#allocation123_spill] sm:$0xff] }
 0x609   : > { %4714 = vmatmul.f32.gmra.mxu2 %v9198_v8  ;;  %v5241_v62 = vmul.f32 %v5892_v20, %v9199_v23  ;;  %v9209_v23 = vld [vmem:[#allocation126_spill] sm:$0xff] }
 0x60a   : > { %5893 = vtanh.f32 %v4796_v28  ;;  %v9208_v28 = vld [vmem:[#allocation128_spill] sm:$0xff] }
 0x60b   : > { %v4799_v33 = vpop.f32.mrf.mxu3  ;;  %v5404_v15 = vadd.f32 %v5403_v47, %v5241_v62  ;;  %v4455_v32 = vpop.f32.mrf.mxu1  ;;  %v9206_v47 = vld [vmem:[#allocation121_spill] sm:$0xff] }
 0x60c   : > { %v4269_v3 = vpop.f32.mrf.mxu0  ;;  %v4456_v25 = vadd.f32 %v4455_v32, %v4265_v51 }
 0x60d   : > { %v4270_v4 = vadd.f32 %v4269_v3, %v9200_v52  ;;  %v4651_v39 = vpop.f32.mrf.mxu2 }
 0x60e   : > { %v4652_v19 = vadd.f32 %v4651_v39, %v4456_v25  ;;  %4550 = vmatmul.f32.gmra.mxu1 %v9202_v17  ;;  %v9212_v17 = vld [vmem:[#allocation131_spill] sm:$0xff] }
 0x60f   : > { %4348 = vmatmul.f32.gmra.mxu0 %v9201_v57  ;;  %v9211_v57 = vld [vmem:[#allocation133_spill] sm:$0xff] }
 0x610   : > { %4866 = vmatmul.f32.gmra.mxu3 %v9203_v0  ;;  %v5894_v41 = vpop.eup %5893  ;;  %v4800_v36 = vadd.f32 %v4799_v33, %v4652_v19  ;;  %v9210_v33 = vld [vmem:[#allocation154_spill] sm:$0xff] }
 0x611   : > { %4718 = vmatmul.f32.gmra.mxu2 %v9203_v0  ;;  %v5245_v35 = vmul.f32 %v5894_v41, %v9204_v10  ;;  %v9213_v41 = vld [vmem:[#allocation156_spill] sm:$0xff] }
 0x612   : > { %5895 = vtanh.f32 %v4800_v36 }
 0x613   : > { %v4803_v42 = vpop.f32.mrf.mxu3  ;;  %v5405_v2 = vadd.f32 %v5404_v15, %v5245_v35  ;;  %v4461_v38 = vpop.f32.mrf.mxu1 }
 0x614   : > { %v4274_v14 = vpop.f32.mrf.mxu0  ;;  %v4462_v6 = vadd.f32 %v4461_v38, %v4270_v4 }
 0x615   : > { %v4275_v43 = vadd.f32 %v4274_v14, %v7883_v27  ;;  %v4655_v1 = vpop.f32.mrf.mxu2 }
 0x616   : > { %v4656_v45 = vadd.f32 %v4655_v1, %v4462_v6  ;;  %4556 = vmatmul.f32.gmra.mxu1 %v9206_v47  ;;  %v9214_v6 = vld [vmem:[#allocation137_spill] sm:$0xff]  ;;  %v9215_v1 = vld [vmem:[#allocation135_spill] sm:$0xff] }
 0x617   : > { %4353 = vmatmul.f32.gmra.mxu0 %v9205_v60  ;;  %v9216_v60 = vld [vmem:[#allocation157_spill] sm:$0xff] }
 0x618   : > { %4870 = vmatmul.f32.gmra.mxu3 %v9089_v26  ;;  %v5896_v44 = vpop.eup %5895  ;;  %v4804_v13 = vadd.f32 %v4803_v42, %v4656_v45 }
 0x619   : > { %4722 = vmatmul.f32.gmra.mxu2 %v9089_v26  ;;  %v5249_v51 = vmul.f32 %v5896_v44, %v9207_v9 }
 0x61a   : > { %5897 = vtanh.f32 %v4804_v13 }
 0x61b   : > { %v4807_v29 = vpop.f32.mrf.mxu3  ;;  %v5406_v59 = vadd.f32 %v5405_v2, %v5249_v51  ;;  %v4467_v27 = vpop.f32.mrf.mxu1 }
 0x61c   : > { %v4279_v16 = vpop.f32.mrf.mxu0  ;;  %v4468_v40 = vadd.f32 %v4467_v27, %v4275_v43  ;;  %v9217_v27 = vld [vmem:[#allocation139_spill] sm:$0xff] }
 0x61d   : > { %v4280_v63 = vadd.f32 %v4279_v16, %v7891_v37  ;;  %v4659_v8 = vpop.f32.mrf.mxu2 }
 0x61e   : > { %v4660_v20 = vadd.f32 %v4659_v8, %v4468_v40  ;;  %4562 = vmatmul.f32.gmra.mxu1 %v9209_v23  ;;  %v9218_v8 = vld [vmem:[#allocation158_spill] sm:$0xff] }
 0x61f   : > { %4358 = vmatmul.f32.gmra.mxu0 %v9208_v28 }
 0x620   : > { %4874 = vmatmul.f32.gmra.mxu3 %v9093_v34  ;;  %v5898_v62 = vpop.eup %5897  ;;  %v4808_v26 = vadd.f32 %v4807_v29, %v4660_v20 }
 0x621   : > { %4726 = vmatmul.f32.gmra.mxu2 %v9093_v34  ;;  %v5253_v15 = vmul.f32 %v5898_v62, %v9210_v33 }
 0x622   : > { %5899 = vtanh.f32 %v4808_v26 }
 0x623   : > { %v4811_v3 = vpop.f32.mrf.mxu3  ;;  %v5407_v32 = vadd.f32 %v5406_v59, %v5253_v15  ;;  %v4473_v37 = vpop.f32.mrf.mxu1 }
 0x624   : > { %v4284_v52 = vpop.f32.mrf.mxu0  ;;  %v4474_v25 = vadd.f32 %v4473_v37, %v4280_v63 }
 0x625   : > { %v4285_v4 = vadd.f32 %v4284_v52, %v7899_v54  ;;  %v4663_v39 = vpop.f32.mrf.mxu2 }
 0x626   : > { %v4664_v19 = vadd.f32 %v4663_v39, %v4474_v25  ;;  %4568 = vmatmul.f32.gmra.mxu1 %v9212_v17 }
 0x627   : > { %4363 = vmatmul.f32.gmra.mxu0 %v9211_v57 }
 0x628   : > { %4878 = vmatmul.f32.gmra.mxu3 %v9037_v48  ;;  %v5900_v0 = vpop.eup %5899  ;;  %v4812_v34 = vadd.f32 %v4811_v3, %v4664_v19 }
 0x629   : > { %4730 = vmatmul.f32.gmra.mxu2 %v9037_v48  ;;  %v5257_v36 = vmul.f32 %v5900_v0, %v9213_v41 }
 0x62a   : > { %5901 = vtanh.f32 %v4812_v34 }
 0x62b   : > { %v4815_v10 = vpop.f32.mrf.mxu3  ;;  %v5408_v35 = vadd.f32 %v5407_v32, %v5257_v36  ;;  %v4479_v54 = vpop.f32.mrf.mxu1 }
 0x62c   : > { %v4289_v42 = vpop.f32.mrf.mxu0  ;;  %v4480_v14 = vadd.f32 %v4479_v54, %v4285_v4 }
 0x62d   : > { %v4290_v2 = vadd.f32 %v4289_v42, %v7907_v49  ;;  %v4667_v38 = vpop.f32.mrf.mxu2 }
 0x62e   : > { %v4668_v43 = vadd.f32 %v4667_v38, %v4480_v14  ;;  %4574 = vmatmul.f32.gmra.mxu1 %v9215_v1 }
 0x62f   : > { %4368 = vmatmul.f32.gmra.mxu0 %v9214_v6 }
 0x630   : > { %4882 = vmatmul.f32.gmra.mxu3 %v9040_v12  ;;  %v5902_v45 = vpop.eup %5901  ;;  %v4816_v48 = vadd.f32 %v4815_v10, %v4668_v43 }
 0x631   : > { %4734 = vmatmul.f32.gmra.mxu2 %v9040_v12  ;;  %v5261_v47 = vmul.f32 %v5902_v45, %v9216_v60 }
 0x632   : > { %5903 = vtanh.f32 %v4816_v48 }
 0x633   : > { %v4819_v44 = vpop.f32.mrf.mxu3  ;;  %v5409_v13 = vadd.f32 %v5408_v35, %v5261_v47  ;;  %v4485_v49 = vpop.f32.mrf.mxu1 }
 0x634   : > { %v4294_v9 = vpop.f32.mrf.mxu0  ;;  %v4486_v29 = vadd.f32 %v4485_v49, %v4290_v2 }
 0x635   : > { %v4295_v51 = vadd.f32 %v4294_v9, %v7914_v24  ;;  %v4671_v59 = vpop.f32.mrf.mxu2 }
 0x636   : > { %v4672_v16 = vadd.f32 %v4671_v59, %v4486_v29  ;;  %4580 = vmatmul.f32.gmra.mxu1 %v9217_v27 }
 0x638   : > { %v5904_v63 = vpop.eup %5903  ;;  %v4820_v40 = vadd.f32 %v4819_v44, %v4672_v16 }
 0x639   : > { %v5265_v20 = vmul.f32 %v5904_v63, %v9218_v8 }
 0x63a   : > { %5905 = vtanh.f32 %v4820_v40  ;;  %v9219_v40 = vld [vmem:[#allocation165_spill] sm:$0xff] }
 0x63b   : > { %v4823_v12 = vpop.f32.mrf.mxu3  ;;  %v5410_v28 = vadd.f32 %v5409_v13, %v5265_v20  ;;  %v4491_v62 = vpop.f32.mrf.mxu1 }
 0x63c   : > { %v4299_v23 = vpop.f32.mrf.mxu0  ;;  %v4492_v33 = vadd.f32 %v4491_v62, %v4295_v51 }
 0x63d   : > { %v4300_v26 = vadd.f32 %v4299_v23, %v7924_v30  ;;  %v4675_v15 = vpop.f32.mrf.mxu2 }
 0x63e   : > { %v4676_v3 = vadd.f32 %v4675_v15, %v4492_v33 }
 0x640   : > { %v5906_v24 = vpop.eup %5905  ;;  %v4824_v32 = vadd.f32 %v4823_v12, %v4676_v3  ;;  %v9220_v3 = vld [vmem:[#allocation166_spill] sm:$0xff] }
 0x641   : > { %v5269_v52 = vmul.f32 %v5906_v24, %v9101_v7 }
 0x642   : > { %5907 = vtanh.f32 %v4824_v32 }
 0x643   : > { %v4827_v37 = vpop.f32.mrf.mxu3  ;;  %v8147_v4 = vadd.f32 %v5410_v28, %v5269_v52  ;;  %v4497_v39 = vpop.f32.mrf.mxu1 }
 0x644   : > { %v4304_v25 = vpop.f32.mrf.mxu0  ;;  %v4498_v57 = vadd.f32 %v4497_v39, %v4300_v26 }
 0x645   : > { %v4305_v19 = vadd.f32 %v4304_v25, %v7933_v53  ;;  %v4679_v17 = vpop.f32.mrf.mxu2 }
 0x646   : > { %v4680_v0 = vadd.f32 %v4679_v17, %v4498_v57 }
 0x648   : > { %v4828_v34 = vadd.f32 %v4827_v37, %v4680_v0  ;;  %v5908_v42 = vpop.eup %5907 }
 0x649   : > { %v5273_v38 = vmul.f32 %v5908_v42, %v9106_v50 }
 0x64a   : > { %5909 = vtanh.f32 %v4828_v34  ;;  %v9221_v34 = vld [vmem:[#allocation167_spill] sm:$0xff] }
 0x64b   : > { %v4831_v30 = vpop.f32.mrf.mxu3  ;;  %v4503_v36 = vpop.f32.mrf.mxu1 }
 0x64c   : > { %v4309_v41 = vpop.f32.mrf.mxu0  ;;  %v4504_v35 = vadd.f32 %v4503_v36, %v4305_v19 }
 0x64d   : > { %v4310_v10 = vadd.f32 %v4309_v41, %v7941_v56  ;;  %v4683_v7 = vpop.f32.mrf.mxu2  ;;  %v9222_v41 = vld [vmem:[#allocation27_spill] sm:$0xff] }
 0x64e   : > { %v4684_v54 = vadd.f32 %v4683_v7, %v4504_v35 }
 0x650   : > { %v5910_v2 = vpop.eup %5909  ;;  %v4832_v14 = vadd.f32 %v4831_v30, %v4684_v54 }
 0x651   : > { %v5277_v53 = vmul.f32 %v5910_v2, %v9107_v46 }
 0x652   : > { %5911 = vtanh.f32 %v4832_v14 }
 0x653   : > { %v4835_v43 = vpop.f32.mrf.mxu3  ;;  %v5481_v6 = vadd.f32 %v5277_v53, %v5273_v38  ;;  %v4509_v45 = vpop.f32.mrf.mxu1  ;;  %v9223_v53 = vld [vmem:[#allocation169_spill] sm:$0xff] }
 0x654   : > { %v4314_v1 = vpop.f32.mrf.mxu0  ;;  %v4510_v60 = vadd.f32 %v4509_v45, %v4310_v10 }
 0x655   : > { %v4315_v48 = vadd.f32 %v4314_v1, %v7949_v58  ;;  %v4687_v47 = vpop.f32.mrf.mxu2 }
 0x656   : > { %v4688_v56 = vadd.f32 %v4687_v47, %v4510_v60 }
 0x658   : > { %v5912_v44 = vpop.eup %5911  ;;  %v4836_v13 = vadd.f32 %v4835_v43, %v4688_v56 }
 0x659   : > { %v5281_v9 = vmul.f32 %v5912_v44, %v9110_v55 }
 0x65a   : > { %5913 = vtanh.f32 %v4836_v13 }
 0x65b   : > { %v4839_v49 = vpop.f32.mrf.mxu3  ;;  %v5482_v51 = vadd.f32 %v5481_v6, %v5281_v9  ;;  %v4515_v29 = vpop.f32.mrf.mxu1  ;;  %v9224_v6 = vld [vmem:[#allocation17_spill] sm:$0xff] }
 0x65c   : > { %v4319_v50 = vpop.f32.mrf.mxu0  ;;  %v4516_v46 = vadd.f32 %v4515_v29, %v4315_v48  ;;  %v9226_v29 = vld [vmem:[#allocation31_spill] sm:$0xff] }
 0x65d   : > { %v4691_v59 = vpop.f32.mrf.mxu2  ;;  %v4320_v58 = vadd.f32 %v4319_v50, %v7957_v18 }
 0x65e   : > { %v4692_v16 = vadd.f32 %v4691_v59, %v4516_v46 }
 0x660   : > { %v5914_v27 = vpop.eup %5913  ;;  %v4840_v63 = vadd.f32 %v4839_v49, %v4692_v16 }
 0x661   : > { %v5285_v8 = vmul.f32 %v5914_v27, %v9219_v40 }
 0x662   : > { %5915 = vtanh.f32 %v4840_v63 }
 0x663   : > { %v4843_v20 = vpop.f32.mrf.mxu3  ;;  %v5483_v12 = vadd.f32 %v5482_v51, %v5285_v8  ;;  %v4521_v23 = vpop.f32.mrf.mxu1  ;;  %v9225_v51 = vld [vmem:[#allocation171_spill] sm:$0xff] }
 0x664   : > { %v4324_v28 = vpop.f32.mrf.mxu0  ;;  %v4522_v55 = vadd.f32 %v4521_v23, %v4320_v58 }
 0x665   : > { %v4695_v62 = vpop.f32.mrf.mxu2  ;;  %v4325_v32 = vadd.f32 %v4324_v28, %v7965_v61  ;;  %v9227_v28 = vld [vmem:[#allocation172_spill] sm:$0xff] }
 0x666   : > { %v4696_v26 = vadd.f32 %v4695_v62, %v4522_v55 }
 0x668   : > { %v5916_v33 = vpop.eup %5915  ;;  %v4844_v15 = vadd.f32 %v4843_v20, %v4696_v26 }
 0x669   : > { %v5289_v24 = vmul.f32 %v5916_v33, %v9220_v3 }
 0x66a   : > { %5917 = vtanh.f32 %v4844_v15 }
 0x66b   : > { %v4847_v52 = vpop.f32.mrf.mxu3  ;;  %v5484_v37 = vadd.f32 %v5483_v12, %v5289_v24  ;;  %v4527_v39 = vpop.f32.mrf.mxu1 }
 0x66c   : > { %v4329_v25 = vpop.f32.mrf.mxu0  ;;  %v4528_v18 = vadd.f32 %v4527_v39, %v4325_v32 }
 0x66d   : > { %v4699_v19 = vpop.f32.mrf.mxu2  ;;  %v4330_v36 = vadd.f32 %v4329_v25, %v9222_v41  ;;  %v9228_v25 = vld [vmem:[#allocation173_spill] sm:$0xff] }
 0x66e   : > { %v4700_v57 = vadd.f32 %v4699_v19, %v4528_v18 }
 0x670   : > { %v5918_v17 = vpop.eup %5917  ;;  %v4848_v0 = vadd.f32 %v4847_v52, %v4700_v57 }
 0x671   : > { %v5293_v30 = vmul.f32 %v5918_v17, %v9221_v34 }
 0x672   : > { %5919 = vtanh.f32 %v4848_v0 }
 0x673   : > { %v4851_v10 = vpop.f32.mrf.mxu3  ;;  %v5485_v35 = vadd.f32 %v5484_v37, %v5293_v30  ;;  %v4533_v42 = vpop.f32.mrf.mxu1 }
 0x674   : > { %v4334_v7 = vpop.f32.mrf.mxu0  ;;  %v4534_v61 = vadd.f32 %v4533_v42, %v4330_v36 }
 0x675   : > { %v4703_v54 = vpop.f32.mrf.mxu2  ;;  %v4335_v1 = vadd.f32 %v4334_v7, %v9224_v6  ;;  %v9230_v6 = vld [vmem:[#allocation175_spill] sm:$0xff] }
 0x676   : > { %v4704_v2 = vadd.f32 %v4703_v54, %v4534_v61 }
 0x678   : > { %v5920_v14 = vpop.eup %5919  ;;  %v4852_v38 = vadd.f32 %v4851_v10, %v4704_v2  ;;  %v9229_v10 = vld [vmem:[#allocation174_spill] sm:$0xff] }
 0x679   : > { %v5297_v43 = vmul.f32 %v5920_v14, %v9223_v53 }
 0x67a   : > { %5921 = vtanh.f32 %v4852_v38 }
 0x67b   : > { %v4855_v45 = vpop.f32.mrf.mxu3  ;;  %v5486_v48 = vadd.f32 %v5485_v35, %v5297_v43  ;;  %v4539_v47 = vpop.f32.mrf.mxu1 }
 0x67c   : > { %v4339_v60 = vpop.f32.mrf.mxu0  ;;  %v4540_v56 = vadd.f32 %v4539_v47, %v4335_v1 }
 0x67d   : > { %v4707_v44 = vpop.f32.mrf.mxu2  ;;  %v4340_v46 = vadd.f32 %v4339_v60, %v9226_v29 }
 0x67e   : > { %v4708_v13 = vadd.f32 %v4707_v44, %v4540_v56 }
 0x680   : > { %v5922_v9 = vpop.eup %5921  ;;  %v4856_v49 = vadd.f32 %v4855_v45, %v4708_v13  ;;  %v9231_v45 = vld [vmem:[#allocation21_spill] sm:$0xff] }
 0x681   : > { %v5301_v50 = vmul.f32 %v5922_v9, %v9225_v51 }
 0x682   : > { %5923 = vtanh.f32 %v4856_v49 }
 0x683   : > { %v4859_v59 = vpop.f32.mrf.mxu3  ;;  %v5487_v16 = vadd.f32 %v5486_v48, %v5301_v50  ;;  %v4545_v63 = vpop.f32.mrf.mxu1  ;;  %v9232_v50 = vld [vmem:[#allocation177_spill] sm:$0xff] }
 0x684   : > { %v4344_v27 = vpop.f32.mrf.mxu0  ;;  %v4546_v40 = vadd.f32 %v4545_v63, %v4340_v46  ;;  %v9233_v46 = vld [vmem:[#allocation35_spill] sm:$0xff] }
 0x685   : > { %v4711_v8 = vpop.f32.mrf.mxu2  ;;  %v4345_v55 = vadd.f32 %v4344_v27, %v7997_v22 }
 0x686   : > { %v4712_v58 = vadd.f32 %v4711_v8, %v4546_v40 }
 0x688   : > { %v5924_v20 = vpop.eup %5923  ;;  %v4860_v12 = vadd.f32 %v4859_v59, %v4712_v58 }
 0x689   : > { %v5305_v23 = vmul.f32 %v5924_v20, %v9227_v28 }
 0x68a   : > { %5925 = vtanh.f32 %v4860_v12 }
 0x68b   : > { %v4863_v62 = vpop.f32.mrf.mxu3  ;;  %v5488_v26 = vadd.f32 %v5487_v16, %v5305_v23  ;;  %v4551_v15 = vpop.f32.mrf.mxu1  ;;  %v9234_v23 = vld [vmem:[#allocation179_spill] sm:$0xff] }
 0x68c   : > { %v4349_v33 = vpop.f32.mrf.mxu0  ;;  %v4552_v3 = vadd.f32 %v4551_v15, %v4345_v55 }
 0x68d   : > { %v4715_v24 = vpop.f32.mrf.mxu2  ;;  %v4350_v18 = vadd.f32 %v4349_v33, %v8005_v5 }
 0x68e   : > { %v4716_v32 = vadd.f32 %v4715_v24, %v4552_v3 }
 0x690   : > { %v5926_v52 = vpop.eup %5925  ;;  %v4864_v37 = vadd.f32 %v4863_v62, %v4716_v32  ;;  %v9235_v62 = vld [vmem:[#allocation25_spill] sm:$0xff] }
 0x691   : > { %v5309_v39 = vmul.f32 %v5926_v52, %v9228_v25 }
 0x692   : > { %5927 = vtanh.f32 %v4864_v37  ;;  %v5412_v37 = vrot.slane %v8147_v4, 4 }
 0x693   : > { %v4867_v19 = vpop.f32.mrf.mxu3  ;;  %v5489_v57 = vadd.f32 %v5488_v26, %v5309_v39  ;;  %v4557_v0 = vpop.f32.mrf.mxu1 }
 0x694   : > { %v4354_v17 = vpop.f32.mrf.mxu0  ;;  %v4558_v22 = vadd.f32 %v4557_v0, %v4350_v18  ;;  %v9236_v18 = vld [vmem:[#allocation181_spill] sm:$0xff] }
 0x695   : > { %v4719_v34 = vpop.f32.mrf.mxu2  ;;  %v4355_v7 = vadd.f32 %v4354_v17, %v8013_v21 }
 0x696   : > { %v4720_v30 = vadd.f32 %v4719_v34, %v4558_v22  ;;  %v9237_v34 = vld [vmem:[#allocation141_spill] sm:$0xff] }
 0x698   : > { %v5928_v41 = vpop.eup %5927  ;;  %v4868_v36 = vadd.f32 %v4867_v19, %v4720_v30 }
 0x699   : > { %v5313_v35 = vmul.f32 %v5928_v41, %v9229_v10 }
 0x69a   : > { %5929 = vtanh.f32 %v4868_v36 }
 0x69b   : > { %v4871_v42 = vpop.f32.mrf.mxu3  ;;  %v5490_v61 = vadd.f32 %v5489_v57, %v5313_v35  ;;  %v4563_v2 = vpop.f32.mrf.mxu1  ;;  %v5413_v57 = vadd.f32 %v5412_v37, %v8147_v4 }
 0x69c   : > { %v4359_v54 = vpop.f32.mrf.mxu0  ;;  %v4564_v5 = vadd.f32 %v4563_v2, %v4355_v7 }
 0x69d   : > { %v4723_v14 = vpop.f32.mrf.mxu2  ;;  %v4360_v48 = vadd.f32 %v4359_v54, %v9231_v45  ;;  %v5414_v0 = vrot.slane %v5413_v57, 2 }
 0x69e   : > { %v4724_v38 = vadd.f32 %v4723_v14, %v4564_v5  ;;  %v5516_v5 = vrot.slane %v8058_v31, 1  ;;  %v5943_v14 = vld [vmem:[%s6104_s17 + $0x58] sm:$0xff]  ;;  %s5958_s17 = sshra.s32 %s5561_s20, 4  ;;  %s5959_s17 = int_to_ptr.hbm [resolvable:$true] %s5958_s17 }
 0x69f   : > { %v5415_v41 = vadd.f32 %v5414_v0, %v5413_v57  ;;  %s5960_s24 = scalar_lea.hbm %s5959_s17, 4  ;;  %p5965_p2 = scmp.lt.s32.totalorder %s5959_s17, %s8223_s3 }
 0x6a0   : > { %v5930_v53 = vpop.eup %5929  ;;  %v4872_v43 = vadd.f32 %v4871_v42, %v4724_v38  ;;  %p5961_p13 = scmp.ne.s32.totalorder %s5959_s17, %s5960_s24  ;;  %p5966_p3 = scmp.lt.s32.totalorder %s5964_s27, %s5960_s24 }
 0x6a1   : > { %v5317_v1 = vmul.f32 %v5930_v53, %v9230_v6  ;;  %v5416_v35 = vrot.slane %v5415_v41, 1  ;;  %v5517_v53 = vrot.slane %v5943_v14, 1  ;;  %v5524_v6 = vadd.f32 %v5516_v5, %v8061_v11  ;;  %v9238_v11 = vld [vmem:[#allocation145_spill] sm:$0xff] }
 0x6a2   : > { %5931 = vtanh.f32 %v4872_v43  ;;  %p5962_p0 = pnand %p5961_p13, %p6067_p6  ;;  %p5967_p4 = por %p5966_p3, %p5965_p2 }
 0x6a3   : > { %v4875_v60 = vpop.f32.mrf.mxu3  ;;  %v5491_v47 = vadd.f32 %v5490_v61, %v5317_v1  ;;  %v4569_v56 = vpop.f32.mrf.mxu1  ;;  %v5417_v61 = vadd.f32 %v5416_v35, %v5415_v41  ;;  %v5540_v1 = vlaneseq  ;;  %v5531_v31 = vrot.slane %v5524_v6, 6 }
 0x6a4   : > { %v4570_v44 = vadd.f32 %v4569_v56, %v4360_v48  ;;  %v4364_v13 = vpop.f32.mrf.mxu0  ;;  %p5963_p1 = pneg %p5962_p0 }
 0x6a5   : > { %v4727_v21 = vpop.f32.mrf.mxu2  ;;  %v4365_v59 = vadd.f32 %v4364_v13, %v9233_v46  ;;  %v5505_v38 = vmul.f32 %v5943_v14, %v5417_v61  ;;  %vm5542_vm4 = vcmp.lt.s32.totalorder %v5540_v1, 512 }
 0x6a6   : > { %v4728_v9 = vadd.f32 %v4727_v21, %v4570_v44  ;;  %p5968_p5 = pnand %p5967_p4, %p5963_p1 }
 0x6a8   : > { %v5932_v49 = vpop.eup %5931  ;;  %v4876_v51 = vadd.f32 %v4875_v60, %v4728_v9 }
 0x6a9   : > { %v5321_v29 = vmul.f32 %v5932_v49, %v9232_v50 }
 0x6aa   : > { %5933 = vtanh.f32 %v4876_v51 }
 0x6ab   : > { %v5492_v16 = vadd.f32 %v5491_v47, %v5321_v29  ;;  %v4575_v27 = vpop.f32.mrf.mxu1  ;;  %v4879_v63 = vpop.f32.mrf.mxu3 }
 0x6ac   : > { %v4576_v40 = vadd.f32 %v4575_v27, %v4365_v59  ;;  %v4369_v20 = vpop.f32.mrf.mxu0 }
 0x6ad   : > { %v4731_v8 = vpop.f32.mrf.mxu2  ;;  %v4370_v26 = vadd.f32 %v4369_v20, %v9235_v62 }
 0x6ae   : > { %v4732_v58 = vadd.f32 %v4731_v8, %v4576_v40 }
 0x6b0   : > { %v5934_v12 = vpop.eup %5933  ;;  %v4880_v28 = vadd.f32 %v4879_v63, %v4732_v58 }
 0x6b1   : > { %v5325_v55 = vmul.f32 %v5934_v12, %v9234_v23 }
 0x6b2   : > { %5935 = vtanh.f32 %v4880_v28 }
 0x6b3   : > { %v5493_v33 = vadd.f32 %v5492_v16, %v5325_v55  ;;  %v4581_v15 = vpop.f32.mrf.mxu1  ;;  %v4883_v32 = vpop.f32.mrf.mxu3 }
 0x6b4   : > { %v4582_v3 = vadd.f32 %v4581_v15, %v4370_v26 }
 0x6b5   : > { %v4735_v24 = vpop.f32.mrf.mxu2 }
 0x6b6   : > { %v4736_v52 = vadd.f32 %v4735_v24, %v4582_v3 }
 0x6b8   : > { %v5936_v25 = vpop.eup %5935  ;;  %v4884_v39 = vadd.f32 %v4883_v32, %v4736_v52 }
 0x6b9   : > { %v5329_v19 = vmul.f32 %v5936_v25, %v9236_v18 }
 0x6ba   : > { %5937 = vtanh.f32 %v4884_v39 }
 0x6bb   : > { %v5494_v17 = vadd.f32 %v5493_v33, %v5329_v19 }
 0x6c0   : > { %v5938_v22 = vpop.eup %5937 }
 0x6c1   : > { %v5333_v30 = vmul.f32 %v5938_v22, %v9237_v34 }
 0x6c3   : > { %v5495_v36 = vadd.f32 %v5494_v17, %v5333_v30 }
 0x6c5   : > { %v5496_v10 = vrot.slane %v5495_v36, 4 }
 0x6c7   : > { %v5497_v7 = vadd.f32 %v5496_v10, %v5495_v36 }
 0x6c9   : > { %v5498_v42 = vrot.slane %v5497_v7, 2 }
 0x6cb   : > { %v5499_v54 = vadd.f32 %v5498_v42, %v5497_v7 }
 0x6cd   : > { %v5500_v2 = vrot.slane %v5499_v54, 1 }
 0x6cf   : > { %v5501_v4 = vadd.f32 %v5500_v2, %v5499_v54 }
 0x6d1   : > { %v5509_v43 = vadd.f32 %v5505_v38, %v5501_v4 }
 0x6d3   : > { %v5525_v45 = vadd.f32 %v5517_v53, %v5509_v43 }
 0x6d5   : > { %v5532_v48 = vrot.slane %v5525_v45, 5 }
 0x6d7   : > { %v5536_v60 = vsel %vm5535_vm2, %v5531_v31, %v5532_v48 }
 0x6d8   : > { %v5538_v47 = vsel %vm5537_vm3, %v9238_v11, %v5536_v60 }
 0x6d9   : > { %5544 = vst.msk [vmem:[%s210_s11] sm:$0xf] %vm5542_vm4, %v5538_v47 }
 0x6da   : > { %5971 = shalt.err (!%p5968_p5)
}
 0x6db   : > { %5640 = dma.vmem_to_hbm [thread:$0]  (%p6067_p6), %s5559_s19, 64, %s5561_s20, %s5546_s16  }
 0x6dc PF: > { %s5572_s4 = sand.u32 1, %s5994_s12   ;;  %p5643_p7 = pnand %p5628_p9, %p6071_p8 }
 0x6dd   : > { %s5573_s30 = scalar_lea.sflag [#allocation4], %s5572_s4 }
 0x6de   : > { %p5644_p10 = pneg %p5643_p7 }
 0x6e0   : > { %5989 = dma.done.wait (%p5644_p10), %s5573_s30, 64  }
 0x6e1   : > { %5991 = vsyncadd (%p5644_p10), %s5573_s30, 4294967232  ;;  %p13_p11 = scmp.ge.s32.totalorder %s6052_s18, 4   ;;  %s9239_s12 = smov %s5998_s13 }
 0x6e2   : > { %s9240_s13 = smov %s6002_s14  ;;  %s9241_s14 = smov %s6065_s21 }
 0x6e3   : > { %s9242_s15 = smov %s6052_s18  ;;  %15 = sbr.rel (!%p13_p11) target bundleno = 3 (0x3), region = 95 }
 0x6e8   :  { %5579 = vsyncpa [#allocation4], 1 }
 0x6e9   :  { %5581 = vsyncpa [#allocation4 + $0x1], 1 }

</bundles_post_ra>
